<compile_context>
chip_gen: v7x
topology: tpu7x:2x2x1
jax: 0.10.0
libtpu: 0.0.40
codegen_flags: <defaults>
</compile_context>

<pallas_src>
import functools
import math

import jax
import jax.numpy as jnp
from jax import lax
from jax.experimental import pallas as pl
from jax.experimental.pallas import tpu as pltpu


def _block_kernel(xp_ref, w1_ref, b1_ref, w2_ref, b2_ref, out_ref, mid_ref,
                  *, H1, W1, H2, W2, k1, k2, p2, slope):
    """Fused Block forward for one batch element.

    xp_ref : (H+2*p1, W+2*p1, Cin)      spatially pre-padded input (NHWC, no N)
    w1_ref : (k1, k1, Cin, Cout)        equalized conv1 weight
    b1_ref : (1, Cout)                  conv1 bias
    w2_ref : (k2, k2, Cout, Cout)       equalized conv2 weight
    b2_ref : (1, Cout)                  conv2 bias
    out_ref: (H2*W2, Cout)              block output (spatial flattened)
    mid_ref: (H1+2*p2, W1+2*p2, Cout)   VMEM scratch: padded conv1 activation
    """
    Cin = xp_ref.shape[-1]
    Cout = out_ref.shape[-1]

    # ---------- conv1: k1*k1 per-tap whole-image matmuls (M = H1*W1) ----------
    acc = jnp.zeros((H1 * W1, Cout), jnp.float32)
    for kh in range(k1):
        for kw in range(k1):
            patch = xp_ref[pl.ds(kh, H1), pl.ds(kw, W1), :]      # (H1, W1, Cin)
            patch = patch.reshape(H1 * W1, Cin)                  # sublane merge
            acc = acc + jnp.dot(patch, w1_ref[kh, kw],
                                preferred_element_type=jnp.float32)
    acc = acc + b1_ref[...]                                      # (1, Cout) bcast
    # PixelNorm over channels (torch dim=1 == channels-last here), rsqrt -> EUP
    y1 = acc * lax.rsqrt(jnp.mean(acc * acc, axis=-1, keepdims=True) + 1e-8)
    # LeakyReLU(slope)
    y1 = jnp.where(y1 >= 0, y1, slope * y1)

    # Zero the padded scratch once (borders act as conv2 zero padding), then
    # write the interior as a single block store (no per-row concat/copies).
    if p2 > 0:
        mid_ref[...] = jnp.zeros(mid_ref.shape, mid_ref.dtype)
    mid_ref[pl.ds(p2, H1), pl.ds(p2, W1), :] = y1.reshape(H1, W1, Cout)

    # ---------- conv2: k2*k2 per-tap whole-image matmuls (M = H2*W2) ----------
    acc2 = jnp.zeros((H2 * W2, Cout), jnp.float32)
    for kh in range(k2):
        for kw in range(k2):
            patch = mid_ref[pl.ds(kh, H2), pl.ds(kw, W2), :]     # (H2, W2, Cout)
            patch = patch.reshape(H2 * W2, Cout)
            acc2 = acc2 + jnp.dot(patch, w2_ref[kh, kw],
                                  preferred_element_type=jnp.float32)
    acc2 = acc2 + b2_ref[...]
    y2 = acc2 * lax.rsqrt(jnp.mean(acc2 * acc2, axis=-1, keepdims=True) + 1e-8)
    y2 = jnp.where(y2 >= 0, y2, slope * y2)
    out_ref[...] = y2


def block_forward(x_nchw, params, *, k1, p1, k2, p2, slope=0.2):
    """Block.forward: NCHW in, NCHW out (stride 1, norm='PN', leaky_relu)."""
    w1, b1, w2, b2 = params["w1"], params["b1"], params["w2"], params["b2"]
    B, Cin, H, W = x_nchw.shape
    Cout = w1.shape[-1]
    H1, W1 = H + 2 * p1 - k1 + 1, W + 2 * p1 - k1 + 1
    H2, W2 = H1 + 2 * p2 - k2 + 1, W1 + 2 * p2 - k2 + 1

    x = jnp.transpose(x_nchw, (0, 2, 3, 1)).astype(jnp.float32)   # NHWC
    xp = jnp.pad(x, ((0, 0), (p1, p1), (p1, p1), (0, 0)))          # pad for conv1
    Hp1, Wp1 = H + 2 * p1, W + 2 * p1

    kernel = functools.partial(_block_kernel, H1=H1, W1=W1, H2=H2, W2=W2,
                               k1=k1, k2=k2, p2=p2, slope=slope)

    out = pl.pallas_call(
        kernel,
        out_shape=jax.ShapeDtypeStruct((B, H2 * W2, Cout), jnp.float32),
        grid=(B,),
        in_specs=[
            pl.BlockSpec((None, Hp1, Wp1, Cin), lambda b: (b, 0, 0, 0)),
            pl.BlockSpec((k1, k1, Cin, Cout), lambda b: (0, 0, 0, 0)),
            pl.BlockSpec((1, Cout), lambda b: (0, 0)),
            pl.BlockSpec((k2, k2, Cout, Cout), lambda b: (0, 0, 0, 0)),
            pl.BlockSpec((1, Cout), lambda b: (0, 0)),
        ],
        out_specs=pl.BlockSpec((None, H2 * W2, Cout), lambda b: (b, 0, 0)),
        scratch_shapes=[pltpu.VMEM((H1 + 2 * p2, W1 + 2 * p2, Cout),
                                   jnp.float32)],
        # batch elements are independent -> parallel (shards across v7x's 2 TCs)
        compiler_params=pltpu.CompilerParams(dimension_semantics=("parallel",)),
    )(xp, w1, b1, w2, b2)

    out = out.reshape(B, H2, W2, Cout)
    return jnp.transpose(out, (0, 3, 1, 2))   # back to NCHW


def init_block_params(key, in_dim, out_dim, k1, k2):
    """Deterministic init mirroring EqualizedConv2d: N(0,1) weights, zero bias,
    with the equalized-LR scale sqrt(2 / fan_in) folded into the weights."""
    k_a, k_b = jax.random.split(key)
    w1_oihw = jax.random.normal(k_a, (out_dim, in_dim, k1, k1), jnp.float32)
    w2_oihw = jax.random.normal(k_b, (out_dim, out_dim, k2, k2), jnp.float32)
    w1_eq = w1_oihw * math.sqrt(2.0 / (in_dim * k1 * k1))
    w2_eq = w2_oihw * math.sqrt(2.0 / (out_dim * k2 * k2))
    params = dict(
        w1=jnp.transpose(w1_eq, (2, 3, 1, 0)),   # (k, k, Cin, Cout)
        b1=jnp.zeros((1, out_dim), jnp.float32),
        w2=jnp.transpose(w2_eq, (2, 3, 1, 0)),
        b2=jnp.zeros((1, out_dim), jnp.float32),
    )
    return params, (w1_eq, w2_eq)


def _ref_forward(x, w1_oihw, b1, w2_oihw, b2, p1, p2, slope):
    """Pure-JAX reference (matches the PyTorch Block with norm='PN')."""
    def cb(x, w, b, p):
        y = lax.conv_general_dilated(
            x, w, (1, 1), [(p, p), (p, p)],
            dimension_numbers=("NCHW", "OIHW", "NCHW"),
            precision=lax.Precision.HIGHEST)
        y = y + b.reshape(1, -1, 1, 1)
        y = y / jnp.sqrt(jnp.mean(y * y, axis=1, keepdims=True) + 1e-8)
        return jnp.where(y >= 0, y, slope * y)
    return cb(cb(x, w1_oihw, b1, p1), w2_oihw, b2, p2)


if __name__ == "__main__":
    # Block(in_dim=4, out_dim=8, ksize_1=3, pad_1=1, ksize_2=3, pad_2=1,
    #       norm='PN', n_slope=0.2, non_linear='leaky_relu', equlized=True)
    B, Cin, H, W = 2, 4, 16, 16
    Cout = 8
    k1 = k2 = 3
    p1 = p2 = 1
    slope = 0.2

    key = jax.random.PRNGKey(0)
    kx, kp = jax.random.split(key)
    x = jax.random.normal(kx, (B, Cin, H, W), jnp.float32)
    params, (w1_oihw, w2_oihw) = init_block_params(kp, Cin, Cout, k1, k2)

    out = block_forward(x, params, k1=k1, p1=p1, k2=k2, p2=p2, slope=slope)
    out = jax.block_until_ready(out)
    assert out.shape == (B, Cout, H, W), out.shape

    ref = _ref_forward(x, w1_oihw, params["b1"][0], w2_oihw, params["b2"][0],
                       p1, p2, slope)
    if not jnp.allclose(out, ref, rtol=2e-3, atol=2e-3):
        raise AssertionError("Pallas Block output mismatches JAX reference")

    print("KERNEL_OK")
</pallas_src>

<mosaic_0001>
module attributes {stable_mosaic.version = 11 : i64} {
  func.func @_block_kernel(%arg0: i32, %arg1: memref<1x18x18x4xf32, #tpu.memory_space<vmem>>, %arg2: memref<3x3x4x8xf32, #tpu.memory_space<vmem>>, %arg3: memref<1x8xf32, #tpu.memory_space<vmem>>, %arg4: memref<3x3x8x8xf32, #tpu.memory_space<vmem>>, %arg5: memref<1x8xf32, #tpu.memory_space<vmem>>, %arg6: memref<1x256x8xf32, #tpu.memory_space<vmem>>, %arg7: memref<18x18x8xf32, #tpu.memory_space<vmem>>) attributes {dimension_semantics = [#tpu.dimension_semantics<parallel>], iteration_bounds = array<i64: 2>, scalar_prefetch = 0 : i64, scratch_operands = 1 : i64, tpu.core_type = #tpu.core_type<tc>, window_params = [{transform_indices = @transform_0, window_bounds = array<i64: 1, 18, 18, 4>}, {pipeline_mode = #tpu.pipeline_mode<synchronous>, transform_indices = @transform_1, window_bounds = array<i64: 3, 3, 4, 8>}, {pipeline_mode = #tpu.pipeline_mode<synchronous>, transform_indices = @transform_2, window_bounds = array<i64: 1, 8>}, {pipeline_mode = #tpu.pipeline_mode<synchronous>, transform_indices = @transform_3, window_bounds = array<i64: 3, 3, 8, 8>}, {pipeline_mode = #tpu.pipeline_mode<synchronous>, transform_indices = @transform_4, window_bounds = array<i64: 1, 8>}, {transform_indices = @transform_5, window_bounds = array<i64: 1, 256, 8>}]} {
    %cst = arith.constant 0.000000e+00 : f32
    %0 = vector.broadcast %cst : f32 to vector<256x8xf32>
    %c0 = arith.constant 0 : index
    %c0_0 = arith.constant 0 : index
    %c0_1 = arith.constant 0 : index
    %c0_2 = arith.constant 0 : index
    %1 = vector.load %arg1[%c0, %c0_0, %c0_1, %c0_2] : memref<1x18x18x4xf32, #tpu.memory_space<vmem>>, vector<1x16x16x4xf32>
    %2 = vector.shape_cast %1 : vector<1x16x16x4xf32> to vector<16x16x4xf32>
    %3 = vector.shape_cast %2 : vector<16x16x4xf32> to vector<256x4xf32>
    %c0_3 = arith.constant 0 : index
    %c0_4 = arith.constant 0 : index
    %c0_5 = arith.constant 0 : index
    %c0_6 = arith.constant 0 : index
    %4 = vector.load %arg2[%c0_3, %c0_4, %c0_5, %c0_6] : memref<3x3x4x8xf32, #tpu.memory_space<vmem>>, vector<1x1x4x8xf32>
    %5 = vector.shape_cast %4 : vector<1x1x4x8xf32> to vector<4x8xf32>
    %cst_7 = arith.constant dense<0.000000e+00> : vector<256x8xf32>
    %6 = tpu.matmul %3, %5, %cst_7 {dimension_numbers = #tpu.dot_dimension_numbers<[1], [0], [0], [1], [0, 0, 1, 1], [], []>} : vector<256x4xf32>, vector<4x8xf32>, vector<256x8xf32> -> vector<256x8xf32>
    %7 = arith.addf %0, %6 : vector<256x8xf32>
    %c0_8 = arith.constant 0 : index
    %c0_9 = arith.constant 0 : index
    %c1 = arith.constant 1 : index
    %c0_10 = arith.constant 0 : index
    %8 = vector.load %arg1[%c0_8, %c0_9, %c1, %c0_10] : memref<1x18x18x4xf32, #tpu.memory_space<vmem>>, vector<1x16x16x4xf32>
    %9 = vector.shape_cast %8 : vector<1x16x16x4xf32> to vector<16x16x4xf32>
    %10 = vector.shape_cast %9 : vector<16x16x4xf32> to vector<256x4xf32>
    %c0_11 = arith.constant 0 : index
    %c1_12 = arith.constant 1 : index
    %c0_13 = arith.constant 0 : index
    %c0_14 = arith.constant 0 : index
    %11 = vector.load %arg2[%c0_11, %c1_12, %c0_13, %c0_14] : memref<3x3x4x8xf32, #tpu.memory_space<vmem>>, vector<1x1x4x8xf32>
    %12 = vector.shape_cast %11 : vector<1x1x4x8xf32> to vector<4x8xf32>
    %cst_15 = arith.constant dense<0.000000e+00> : vector<256x8xf32>
    %13 = tpu.matmul %10, %12, %cst_15 {dimension_numbers = #tpu.dot_dimension_numbers<[1], [0], [0], [1], [0, 0, 1, 1], [], []>} : vector<256x4xf32>, vector<4x8xf32>, vector<256x8xf32> -> vector<256x8xf32>
    %14 = arith.addf %7, %13 : vector<256x8xf32>
    %c0_16 = arith.constant 0 : index
    %c0_17 = arith.constant 0 : index
    %c2 = arith.constant 2 : index
    %c0_18 = arith.constant 0 : index
    %15 = vector.load %arg1[%c0_16, %c0_17, %c2, %c0_18] : memref<1x18x18x4xf32, #tpu.memory_space<vmem>>, vector<1x16x16x4xf32>
    %16 = vector.shape_cast %15 : vector<1x16x16x4xf32> to vector<16x16x4xf32>
    %17 = vector.shape_cast %16 : vector<16x16x4xf32> to vector<256x4xf32>
    %c0_19 = arith.constant 0 : index
    %c2_20 = arith.constant 2 : index
    %c0_21 = arith.constant 0 : index
    %c0_22 = arith.constant 0 : index
    %18 = vector.load %arg2[%c0_19, %c2_20, %c0_21, %c0_22] : memref<3x3x4x8xf32, #tpu.memory_space<vmem>>, vector<1x1x4x8xf32>
    %19 = vector.shape_cast %18 : vector<1x1x4x8xf32> to vector<4x8xf32>
    %cst_23 = arith.constant dense<0.000000e+00> : vector<256x8xf32>
    %20 = tpu.matmul %17, %19, %cst_23 {dimension_numbers = #tpu.dot_dimension_numbers<[1], [0], [0], [1], [0, 0, 1, 1], [], []>} : vector<256x4xf32>, vector<4x8xf32>, vector<256x8xf32> -> vector<256x8xf32>
    %21 = arith.addf %14, %20 : vector<256x8xf32>
    %c0_24 = arith.constant 0 : index
    %c1_25 = arith.constant 1 : index
    %c0_26 = arith.constant 0 : index
    %c0_27 = arith.constant 0 : index
    %22 = vector.load %arg1[%c0_24, %c1_25, %c0_26, %c0_27] : memref<1x18x18x4xf32, #tpu.memory_space<vmem>>, vector<1x16x16x4xf32>
    %23 = vector.shape_cast %22 : vector<1x16x16x4xf32> to vector<16x16x4xf32>
    %24 = vector.shape_cast %23 : vector<16x16x4xf32> to vector<256x4xf32>
    %c1_28 = arith.constant 1 : index
    %c0_29 = arith.constant 0 : index
    %c0_30 = arith.constant 0 : index
    %c0_31 = arith.constant 0 : index
    %25 = vector.load %arg2[%c1_28, %c0_29, %c0_30, %c0_31] : memref<3x3x4x8xf32, #tpu.memory_space<vmem>>, vector<1x1x4x8xf32>
    %26 = vector.shape_cast %25 : vector<1x1x4x8xf32> to vector<4x8xf32>
    %cst_32 = arith.constant dense<0.000000e+00> : vector<256x8xf32>
    %27 = tpu.matmul %24, %26, %cst_32 {dimension_numbers = #tpu.dot_dimension_numbers<[1], [0], [0], [1], [0, 0, 1, 1], [], []>} : vector<256x4xf32>, vector<4x8xf32>, vector<256x8xf32> -> vector<256x8xf32>
    %28 = arith.addf %21, %27 : vector<256x8xf32>
    %c0_33 = arith.constant 0 : index
    %c1_34 = arith.constant 1 : index
    %c1_35 = arith.constant 1 : index
    %c0_36 = arith.constant 0 : index
    %29 = vector.load %arg1[%c0_33, %c1_34, %c1_35, %c0_36] : memref<1x18x18x4xf32, #tpu.memory_space<vmem>>, vector<1x16x16x4xf32>
    %30 = vector.shape_cast %29 : vector<1x16x16x4xf32> to vector<16x16x4xf32>
    %31 = vector.shape_cast %30 : vector<16x16x4xf32> to vector<256x4xf32>
    %c1_37 = arith.constant 1 : index
    %c1_38 = arith.constant 1 : index
    %c0_39 = arith.constant 0 : index
    %c0_40 = arith.constant 0 : index
    %32 = vector.load %arg2[%c1_37, %c1_38, %c0_39, %c0_40] : memref<3x3x4x8xf32, #tpu.memory_space<vmem>>, vector<1x1x4x8xf32>
    %33 = vector.shape_cast %32 : vector<1x1x4x8xf32> to vector<4x8xf32>
    %cst_41 = arith.constant dense<0.000000e+00> : vector<256x8xf32>
    %34 = tpu.matmul %31, %33, %cst_41 {dimension_numbers = #tpu.dot_dimension_numbers<[1], [0], [0], [1], [0, 0, 1, 1], [], []>} : vector<256x4xf32>, vector<4x8xf32>, vector<256x8xf32> -> vector<256x8xf32>
    %35 = arith.addf %28, %34 : vector<256x8xf32>
    %c0_42 = arith.constant 0 : index
    %c1_43 = arith.constant 1 : index
    %c2_44 = arith.constant 2 : index
    %c0_45 = arith.constant 0 : index
    %36 = vector.load %arg1[%c0_42, %c1_43, %c2_44, %c0_45] : memref<1x18x18x4xf32, #tpu.memory_space<vmem>>, vector<1x16x16x4xf32>
    %37 = vector.shape_cast %36 : vector<1x16x16x4xf32> to vector<16x16x4xf32>
    %38 = vector.shape_cast %37 : vector<16x16x4xf32> to vector<256x4xf32>
    %c1_46 = arith.constant 1 : index
    %c2_47 = arith.constant 2 : index
    %c0_48 = arith.constant 0 : index
    %c0_49 = arith.constant 0 : index
    %39 = vector.load %arg2[%c1_46, %c2_47, %c0_48, %c0_49] : memref<3x3x4x8xf32, #tpu.memory_space<vmem>>, vector<1x1x4x8xf32>
    %40 = vector.shape_cast %39 : vector<1x1x4x8xf32> to vector<4x8xf32>
    %cst_50 = arith.constant dense<0.000000e+00> : vector<256x8xf32>
    %41 = tpu.matmul %38, %40, %cst_50 {dimension_numbers = #tpu.dot_dimension_numbers<[1], [0], [0], [1], [0, 0, 1, 1], [], []>} : vector<256x4xf32>, vector<4x8xf32>, vector<256x8xf32> -> vector<256x8xf32>
    %42 = arith.addf %35, %41 : vector<256x8xf32>
    %c0_51 = arith.constant 0 : index
    %c2_52 = arith.constant 2 : index
    %c0_53 = arith.constant 0 : index
    %c0_54 = arith.constant 0 : index
    %43 = vector.load %arg1[%c0_51, %c2_52, %c0_53, %c0_54] : memref<1x18x18x4xf32, #tpu.memory_space<vmem>>, vector<1x16x16x4xf32>
    %44 = vector.shape_cast %43 : vector<1x16x16x4xf32> to vector<16x16x4xf32>
    %45 = vector.shape_cast %44 : vector<16x16x4xf32> to vector<256x4xf32>
    %c2_55 = arith.constant 2 : index
    %c0_56 = arith.constant 0 : index
    %c0_57 = arith.constant 0 : index
    %c0_58 = arith.constant 0 : index
    %46 = vector.load %arg2[%c2_55, %c0_56, %c0_57, %c0_58] : memref<3x3x4x8xf32, #tpu.memory_space<vmem>>, vector<1x1x4x8xf32>
    %47 = vector.shape_cast %46 : vector<1x1x4x8xf32> to vector<4x8xf32>
    %cst_59 = arith.constant dense<0.000000e+00> : vector<256x8xf32>
    %48 = tpu.matmul %45, %47, %cst_59 {dimension_numbers = #tpu.dot_dimension_numbers<[1], [0], [0], [1], [0, 0, 1, 1], [], []>} : vector<256x4xf32>, vector<4x8xf32>, vector<256x8xf32> -> vector<256x8xf32>
    %49 = arith.addf %42, %48 : vector<256x8xf32>
    %c0_60 = arith.constant 0 : index
    %c2_61 = arith.constant 2 : index
    %c1_62 = arith.constant 1 : index
    %c0_63 = arith.constant 0 : index
    %50 = vector.load %arg1[%c0_60, %c2_61, %c1_62, %c0_63] : memref<1x18x18x4xf32, #tpu.memory_space<vmem>>, vector<1x16x16x4xf32>
    %51 = vector.shape_cast %50 : vector<1x16x16x4xf32> to vector<16x16x4xf32>
    %52 = vector.shape_cast %51 : vector<16x16x4xf32> to vector<256x4xf32>
    %c2_64 = arith.constant 2 : index
    %c1_65 = arith.constant 1 : index
    %c0_66 = arith.constant 0 : index
    %c0_67 = arith.constant 0 : index
    %53 = vector.load %arg2[%c2_64, %c1_65, %c0_66, %c0_67] : memref<3x3x4x8xf32, #tpu.memory_space<vmem>>, vector<1x1x4x8xf32>
    %54 = vector.shape_cast %53 : vector<1x1x4x8xf32> to vector<4x8xf32>
    %cst_68 = arith.constant dense<0.000000e+00> : vector<256x8xf32>
    %55 = tpu.matmul %52, %54, %cst_68 {dimension_numbers = #tpu.dot_dimension_numbers<[1], [0], [0], [1], [0, 0, 1, 1], [], []>} : vector<256x4xf32>, vector<4x8xf32>, vector<256x8xf32> -> vector<256x8xf32>
    %56 = arith.addf %49, %55 : vector<256x8xf32>
    %c0_69 = arith.constant 0 : index
    %c2_70 = arith.constant 2 : index
    %c2_71 = arith.constant 2 : index
    %c0_72 = arith.constant 0 : index
    %57 = vector.load %arg1[%c0_69, %c2_70, %c2_71, %c0_72] : memref<1x18x18x4xf32, #tpu.memory_space<vmem>>, vector<1x16x16x4xf32>
    %58 = vector.shape_cast %57 : vector<1x16x16x4xf32> to vector<16x16x4xf32>
    %59 = vector.shape_cast %58 : vector<16x16x4xf32> to vector<256x4xf32>
    %c2_73 = arith.constant 2 : index
    %c2_74 = arith.constant 2 : index
    %c0_75 = arith.constant 0 : index
    %c0_76 = arith.constant 0 : index
    %60 = vector.load %arg2[%c2_73, %c2_74, %c0_75, %c0_76] : memref<3x3x4x8xf32, #tpu.memory_space<vmem>>, vector<1x1x4x8xf32>
    %61 = vector.shape_cast %60 : vector<1x1x4x8xf32> to vector<4x8xf32>
    %cst_77 = arith.constant dense<0.000000e+00> : vector<256x8xf32>
    %62 = tpu.matmul %59, %61, %cst_77 {dimension_numbers = #tpu.dot_dimension_numbers<[1], [0], [0], [1], [0, 0, 1, 1], [], []>} : vector<256x4xf32>, vector<4x8xf32>, vector<256x8xf32> -> vector<256x8xf32>
    %63 = arith.addf %56, %62 : vector<256x8xf32>
    %c0_78 = arith.constant 0 : index
    %c0_79 = arith.constant 0 : index
    %64 = vector.load %arg3[%c0_78, %c0_79] : memref<1x8xf32, #tpu.memory_space<vmem>>, vector<1x8xf32>
    %65 = vector.broadcast %64 : vector<1x8xf32> to vector<256x8xf32>
    %66 = arith.addf %63, %65 : vector<256x8xf32>
    %67 = arith.mulf %66, %66 : vector<256x8xf32>
    %cst_80 = arith.constant dense<0.000000e+00> : vector<256xf32>
    %68 = vector.multi_reduction <add>, %67, %cst_80 [1] : vector<256x8xf32> to vector<256xf32>
    %69 = vector.shape_cast %68 : vector<256xf32> to vector<256x1xf32>
    %cst_81 = arith.constant 8.000000e+00 : f32
    %70 = vector.broadcast %cst_81 : f32 to vector<256x1xf32>
    %71 = arith.divf %69, %70 : vector<256x1xf32>
    %cst_82 = arith.constant 9.99999993E-9 : f32
    %72 = vector.broadcast %cst_82 : f32 to vector<256x1xf32>
    %73 = arith.addf %71, %72 : vector<256x1xf32>
    %74 = math.rsqrt %73 : vector<256x1xf32>
    %75 = vector.broadcast %74 : vector<256x1xf32> to vector<256x8xf32>
    %76 = arith.mulf %66, %75 : vector<256x8xf32>
    %cst_83 = arith.constant 0.000000e+00 : f32
    %77 = vector.broadcast %cst_83 : f32 to vector<256x8xf32>
    %78 = arith.cmpf oge, %76, %77 : vector<256x8xf32>
    %cst_84 = arith.constant 2.000000e-01 : f32
    %79 = vector.broadcast %cst_84 : f32 to vector<256x8xf32>
    %80 = arith.mulf %79, %76 : vector<256x8xf32>
    %81 = arith.select %78, %76, %80 : vector<256x8xi1>, vector<256x8xf32>
    %cst_85 = arith.constant 0.000000e+00 : f32
    %82 = vector.broadcast %cst_85 : f32 to vector<18x18x8xf32>
    %c0_86 = arith.constant 0 : index
    %c0_87 = arith.constant 0 : index
    %c0_88 = arith.constant 0 : index
    %83 = vector.load %arg7[%c0_86, %c0_87, %c0_88] : memref<18x18x8xf32, #tpu.memory_space<vmem>>, vector<18x18x8xf32>
    tpu.vector_store %arg7[%c0_86, %c0_87, %c0_88], %82 {strides = array<i32>} : memref<18x18x8xf32, #tpu.memory_space<vmem>>, vector<18x18x8xf32>,
    %84 = vector.shape_cast %81 : vector<256x8xf32> to vector<16x16x8xf32>
    %c1_89 = arith.constant 1 : index
    %c1_90 = arith.constant 1 : index
    %c0_91 = arith.constant 0 : index
    %85 = vector.load %arg7[%c1_89, %c1_90, %c0_91] : memref<18x18x8xf32, #tpu.memory_space<vmem>>, vector<16x16x8xf32>
    tpu.vector_store %arg7[%c1_89, %c1_90, %c0_91], %84 {strides = array<i32>} : memref<18x18x8xf32, #tpu.memory_space<vmem>>, vector<16x16x8xf32>,
    %cst_92 = arith.constant 0.000000e+00 : f32
    %86 = vector.broadcast %cst_92 : f32 to vector<256x8xf32>
    %c0_93 = arith.constant 0 : index
    %c0_94 = arith.constant 0 : index
    %c0_95 = arith.constant 0 : index
    %87 = vector.load %arg7[%c0_93, %c0_94, %c0_95] : memref<18x18x8xf32, #tpu.memory_space<vmem>>, vector<16x16x8xf32>
    %88 = vector.shape_cast %87 : vector<16x16x8xf32> to vector<256x8xf32>
    %c0_96 = arith.constant 0 : index
    %c0_97 = arith.constant 0 : index
    %c0_98 = arith.constant 0 : index
    %c0_99 = arith.constant 0 : index
    %89 = vector.load %arg4[%c0_96, %c0_97, %c0_98, %c0_99] : memref<3x3x8x8xf32, #tpu.memory_space<vmem>>, vector<1x1x8x8xf32>
    %90 = vector.shape_cast %89 : vector<1x1x8x8xf32> to vector<8x8xf32>
    %cst_100 = arith.constant dense<0.000000e+00> : vector<256x8xf32>
    %91 = tpu.matmul %88, %90, %cst_100 {dimension_numbers = #tpu.dot_dimension_numbers<[1], [0], [0], [1], [0, 0, 1, 1], [], []>} : vector<256x8xf32>, vector<8x8xf32>, vector<256x8xf32> -> vector<256x8xf32>
    %92 = arith.addf %86, %91 : vector<256x8xf32>
    %c0_101 = arith.constant 0 : index
    %c1_102 = arith.constant 1 : index
    %c0_103 = arith.constant 0 : index
    %93 = vector.load %arg7[%c0_101, %c1_102, %c0_103] : memref<18x18x8xf32, #tpu.memory_space<vmem>>, vector<16x16x8xf32>
    %94 = vector.shape_cast %93 : vector<16x16x8xf32> to vector<256x8xf32>
    %c0_104 = arith.constant 0 : index
    %c1_105 = arith.constant 1 : index
    %c0_106 = arith.constant 0 : index
    %c0_107 = arith.constant 0 : index
    %95 = vector.load %arg4[%c0_104, %c1_105, %c0_106, %c0_107] : memref<3x3x8x8xf32, #tpu.memory_space<vmem>>, vector<1x1x8x8xf32>
    %96 = vector.shape_cast %95 : vector<1x1x8x8xf32> to vector<8x8xf32>
    %cst_108 = arith.constant dense<0.000000e+00> : vector<256x8xf32>
    %97 = tpu.matmul %94, %96, %cst_108 {dimension_numbers = #tpu.dot_dimension_numbers<[1], [0], [0], [1], [0, 0, 1, 1], [], []>} : vector<256x8xf32>, vector<8x8xf32>, vector<256x8xf32> -> vector<256x8xf32>
    %98 = arith.addf %92, %97 : vector<256x8xf32>
    %c0_109 = arith.constant 0 : index
    %c2_110 = arith.constant 2 : index
    %c0_111 = arith.constant 0 : index
    %99 = vector.load %arg7[%c0_109, %c2_110, %c0_111] : memref<18x18x8xf32, #tpu.memory_space<vmem>>, vector<16x16x8xf32>
    %100 = vector.shape_cast %99 : vector<16x16x8xf32> to vector<256x8xf32>
    %c0_112 = arith.constant 0 : index
    %c2_113 = arith.constant 2 : index
    %c0_114 = arith.constant 0 : index
    %c0_115 = arith.constant 0 : index
    %101 = vector.load %arg4[%c0_112, %c2_113, %c0_114, %c0_115] : memref<3x3x8x8xf32, #tpu.memory_space<vmem>>, vector<1x1x8x8xf32>
    %102 = vector.shape_cast %101 : vector<1x1x8x8xf32> to vector<8x8xf32>
    %cst_116 = arith.constant dense<0.000000e+00> : vector<256x8xf32>
    %103 = tpu.matmul %100, %102, %cst_116 {dimension_numbers = #tpu.dot_dimension_numbers<[1], [0], [0], [1], [0, 0, 1, 1], [], []>} : vector<256x8xf32>, vector<8x8xf32>, vector<256x8xf32> -> vector<256x8xf32>
    %104 = arith.addf %98, %103 : vector<256x8xf32>
    %c1_117 = arith.constant 1 : index
    %c0_118 = arith.constant 0 : index
    %c0_119 = arith.constant 0 : index
    %105 = vector.load %arg7[%c1_117, %c0_118, %c0_119] : memref<18x18x8xf32, #tpu.memory_space<vmem>>, vector<16x16x8xf32>
    %106 = vector.shape_cast %105 : vector<16x16x8xf32> to vector<256x8xf32>
    %c1_120 = arith.constant 1 : index
    %c0_121 = arith.constant 0 : index
    %c0_122 = arith.constant 0 : index
    %c0_123 = arith.constant 0 : index
    %107 = vector.load %arg4[%c1_120, %c0_121, %c0_122, %c0_123] : memref<3x3x8x8xf32, #tpu.memory_space<vmem>>, vector<1x1x8x8xf32>
    %108 = vector.shape_cast %107 : vector<1x1x8x8xf32> to vector<8x8xf32>
    %cst_124 = arith.constant dense<0.000000e+00> : vector<256x8xf32>
    %109 = tpu.matmul %106, %108, %cst_124 {dimension_numbers = #tpu.dot_dimension_numbers<[1], [0], [0], [1], [0, 0, 1, 1], [], []>} : vector<256x8xf32>, vector<8x8xf32>, vector<256x8xf32> -> vector<256x8xf32>
    %110 = arith.addf %104, %109 : vector<256x8xf32>
    %c1_125 = arith.constant 1 : index
    %c1_126 = arith.constant 1 : index
    %c0_127 = arith.constant 0 : index
    %111 = vector.load %arg7[%c1_125, %c1_126, %c0_127] : memref<18x18x8xf32, #tpu.memory_space<vmem>>, vector<16x16x8xf32>
    %112 = vector.shape_cast %111 : vector<16x16x8xf32> to vector<256x8xf32>
    %c1_128 = arith.constant 1 : index
    %c1_129 = arith.constant 1 : index
    %c0_130 = arith.constant 0 : index
    %c0_131 = arith.constant 0 : index
    %113 = vector.load %arg4[%c1_128, %c1_129, %c0_130, %c0_131] : memref<3x3x8x8xf32, #tpu.memory_space<vmem>>, vector<1x1x8x8xf32>
    %114 = vector.shape_cast %113 : vector<1x1x8x8xf32> to vector<8x8xf32>
    %cst_132 = arith.constant dense<0.000000e+00> : vector<256x8xf32>
    %115 = tpu.matmul %112, %114, %cst_132 {dimension_numbers = #tpu.dot_dimension_numbers<[1], [0], [0], [1], [0, 0, 1, 1], [], []>} : vector<256x8xf32>, vector<8x8xf32>, vector<256x8xf32> -> vector<256x8xf32>
    %116 = arith.addf %110, %115 : vector<256x8xf32>
    %c1_133 = arith.constant 1 : index
    %c2_134 = arith.constant 2 : index
    %c0_135 = arith.constant 0 : index
    %117 = vector.load %arg7[%c1_133, %c2_134, %c0_135] : memref<18x18x8xf32, #tpu.memory_space<vmem>>, vector<16x16x8xf32>
    %118 = vector.shape_cast %117 : vector<16x16x8xf32> to vector<256x8xf32>
    %c1_136 = arith.constant 1 : index
    %c2_137 = arith.constant 2 : index
    %c0_138 = arith.constant 0 : index
    %c0_139 = arith.constant 0 : index
    %119 = vector.load %arg4[%c1_136, %c2_137, %c0_138, %c0_139] : memref<3x3x8x8xf32, #tpu.memory_space<vmem>>, vector<1x1x8x8xf32>
    %120 = vector.shape_cast %119 : vector<1x1x8x8xf32> to vector<8x8xf32>
    %cst_140 = arith.constant dense<0.000000e+00> : vector<256x8xf32>
    %121 = tpu.matmul %118, %120, %cst_140 {dimension_numbers = #tpu.dot_dimension_numbers<[1], [0], [0], [1], [0, 0, 1, 1], [], []>} : vector<256x8xf32>, vector<8x8xf32>, vector<256x8xf32> -> vector<256x8xf32>
    %122 = arith.addf %116, %121 : vector<256x8xf32>
    %c2_141 = arith.constant 2 : index
    %c0_142 = arith.constant 0 : index
    %c0_143 = arith.constant 0 : index
    %123 = vector.load %arg7[%c2_141, %c0_142, %c0_143] : memref<18x18x8xf32, #tpu.memory_space<vmem>>, vector<16x16x8xf32>
    %124 = vector.shape_cast %123 : vector<16x16x8xf32> to vector<256x8xf32>
    %c2_144 = arith.constant 2 : index
    %c0_145 = arith.constant 0 : index
    %c0_146 = arith.constant 0 : index
    %c0_147 = arith.constant 0 : index
    %125 = vector.load %arg4[%c2_144, %c0_145, %c0_146, %c0_147] : memref<3x3x8x8xf32, #tpu.memory_space<vmem>>, vector<1x1x8x8xf32>
    %126 = vector.shape_cast %125 : vector<1x1x8x8xf32> to vector<8x8xf32>
    %cst_148 = arith.constant dense<0.000000e+00> : vector<256x8xf32>
    %127 = tpu.matmul %124, %126, %cst_148 {dimension_numbers = #tpu.dot_dimension_numbers<[1], [0], [0], [1], [0, 0, 1, 1], [], []>} : vector<256x8xf32>, vector<8x8xf32>, vector<256x8xf32> -> vector<256x8xf32>
    %128 = arith.addf %122, %127 : vector<256x8xf32>
    %c2_149 = arith.constant 2 : index
    %c1_150 = arith.constant 1 : index
    %c0_151 = arith.constant 0 : index
    %129 = vector.load %arg7[%c2_149, %c1_150, %c0_151] : memref<18x18x8xf32, #tpu.memory_space<vmem>>, vector<16x16x8xf32>
    %130 = vector.shape_cast %129 : vector<16x16x8xf32> to vector<256x8xf32>
    %c2_152 = arith.constant 2 : index
    %c1_153 = arith.constant 1 : index
    %c0_154 = arith.constant 0 : index
    %c0_155 = arith.constant 0 : index
    %131 = vector.load %arg4[%c2_152, %c1_153, %c0_154, %c0_155] : memref<3x3x8x8xf32, #tpu.memory_space<vmem>>, vector<1x1x8x8xf32>
    %132 = vector.shape_cast %131 : vector<1x1x8x8xf32> to vector<8x8xf32>
    %cst_156 = arith.constant dense<0.000000e+00> : vector<256x8xf32>
    %133 = tpu.matmul %130, %132, %cst_156 {dimension_numbers = #tpu.dot_dimension_numbers<[1], [0], [0], [1], [0, 0, 1, 1], [], []>} : vector<256x8xf32>, vector<8x8xf32>, vector<256x8xf32> -> vector<256x8xf32>
    %134 = arith.addf %128, %133 : vector<256x8xf32>
    %c2_157 = arith.constant 2 : index
    %c2_158 = arith.constant 2 : index
    %c0_159 = arith.constant 0 : index
    %135 = vector.load %arg7[%c2_157, %c2_158, %c0_159] : memref<18x18x8xf32, #tpu.memory_space<vmem>>, vector<16x16x8xf32>
    %136 = vector.shape_cast %135 : vector<16x16x8xf32> to vector<256x8xf32>
    %c2_160 = arith.constant 2 : index
    %c2_161 = arith.constant 2 : index
    %c0_162 = arith.constant 0 : index
    %c0_163 = arith.constant 0 : index
    %137 = vector.load %arg4[%c2_160, %c2_161, %c0_162, %c0_163] : memref<3x3x8x8xf32, #tpu.memory_space<vmem>>, vector<1x1x8x8xf32>
    %138 = vector.shape_cast %137 : vector<1x1x8x8xf32> to vector<8x8xf32>
    %cst_164 = arith.constant dense<0.000000e+00> : vector<256x8xf32>
    %139 = tpu.matmul %136, %138, %cst_164 {dimension_numbers = #tpu.dot_dimension_numbers<[1], [0], [0], [1], [0, 0, 1, 1], [], []>} : vector<256x8xf32>, vector<8x8xf32>, vector<256x8xf32> -> vector<256x8xf32>
    %140 = arith.addf %134, %139 : vector<256x8xf32>
    %c0_165 = arith.constant 0 : index
    %c0_166 = arith.constant 0 : index
    %141 = vector.load %arg5[%c0_165, %c0_166] : memref<1x8xf32, #tpu.memory_space<vmem>>, vector<1x8xf32>
    %142 = vector.broadcast %141 : vector<1x8xf32> to vector<256x8xf32>
    %143 = arith.addf %140, %142 : vector<256x8xf32>
    %144 = arith.mulf %143, %143 : vector<256x8xf32>
    %cst_167 = arith.constant dense<0.000000e+00> : vector<256xf32>
    %145 = vector.multi_reduction <add>, %144, %cst_167 [1] : vector<256x8xf32> to vector<256xf32>
    %146 = vector.shape_cast %145 : vector<256xf32> to vector<256x1xf32>
    %cst_168 = arith.constant 8.000000e+00 : f32
    %147 = vector.broadcast %cst_168 : f32 to vector<256x1xf32>
    %148 = arith.divf %146, %147 : vector<256x1xf32>
    %cst_169 = arith.constant 9.99999993E-9 : f32
    %149 = vector.broadcast %cst_169 : f32 to vector<256x1xf32>
    %150 = arith.addf %148, %149 : vector<256x1xf32>
    %151 = math.rsqrt %150 : vector<256x1xf32>
    %152 = vector.broadcast %151 : vector<256x1xf32> to vector<256x8xf32>
    %153 = arith.mulf %143, %152 : vector<256x8xf32>
    %cst_170 = arith.constant 0.000000e+00 : f32
    %154 = vector.broadcast %cst_170 : f32 to vector<256x8xf32>
    %155 = arith.cmpf oge, %153, %154 : vector<256x8xf32>
    %cst_171 = arith.constant 2.000000e-01 : f32
    %156 = vector.broadcast %cst_171 : f32 to vector<256x8xf32>
    %157 = arith.mulf %156, %153 : vector<256x8xf32>
    %158 = arith.select %155, %153, %157 : vector<256x8xi1>, vector<256x8xf32>
    %c0_172 = arith.constant 0 : index
    %c0_173 = arith.constant 0 : index
    %c0_174 = arith.constant 0 : index
    %159 = vector.load %arg6[%c0_172, %c0_173, %c0_174] : memref<1x256x8xf32, #tpu.memory_space<vmem>>, vector<1x256x8xf32>
    %160 = vector.shape_cast %159 : vector<1x256x8xf32> to vector<256x8xf32>
    %161 = vector.shape_cast %158 : vector<256x8xf32> to vector<1x256x8xf32>
    tpu.vector_store %arg6[%c0_172, %c0_173, %c0_174], %161 {strides = array<i32>} : memref<1x256x8xf32, #tpu.memory_space<vmem>>, vector<1x256x8xf32>,
    return
  }
  func.func @transform_0(%arg0: i32) -> (i32, i32, i32, i32) {
    %c0_i32 = arith.constant 0 : i32
    %c0_i32_0 = arith.constant 0 : i32
    %c0_i32_1 = arith.constant 0 : i32
    %c0_i32_2 = arith.constant 0 : i32
    return %arg0, %c0_i32, %c0_i32_0, %c0_i32_1 : i32, i32, i32, i32
  }
  func.func @transform_1(%arg0: i32) -> (i32, i32, i32, i32) {
    %c0_i32 = arith.constant 0 : i32
    %c0_i32_0 = arith.constant 0 : i32
    %c0_i32_1 = arith.constant 0 : i32
    %c0_i32_2 = arith.constant 0 : i32
    %c0_i32_3 = arith.constant 0 : i32
    return %c0_i32, %c0_i32_0, %c0_i32_1, %c0_i32_2 : i32, i32, i32, i32
  }
  func.func @transform_2(%arg0: i32) -> (i32, i32) {
    %c0_i32 = arith.constant 0 : i32
    %c0_i32_0 = arith.constant 0 : i32
    %c0_i32_1 = arith.constant 0 : i32
    return %c0_i32, %c0_i32_0 : i32, i32
  }
  func.func @transform_3(%arg0: i32) -> (i32, i32, i32, i32) {
    %c0_i32 = arith.constant 0 : i32
    %c0_i32_0 = arith.constant 0 : i32
    %c0_i32_1 = arith.constant 0 : i32
    %c0_i32_2 = arith.constant 0 : i32
    %c0_i32_3 = arith.constant 0 : i32
    return %c0_i32, %c0_i32_0, %c0_i32_1, %c0_i32_2 : i32, i32, i32, i32
  }
  func.func @transform_4(%arg0: i32) -> (i32, i32) {
    %c0_i32 = arith.constant 0 : i32
    %c0_i32_0 = arith.constant 0 : i32
    %c0_i32_1 = arith.constant 0 : i32
    return %c0_i32, %c0_i32_0 : i32, i32
  }
  func.func @transform_5(%arg0: i32) -> (i32, i32, i32) {
    %c0_i32 = arith.constant 0 : i32
    %c0_i32_0 = arith.constant 0 : i32
    %c0_i32_1 = arith.constant 0 : i32
    return %arg0, %c0_i32, %c0_i32_0 : i32, i32, i32
  }
}

</mosaic_0001>

<bundles_post_ra>
// kernel: tpu_custom_call.1
= control target key start
LH: loop header
LB: loop body
LE: loop exit
PB: predicated region body
PF: predicated region fallthrough
CT: control target
= control target key end

     0   :  { %s11041_s18 = smov 0   ;;  %s13435_s0 = inlined_call_operand.vmem [shape: f32[2,18,18,4], index: 0, kind: input, shape index: {}]   ;;  %s13436_s1 = inlined_call_operand.vmem [shape: f32[3,3,4,8], index: 1, kind: input, shape index: {}]   ;;  %s13437_s2 = inlined_call_operand.vmem [shape: f32[1,8], index: 2, kind: input, shape index: {}]   ;;  %s13438_s3 = inlined_call_operand.vmem [shape: f32[3,3,8,8], index: 3, kind: input, shape index: {}]   ;;  %s13439_s4 = inlined_call_operand.vmem [shape: f32[1,8], index: 4, kind: input, shape index: {}]   ;;  %s13440_s5 = inlined_call_operand.vmem [shape: f32[2,256,8], index: 5, kind: output, shape index: {}]  }
   0x1 LB: > { %s8052_s19 = sadd.s32 4294967295, %s11008_s18   ;;  %p8056_p0 = scmp.ge.s32.totalorder %s11008_s18, 1  ;;  %s11008_s18 = sphi %s11041_s18, %s15_s18  }
   0x2   : > { %p187_p1 = scmp.lt.s32.totalorder %s11008_s18, 3 }
   0x4   : > { %p188_p2 = pnand %p8056_p0, %p187_p1 }
   0x6   : > { %191 = sbr.rel (%p188_p2) target bundleno = 1874 (0x752), region = 40 }
   0xd   : > { %v8060_v0 = vld [vmem:[%s13436_s1 + $0x4] sm:$0xf]  ;;  %vm389_vm0 = vcmask 1043456   ;;  %p215_p3 = scmp.lt.s32.totalorder %s8052_s19, 1  ;;  %v257_v1 = vld [vmem:[%s13436_s1] sm:$0xf] }
   0xe   : > { %9452 = vmatprep.subr.msk.mxu0 %vm389_vm0, %v8060_v0  ;;  %vm292_vm1 = vcmask 31744   ;;  %v11075_v5 = vld [vmem:[%s13436_s1 + $0x8] sm:$0xf]  ;;  %v11237_v38 = vld [vmem:[%s13436_s1 + $0xc] sm:$0xf]  ;;  %vm3745_vm2 = vcmask 64512  }
   0xf   : > { %9453 = vmatpush3.msk.msra.mxu0 %vm389_vm0, %v8060_v0  ;;  %s13727_s19 = smov (!%p215_p3, %s8052_s19), 1  ;;  %vm4069_vm3 = vcmask 58368  }
  0x10   : > { %9502 = vmatprep.subr.msk.mxu0 %vm389_vm0, %v257_v1  ;;  %s10864_s24 = smul.u32 432, %s13727_s19  ;;  %s8857_s16 = sshll.u32 %s13727_s19, 8 }
  0x11   : > { %s13336_s21 = scalar_lea.vmem %s13440_s5, %s8857_s16 }
  0x12   : > { %s11064_s27 = scalar_lea.vmem %s13435_s0, %s10864_s24 }
  0x13   : > { %v258_v2 = vld [vmem:[%s11064_s27 + $0x1] sm:$0xff]  ;;  %v259_v3 = vld [vmem:[%s11064_s27 + $0x9] sm:$0xff]  ;;  %v11069_v4 = vld [vmem:[%s11064_s27 + $0x19] sm:$0xff] }
  0x14   : > { %9454 = vmatprep.mubr.msk.f32.mxu0 %vm292_vm1, %v258_v2  ;;  %v11082_v6 = vld [vmem:[%s11064_s27 + $0x21] sm:$0xff]  ;;  %v11085_v7 = vld [vmem:[%s11064_s27 + $0x31] sm:$0xff]  ;;  %v11094_v8 = vld [vmem:[%s11064_s27 + $0x39] sm:$0xff] }
  0x15   : > { %9455 = vmatmul.mubr.msk.f32.vlgmr.msra.gmra.mrb[0].mxu0 %vm292_vm1, %v259_v3  ;;  %v11097_v9 = vld [vmem:[%s11064_s27 + $0x49] sm:$0xff]  ;;  %v11104_v10 = vld [vmem:[%s11064_s27 + $0x51] sm:$0xff]  ;;  %v11107_v11 = vld [vmem:[%s11064_s27 + $0x61] sm:$0xff] }
  0x16   : > { %9503 = vmatpush3.msk.msra.mxu0 %vm389_vm0, %v257_v1  ;;  %9457 = vmatprep.mubr.msk.f32.mxu0 %vm292_vm1, %v11069_v4  ;;  %v11114_v12 = vld [vmem:[%s11064_s27 + $0x69] sm:$0xff]  ;;  %v11117_v13 = vld [vmem:[%s11064_s27 + $0x79] sm:$0xff]  ;;  %v11124_v14 = vld [vmem:[%s11064_s27 + $0x81] sm:$0xff] }
  0x17   : > { %9552 = vmatprep.subr.msk.mxu0 %vm389_vm0, %v11075_v5  ;;  %v11127_v15 = vld [vmem:[%s11064_s27 + $0x91] sm:$0xff]  ;;  %v11134_v16 = vld [vmem:[%s11064_s27 + $0x99] sm:$0xff]  ;;  %v11137_v17 = vld [vmem:[%s11064_s27 + $0xa9] sm:$0xff] }
  0x18   : > { %v11144_v18 = vld [vmem:[%s11064_s27 + $0xb1] sm:$0xff]  ;;  %v11147_v19 = vld [vmem:[%s11064_s27 + $0xc1] sm:$0xff]  ;;  %v11154_v20 = vld [vmem:[%s11064_s27 + $0xc9] sm:$0xff] }
  0x19   : > { %9458 = vmatmul.mubr.msk.f32.gmra.mrb[2].mxu0 %vm292_vm1, %v11082_v6  ;;  %v11157_v21 = vld [vmem:[%s11064_s27 + $0xd9] sm:$0xff]  ;;  %v11164_v22 = vld [vmem:[%s11064_s27 + $0xe1] sm:$0xff]  ;;  %v11167_v23 = vld [vmem:[%s11064_s27 + $0xf1] sm:$0xff] }
  0x1a   : > { %9460 = vmatprep.mubr.msk.f32.mxu0 %vm292_vm1, %v11085_v7  ;;  %v11174_v24 = vld [vmem:[%s11064_s27 + $0xf9] sm:$0xff]  ;;  %v11177_v25 = vld [vmem:[%s11064_s27 + $0x109] sm:$0xff]  ;;  %v11184_v26 = vld [vmem:[%s11064_s27 + $0x111] sm:$0xff] }
  0x1b   : > { %v11187_v27 = vld [vmem:[%s11064_s27 + $0x121] sm:$0xff]  ;;  %v11194_v28 = vld [vmem:[%s11064_s27 + $0x129] sm:$0xff]  ;;  %v11197_v29 = vld [vmem:[%s11064_s27 + $0x139] sm:$0xff] }
  0x1c   : > { %13558 = vst [vmem:[#allocation3_spill] sm:$0xff] %v11187_v27  ;;  %13559 = vst [vmem:[#allocation4_spill] sm:$0xff] %v11194_v28  ;;  %v11204_v30 = vld [vmem:[%s11064_s27 + $0x141] sm:$0xff]  ;;  %v11207_v31 = vld [vmem:[%s11064_s27 + $0x151] sm:$0xff] }
  0x1d   : > { %9461 = vmatmul.mubr.msk.f32.gmra.mrb[4].mxu0 %vm292_vm1, %v11094_v8  ;;  %13560 = vst [vmem:[#allocation5_spill] sm:$0xff] %v11197_v29  ;;  %13561 = vst [vmem:[#allocation6_spill] sm:$0xff] %v11204_v30  ;;  %v11214_v32 = vld [vmem:[%s11064_s27 + $0x159] sm:$0xff]  ;;  %v11217_v33 = vld [vmem:[%s11064_s27 + $0x169] sm:$0xff] }
  0x1e   : > { %9463 = vmatprep.mubr.msk.f32.mxu0 %vm292_vm1, %v11097_v9  ;;  %13562 = vst [vmem:[#allocation7_spill] sm:$0xff] %v11207_v31  ;;  %13563 = vst [vmem:[#allocation8_spill] sm:$0xff] %v11214_v32  ;;  %v11224_v34 = vld [vmem:[%s11064_s27 + $0x171] sm:$0xff]  ;;  %v225_v35 = vld [vmem:[%s11064_s27] sm:$0xff] }
  0x1f   : > { %13564 = vst [vmem:[#allocation9_spill] sm:$0xff] %v11217_v33  ;;  %13565 = vst [vmem:[#allocation10_spill] sm:$0xff] %v11224_v34  ;;  %v226_v36 = vld [vmem:[%s11064_s27 + $0x8] sm:$0xff]  ;;  %v11232_v37 = vld [vmem:[%s11064_s27 + $0x18] sm:$0xff] }
  0x20   : > { %v11245_v39 = vld [vmem:[%s11064_s27 + $0x20] sm:$0xff]  ;;  %v11248_v40 = vld [vmem:[%s11064_s27 + $0x30] sm:$0xff]  ;;  %v11257_v41 = vld [vmem:[%s11064_s27 + $0x38] sm:$0xff] }
  0x21   : > { %9464 = vmatmul.mubr.msk.f32.gmra.mrb[6].mxu0 %vm292_vm1, %v11104_v10  ;;  %v11260_v42 = vld [vmem:[%s11064_s27 + $0x48] sm:$0xff]  ;;  %v11267_v43 = vld [vmem:[%s11064_s27 + $0x50] sm:$0xff]  ;;  %v11270_v44 = vld [vmem:[%s11064_s27 + $0x60] sm:$0xff] }
  0x22   : > { %9466 = vmatprep.mubr.msk.f32.mxu0 %vm292_vm1, %v11107_v11  ;;  %v11277_v45 = vld [vmem:[%s11064_s27 + $0x68] sm:$0xff]  ;;  %v11280_v46 = vld [vmem:[%s11064_s27 + $0x78] sm:$0xff]  ;;  %v11287_v47 = vld [vmem:[%s11064_s27 + $0x80] sm:$0xff] }
  0x23   : > { %v11290_v48 = vld [vmem:[%s11064_s27 + $0x90] sm:$0xff]  ;;  %v11297_v49 = vld [vmem:[%s11064_s27 + $0x98] sm:$0xff]  ;;  %v11300_v50 = vld [vmem:[%s11064_s27 + $0xa8] sm:$0xff] }
  0x24   : > { %v11307_v51 = vld [vmem:[%s11064_s27 + $0xb0] sm:$0xff]  ;;  %v11310_v52 = vld [vmem:[%s11064_s27 + $0xc0] sm:$0xff]  ;;  %v11317_v53 = vld [vmem:[%s11064_s27 + $0xc8] sm:$0xff] }
  0x25   : > { %9467 = vmatmul.mubr.msk.f32.gmra.mrb[8].mxu0 %vm292_vm1, %v11114_v12  ;;  %v11320_v54 = vld [vmem:[%s11064_s27 + $0xd8] sm:$0xff]  ;;  %v11327_v55 = vld [vmem:[%s11064_s27 + $0xe0] sm:$0xff]  ;;  %v11330_v56 = vld [vmem:[%s11064_s27 + $0xf0] sm:$0xff] }
  0x26   : > { %9469 = vmatprep.mubr.msk.f32.mxu0 %vm292_vm1, %v11117_v13  ;;  %v11337_v57 = vld [vmem:[%s11064_s27 + $0xf8] sm:$0xff]  ;;  %v11340_v58 = vld [vmem:[%s11064_s27 + $0x108] sm:$0xff]  ;;  %v11347_v59 = vld [vmem:[%s11064_s27 + $0x110] sm:$0xff] }
  0x27   : > { %v11350_v60 = vld [vmem:[%s11064_s27 + $0x120] sm:$0xff]  ;;  %v11357_v61 = vld [vmem:[%s11064_s27 + $0x128] sm:$0xff]  ;;  %v11360_v62 = vld [vmem:[%s11064_s27 + $0x138] sm:$0xff] }
  0x28   : > { %v11367_v63 = vld [vmem:[%s11064_s27 + $0x140] sm:$0xff]  ;;  %v11370_v0 = vld [vmem:[%s11064_s27 + $0x150] sm:$0xff]  ;;  %v11377_v1 = vld [vmem:[%s11064_s27 + $0x158] sm:$0xff] }
  0x29   : > { %9470 = vmatmul.mubr.msk.f32.gmra.mrb[10].mxu0 %vm292_vm1, %v11124_v14  ;;  %v11380_v2 = vld [vmem:[%s11064_s27 + $0x168] sm:$0xff]  ;;  %v11387_v3 = vld [vmem:[%s11064_s27 + $0x170] sm:$0xff] }
  0x2a   : > { %9472 = vmatprep.mubr.msk.f32.mxu0 %vm292_vm1, %v11127_v15 }
  0x2d   : > { %9473 = vmatmul.mubr.msk.f32.gmra.mrb[12].mxu0 %vm292_vm1, %v11134_v16 }
  0x2e   : > { %9475 = vmatprep.mubr.msk.f32.mxu0 %vm292_vm1, %v11137_v17 }
  0x31   : > { %9476 = vmatmul.mubr.msk.f32.gmra.mrb[14].mxu0 %vm292_vm1, %v11144_v18 }
  0x32   : > { %9478 = vmatprep.mubr.msk.f32.mxu0 %vm292_vm1, %v11147_v19 }
  0x35   : > { %9479 = vmatmul.mubr.msk.f32.gmra.mrb[16].mxu0 %vm292_vm1, %v11154_v20 }
  0x36   : > { %9481 = vmatprep.mubr.msk.f32.mxu0 %vm292_vm1, %v11157_v21 }
  0x39   : > { %9482 = vmatmul.mubr.msk.f32.gmra.mrb[18].mxu0 %vm292_vm1, %v11164_v22 }
  0x3a   : > { %9484 = vmatprep.mubr.msk.f32.mxu0 %vm292_vm1, %v11167_v23 }
  0x3d   : > { %9485 = vmatmul.mubr.msk.f32.gmra.mrb[20].mxu0 %vm292_vm1, %v11174_v24 }
  0x3e   : > { %9487 = vmatprep.mubr.msk.f32.mxu0 %vm292_vm1, %v11177_v25 }
  0x41   : > { %9488 = vmatmul.mubr.msk.f32.gmra.mrb[22].mxu0 %vm292_vm1, %v11184_v26 }
  0x42   : > { %9490 = vmatprep.mubr.msk.f32.mxu0 %vm292_vm1, %v11187_v27 }
  0x45   : > { %9491 = vmatmul.mubr.msk.f32.gmra.mrb[24].mxu0 %vm292_vm1, %v11194_v28 }
  0x46   : > { %9493 = vmatprep.mubr.msk.f32.mxu0 %vm292_vm1, %v11197_v29 }
  0x49   : > { %9494 = vmatmul.mubr.msk.f32.gmra.mrb[26].mxu0 %vm292_vm1, %v11204_v30 }
  0x4a   : > { %9496 = vmatprep.mubr.msk.f32.mxu0 %vm292_vm1, %v11207_v31 }
  0x4d   : > { %9497 = vmatmul.mubr.msk.f32.gmra.mrb[28].mxu0 %vm292_vm1, %v11214_v32  ;;  %v11433_v32 = vld [vmem:[%s11064_s27 + $0x62] sm:$0xff] }
  0x4e   : > { %9499 = vmatprep.mubr.msk.f32.mxu0 %vm292_vm1, %v11217_v33  ;;  %v11411_v33 = vld [vmem:[%s11064_s27 + $0x32] sm:$0xff]  ;;  %13572 = vst [vmem:[#allocation17_spill] sm:$0xff] %v11433_v32 }
  0x4f   : > { %13568 = vst [vmem:[#allocation13_spill] sm:$0xff] %v11411_v33 }
  0x51   : > { %9500 = vmatmul.mubr.msk.f32.gmra.mrb[30].mxu0 %vm292_vm1, %v11224_v34  ;;  %v11400_v34 = vld [vmem:[%s13436_s1 + $0x10] sm:$0xf] }
  0x52   : > { %9504 = vmatprep.mubr.msk.f32.mxu0 %vm292_vm1, %v225_v35  ;;  %v943_v35 = vld [vmem:[%s11064_s27 + $0xa] sm:$0xff] }
  0x55   : > { %9505 = vmatmul.mubr.msk.f32.vlgmr.msra.gmra.mrb[0].mxu0 %vm292_vm1, %v226_v36  ;;  %v11395_v36 = vld [vmem:[%s11064_s27 + $0x1a] sm:$0xff] }
  0x56   : > { %9553 = vmatpush3.msk.msra.mxu0 %vm389_vm0, %v11075_v5  ;;  %9507 = vmatprep.mubr.msk.f32.mxu0 %vm292_vm1, %v11232_v37  ;;  %v942_v5 = vld [vmem:[%s11064_s27 + $0x2] sm:$0xff]  ;;  %13566 = vst [vmem:[#allocation11_spill] sm:$0xff] %v11395_v36 }
  0x57   : > { %9602 = vmatprep.subr.msk.mxu0 %vm389_vm0, %v11237_v38 }
  0x59   : > { %9508 = vmatmul.mubr.msk.f32.gmra.mrb[2].mxu0 %vm292_vm1, %v11245_v39 }
  0x5a   : > { %9510 = vmatprep.mubr.msk.f32.mxu0 %vm292_vm1, %v11248_v40 }
  0x5d   : > { %9511 = vmatmul.mubr.msk.f32.gmra.mrb[4].mxu0 %vm292_vm1, %v11257_v41 }
  0x5e   : > { %9513 = vmatprep.mubr.msk.f32.mxu0 %vm292_vm1, %v11260_v42 }
  0x61   : > { %9514 = vmatmul.mubr.msk.f32.gmra.mrb[6].mxu0 %vm292_vm1, %v11267_v43 }
  0x62   : > { %9516 = vmatprep.mubr.msk.f32.mxu0 %vm292_vm1, %v11270_v44 }
  0x65   : > { %9517 = vmatmul.mubr.msk.f32.gmra.mrb[8].mxu0 %vm292_vm1, %v11277_v45 }
  0x66   : > { %9519 = vmatprep.mubr.msk.f32.mxu0 %vm292_vm1, %v11280_v46 }
  0x69   : > { %9520 = vmatmul.mubr.msk.f32.gmra.mrb[10].mxu0 %vm292_vm1, %v11287_v47 }
  0x6a   : > { %9522 = vmatprep.mubr.msk.f32.mxu0 %vm292_vm1, %v11290_v48 }
  0x6d   : > { %9523 = vmatmul.mubr.msk.f32.gmra.mrb[12].mxu0 %vm292_vm1, %v11297_v49 }
  0x6e   : > { %9525 = vmatprep.mubr.msk.f32.mxu0 %vm292_vm1, %v11300_v50 }
  0x71   : > { %9526 = vmatmul.mubr.msk.f32.gmra.mrb[14].mxu0 %vm292_vm1, %v11307_v51 }
  0x72   : > { %9528 = vmatprep.mubr.msk.f32.mxu0 %vm292_vm1, %v11310_v52 }
  0x75   : > { %9529 = vmatmul.mubr.msk.f32.gmra.mrb[16].mxu0 %vm292_vm1, %v11317_v53 }
  0x76   : > { %9531 = vmatprep.mubr.msk.f32.mxu0 %vm292_vm1, %v11320_v54 }
  0x79   : > { %9532 = vmatmul.mubr.msk.f32.gmra.mrb[18].mxu0 %vm292_vm1, %v11327_v55 }
  0x7a   : > { %9534 = vmatprep.mubr.msk.f32.mxu0 %vm292_vm1, %v11330_v56 }
  0x7d   : > { %9535 = vmatmul.mubr.msk.f32.gmra.mrb[20].mxu0 %vm292_vm1, %v11337_v57 }
  0x7e   : > { %9537 = vmatprep.mubr.msk.f32.mxu0 %vm292_vm1, %v11340_v58 }
  0x81   : > { %9538 = vmatmul.mubr.msk.f32.gmra.mrb[22].mxu0 %vm292_vm1, %v11347_v59 }
  0x82   : > { %9540 = vmatprep.mubr.msk.f32.mxu0 %vm292_vm1, %v11350_v60 }
  0x85   : > { %9541 = vmatmul.mubr.msk.f32.gmra.mrb[24].mxu0 %vm292_vm1, %v11357_v61 }
  0x86   : > { %9543 = vmatprep.mubr.msk.f32.mxu0 %vm292_vm1, %v11360_v62 }
  0x89   : > { %9544 = vmatmul.mubr.msk.f32.gmra.mrb[26].mxu0 %vm292_vm1, %v11367_v63 }
  0x8a   : > { %9546 = vmatprep.mubr.msk.f32.mxu0 %vm292_vm1, %v11370_v0 }
  0x8d   : > { %9547 = vmatmul.mubr.msk.f32.gmra.mrb[28].mxu0 %vm292_vm1, %v11377_v1 }
  0x8e   : > { %9549 = vmatprep.mubr.msk.f32.mxu0 %vm292_vm1, %v11380_v2 }
  0x91   : > { %9550 = vmatmul.mubr.msk.f32.gmra.mrb[30].mxu0 %vm292_vm1, %v11387_v3 }
  0x92   : > { %9554 = vmatprep.mubr.msk.f32.mxu0 %vm292_vm1, %v942_v5  ;;  %v11408_v5 = vld [vmem:[%s11064_s27 + $0x22] sm:$0xff] }
  0x93   : > { %13567 = vst [vmem:[#allocation12_spill] sm:$0xff] %v11408_v5 }
  0x95   : > { %9555 = vmatmul.mubr.msk.f32.vlgmr.msra.gmra.mrb[0].mxu0 %vm292_vm1, %v943_v35  ;;  %v11423_v35 = vld [vmem:[%s11064_s27 + $0x4a] sm:$0xff] }
  0x96   : > { %9603 = vmatpush3.msk.msra.mxu0 %vm389_vm0, %v11237_v38  ;;  %9557 = vmatprep.mubr.msk.f32.mxu0 %vm292_vm1, %v11395_v36  ;;  %v11420_v38 = vld [vmem:[%s11064_s27 + $0x3a] sm:$0xff]  ;;  %13570 = vst [vmem:[#allocation15_spill] sm:$0xff] %v11423_v35  ;;  %v11430_v36 = vld [vmem:[%s11064_s27 + $0x52] sm:$0xff] }
  0x97   : > { %9652 = vmatprep.subr.msk.mxu0 %vm389_vm0, %v11400_v34  ;;  %13569 = vst [vmem:[#allocation14_spill] sm:$0xff] %v11420_v38  ;;  %13571 = vst [vmem:[#allocation16_spill] sm:$0xff] %v11430_v36 }
  0x99   : > { %9558 = vmatmul.mubr.msk.f32.gmra.mrb[2].mxu0 %vm292_vm1, %v11408_v5  ;;  %v11443_v5 = vld [vmem:[%s11064_s27 + $0x7a] sm:$0xff] }
  0x9a   : > { %9560 = vmatprep.mubr.msk.f32.mxu0 %vm292_vm1, %v11411_v33  ;;  %v11440_v33 = vld [vmem:[%s11064_s27 + $0x6a] sm:$0xff]  ;;  %13574 = vst [vmem:[#allocation19_spill] sm:$0xff] %v11443_v5 }
  0x9b   : > { %13573 = vst [vmem:[#allocation18_spill] sm:$0xff] %v11440_v33 }
  0x9d   : > { %9561 = vmatmul.mubr.msk.f32.gmra.mrb[4].mxu0 %vm292_vm1, %v11420_v38  ;;  %v11453_v38 = vld [vmem:[%s11064_s27 + $0x92] sm:$0xff] }
  0x9e   : > { %9563 = vmatprep.mubr.msk.f32.mxu0 %vm292_vm1, %v11423_v35  ;;  %v11450_v35 = vld [vmem:[%s11064_s27 + $0x82] sm:$0xff]  ;;  %13576 = vst [vmem:[#allocation21_spill] sm:$0xff] %v11453_v38 }
  0x9f   : > { %13575 = vst [vmem:[#allocation20_spill] sm:$0xff] %v11450_v35 }
  0xa1   : > { %9564 = vmatmul.mubr.msk.f32.gmra.mrb[6].mxu0 %vm292_vm1, %v11430_v36  ;;  %v11463_v36 = vld [vmem:[%s11064_s27 + $0xaa] sm:$0xff] }
  0xa2   : > { %9566 = vmatprep.mubr.msk.f32.mxu0 %vm292_vm1, %v11433_v32  ;;  %v11460_v32 = vld [vmem:[%s11064_s27 + $0x9a] sm:$0xff]  ;;  %13578 = vst [vmem:[#allocation23_spill] sm:$0xff] %v11463_v36 }
  0xa3   : > { %13577 = vst [vmem:[#allocation22_spill] sm:$0xff] %v11460_v32 }
  0xa5   : > { %9567 = vmatmul.mubr.msk.f32.gmra.mrb[8].mxu0 %vm292_vm1, %v11440_v33  ;;  %v11473_v33 = vld [vmem:[%s11064_s27 + $0xc2] sm:$0xff] }
  0xa6   : > { %9569 = vmatprep.mubr.msk.f32.mxu0 %vm292_vm1, %v11443_v5  ;;  %v11470_v5 = vld [vmem:[%s11064_s27 + $0xb2] sm:$0xff]  ;;  %13580 = vst [vmem:[#allocation25_spill] sm:$0xff] %v11473_v33 }
  0xa7   : > { %13579 = vst [vmem:[#allocation24_spill] sm:$0xff] %v11470_v5 }
  0xa9   : > { %9570 = vmatmul.mubr.msk.f32.gmra.mrb[10].mxu0 %vm292_vm1, %v11450_v35  ;;  %v11483_v35 = vld [vmem:[%s11064_s27 + $0xda] sm:$0xff] }
  0xaa   : > { %9572 = vmatprep.mubr.msk.f32.mxu0 %vm292_vm1, %v11453_v38  ;;  %v11480_v38 = vld [vmem:[%s11064_s27 + $0xca] sm:$0xff]  ;;  %13582 = vst [vmem:[#allocation27_spill] sm:$0xff] %v11483_v35 }
  0xab   : > { %13581 = vst [vmem:[#allocation26_spill] sm:$0xff] %v11480_v38 }
  0xad   : > { %9573 = vmatmul.mubr.msk.f32.gmra.mrb[12].mxu0 %vm292_vm1, %v11460_v32  ;;  %v11493_v32 = vld [vmem:[%s11064_s27 + $0xf2] sm:$0xff] }
  0xae   : > { %9575 = vmatprep.mubr.msk.f32.mxu0 %vm292_vm1, %v11463_v36  ;;  %v11490_v36 = vld [vmem:[%s11064_s27 + $0xe2] sm:$0xff]  ;;  %13584 = vst [vmem:[#allocation29_spill] sm:$0xff] %v11493_v32 }
  0xaf   : > { %13583 = vst [vmem:[#allocation28_spill] sm:$0xff] %v11490_v36 }
  0xb1   : > { %9576 = vmatmul.mubr.msk.f32.gmra.mrb[14].mxu0 %vm292_vm1, %v11470_v5  ;;  %v11503_v5 = vld [vmem:[%s11064_s27 + $0x10a] sm:$0xff] }
  0xb2   : > { %9578 = vmatprep.mubr.msk.f32.mxu0 %vm292_vm1, %v11473_v33  ;;  %v11500_v33 = vld [vmem:[%s11064_s27 + $0xfa] sm:$0xff]  ;;  %13586 = vst [vmem:[#allocation31_spill] sm:$0xff] %v11503_v5 }
  0xb3   : > { %13585 = vst [vmem:[#allocation30_spill] sm:$0xff] %v11500_v33 }
  0xb5   : > { %9579 = vmatmul.mubr.msk.f32.gmra.mrb[16].mxu0 %vm292_vm1, %v11480_v38  ;;  %v11513_v38 = vld [vmem:[%s11064_s27 + $0x122] sm:$0xff] }
  0xb6   : > { %9581 = vmatprep.mubr.msk.f32.mxu0 %vm292_vm1, %v11483_v35  ;;  %v11510_v35 = vld [vmem:[%s11064_s27 + $0x112] sm:$0xff]  ;;  %13588 = vst [vmem:[#allocation33_spill] sm:$0xff] %v11513_v38 }
  0xb7   : > { %13587 = vst [vmem:[#allocation32_spill] sm:$0xff] %v11510_v35 }
  0xb9   : > { %9582 = vmatmul.mubr.msk.f32.gmra.mrb[18].mxu0 %vm292_vm1, %v11490_v36  ;;  %v11523_v36 = vld [vmem:[%s11064_s27 + $0x13a] sm:$0xff] }
  0xba   : > { %9584 = vmatprep.mubr.msk.f32.mxu0 %vm292_vm1, %v11493_v32  ;;  %v11520_v32 = vld [vmem:[%s11064_s27 + $0x12a] sm:$0xff]  ;;  %13589 = vst [vmem:[#allocation34_spill] sm:$0xff] %v11523_v36 }
  0xbd   : > { %9585 = vmatmul.mubr.msk.f32.gmra.mrb[20].mxu0 %vm292_vm1, %v11500_v33  ;;  %v11533_v33 = vld [vmem:[%s11064_s27 + $0x152] sm:$0xff] }
  0xbe   : > { %9587 = vmatprep.mubr.msk.f32.mxu0 %vm292_vm1, %v11503_v5  ;;  %v11530_v5 = vld [vmem:[%s11064_s27 + $0x142] sm:$0xff]  ;;  %13590 = vst [vmem:[#allocation35_spill] sm:$0xff] %v11533_v33 }
  0xc1   : > { %9588 = vmatmul.mubr.msk.f32.gmra.mrb[22].mxu0 %vm292_vm1, %v11510_v35  ;;  %v11543_v35 = vld [vmem:[%s11064_s27 + $0x16a] sm:$0xff] }
  0xc2   : > { %9590 = vmatprep.mubr.msk.f32.mxu0 %vm292_vm1, %v11513_v38  ;;  %v11540_v38 = vld [vmem:[%s11064_s27 + $0x15a] sm:$0xff]  ;;  %13591 = vst [vmem:[#allocation36_spill] sm:$0xff] %v11543_v35 }
  0xc5   : > { %9591 = vmatmul.mubr.msk.f32.gmra.mrb[24].mxu0 %vm292_vm1, %v11520_v32 }
  0xc6   : > { %9593 = vmatprep.mubr.msk.f32.mxu0 %vm292_vm1, %v11523_v36  ;;  %v11550_v36 = vld [vmem:[%s11064_s27 + $0x172] sm:$0xff] }
  0xc9   : > { %9594 = vmatmul.mubr.msk.f32.gmra.mrb[26].mxu0 %vm292_vm1, %v11530_v5 }
  0xca   : > { %9596 = vmatprep.mubr.msk.f32.mxu0 %vm292_vm1, %v11533_v33  ;;  %v8325_v33 = vld [vmem:[%s13436_s1 + $0x14] sm:$0xf] }
  0xcd   : > { %9597 = vmatmul.mubr.msk.f32.gmra.mrb[28].mxu0 %vm292_vm1, %v11540_v38 }
  0xce   : > { %9599 = vmatprep.mubr.msk.f32.mxu0 %vm292_vm1, %v11543_v35 }
  0xd1   : > { %9600 = vmatmul.mubr.msk.f32.gmra.mrb[30].mxu0 %vm292_vm1, %v11550_v36 }
  0xd2   : > { %9604 = vmatprep.mubr.msk.f32.mxu0 %vm292_vm1, %v11232_v37  ;;  %v11626_v37 = vld [vmem:[%s11064_s27 + $0x188] sm:$0xff] }
  0xd5   : > { %9605 = vmatmul.mubr.msk.f32.vlgmr.msra.gmra.mrb[0].mxu0 %vm292_vm1, %v11245_v39  ;;  %v8391_v39 = vld [vmem:[%s13436_s1 + $0x18] sm:$0xf] }
  0xd6   : > { %9653 = vmatpush3.msk.msra.mxu0 %vm389_vm0, %v11400_v34  ;;  %9607 = vmatprep.mubr.msk.f32.mxu0 %vm292_vm1, %v11248_v40  ;;  %v11619_v34 = vld [vmem:[%s11064_s27 + $0x180] sm:$0xff] }
  0xd7   : > { %9702 = vmatprep.subr.msk.mxu0 %vm389_vm0, %v8325_v33 }
  0xd9   : > { %9608 = vmatmul.mubr.msk.f32.gmra.mrb[2].mxu0 %vm292_vm1, %v11257_v41 }
  0xda   : > { %9610 = vmatprep.mubr.msk.f32.mxu0 %vm292_vm1, %v11260_v42 }
  0xdd   : > { %9611 = vmatmul.mubr.msk.f32.gmra.mrb[4].mxu0 %vm292_vm1, %v11267_v43 }
  0xde   : > { %9613 = vmatprep.mubr.msk.f32.mxu0 %vm292_vm1, %v11270_v44 }
  0xe1   : > { %9614 = vmatmul.mubr.msk.f32.gmra.mrb[6].mxu0 %vm292_vm1, %v11277_v45 }
  0xe2   : > { %9616 = vmatprep.mubr.msk.f32.mxu0 %vm292_vm1, %v11280_v46 }
  0xe5   : > { %9617 = vmatmul.mubr.msk.f32.gmra.mrb[8].mxu0 %vm292_vm1, %v11287_v47 }
  0xe6   : > { %9619 = vmatprep.mubr.msk.f32.mxu0 %vm292_vm1, %v11290_v48 }
  0xe9   : > { %9620 = vmatmul.mubr.msk.f32.gmra.mrb[10].mxu0 %vm292_vm1, %v11297_v49 }
  0xea   : > { %9622 = vmatprep.mubr.msk.f32.mxu0 %vm292_vm1, %v11300_v50 }
  0xed   : > { %9623 = vmatmul.mubr.msk.f32.gmra.mrb[12].mxu0 %vm292_vm1, %v11307_v51 }
  0xee   : > { %9625 = vmatprep.mubr.msk.f32.mxu0 %vm292_vm1, %v11310_v52 }
  0xf1   : > { %9626 = vmatmul.mubr.msk.f32.gmra.mrb[14].mxu0 %vm292_vm1, %v11317_v53 }
  0xf2   : > { %9628 = vmatprep.mubr.msk.f32.mxu0 %vm292_vm1, %v11320_v54 }
  0xf5   : > { %9629 = vmatmul.mubr.msk.f32.gmra.mrb[16].mxu0 %vm292_vm1, %v11327_v55 }
  0xf6   : > { %9631 = vmatprep.mubr.msk.f32.mxu0 %vm292_vm1, %v11330_v56 }
  0xf9   : > { %9632 = vmatmul.mubr.msk.f32.gmra.mrb[18].mxu0 %vm292_vm1, %v11337_v57 }
  0xfa   : > { %9634 = vmatprep.mubr.msk.f32.mxu0 %vm292_vm1, %v11340_v58 }
  0xfd   : > { %9635 = vmatmul.mubr.msk.f32.gmra.mrb[20].mxu0 %vm292_vm1, %v11347_v59 }
  0xfe   : > { %9637 = vmatprep.mubr.msk.f32.mxu0 %vm292_vm1, %v11350_v60 }
 0x101   : > { %9638 = vmatmul.mubr.msk.f32.gmra.mrb[22].mxu0 %vm292_vm1, %v11357_v61 }
 0x102   : > { %9640 = vmatprep.mubr.msk.f32.mxu0 %vm292_vm1, %v11360_v62 }
 0x105   : > { %9641 = vmatmul.mubr.msk.f32.gmra.mrb[24].mxu0 %vm292_vm1, %v11367_v63 }
 0x106   : > { %9643 = vmatprep.mubr.msk.f32.mxu0 %vm292_vm1, %v11370_v0 }
 0x109   : > { %9644 = vmatmul.mubr.msk.f32.gmra.mrb[26].mxu0 %vm292_vm1, %v11377_v1 }
 0x10a   : > { %9646 = vmatprep.mubr.msk.f32.mxu0 %vm292_vm1, %v11380_v2 }
 0x10d   : > { %9647 = vmatmul.mubr.msk.f32.gmra.mrb[28].mxu0 %vm292_vm1, %v11387_v3 }
 0x10e   : > { %9649 = vmatprep.mubr.msk.f32.mxu0 %vm292_vm1, %v11619_v34 }
 0x111   : > { %9650 = vmatmul.mubr.msk.f32.gmra.mrb[30].mxu0 %vm292_vm1, %v11626_v37 }
 0x112   : > { %9654 = vmatprep.mubr.msk.f32.mxu0 %vm292_vm1, %v11069_v4  ;;  %v13592_v4 = vld [vmem:[#allocation8_spill] sm:$0xff] }
 0x115   : > { %9655 = vmatmul.mubr.msk.f32.vlgmr.msra.gmra.mrb[0].mxu0 %vm292_vm1, %v11082_v6  ;;  %v13593_v6 = vld [vmem:[#allocation9_spill] sm:$0xff] }
 0x116   : > { %9703 = vmatpush3.msk.msra.mxu0 %vm389_vm0, %v8325_v33  ;;  %9657 = vmatprep.mubr.msk.f32.mxu0 %vm292_vm1, %v11085_v7  ;;  %v11694_v33 = vld [vmem:[%s11064_s27 + $0x181] sm:$0xff] }
 0x117   : > { %9752 = vmatprep.subr.msk.mxu0 %vm389_vm0, %v8391_v39  ;;  %13594 = vst [vmem:[#allocation37_spill] sm:$0xff] %v11694_v33 }
 0x119   : > { %9658 = vmatmul.mubr.msk.f32.gmra.mrb[2].mxu0 %vm292_vm1, %v11094_v8 }
 0x11a   : > { %9660 = vmatprep.mubr.msk.f32.mxu0 %vm292_vm1, %v11097_v9 }
 0x11d   : > { %9661 = vmatmul.mubr.msk.f32.gmra.mrb[4].mxu0 %vm292_vm1, %v11104_v10 }
 0x11e   : > { %9663 = vmatprep.mubr.msk.f32.mxu0 %vm292_vm1, %v11107_v11 }
 0x121   : > { %9664 = vmatmul.mubr.msk.f32.gmra.mrb[6].mxu0 %vm292_vm1, %v11114_v12 }
 0x122   : > { %9666 = vmatprep.mubr.msk.f32.mxu0 %vm292_vm1, %v11117_v13 }
 0x125   : > { %9667 = vmatmul.mubr.msk.f32.gmra.mrb[8].mxu0 %vm292_vm1, %v11124_v14 }
 0x126   : > { %9669 = vmatprep.mubr.msk.f32.mxu0 %vm292_vm1, %v11127_v15 }
 0x129   : > { %9670 = vmatmul.mubr.msk.f32.gmra.mrb[10].mxu0 %vm292_vm1, %v11134_v16 }
 0x12a   : > { %9672 = vmatprep.mubr.msk.f32.mxu0 %vm292_vm1, %v11137_v17 }
 0x12d   : > { %9673 = vmatmul.mubr.msk.f32.gmra.mrb[12].mxu0 %vm292_vm1, %v11144_v18 }
 0x12e   : > { %9675 = vmatprep.mubr.msk.f32.mxu0 %vm292_vm1, %v11147_v19 }
 0x131   : > { %9676 = vmatmul.mubr.msk.f32.gmra.mrb[14].mxu0 %vm292_vm1, %v11154_v20 }
 0x132   : > { %9678 = vmatprep.mubr.msk.f32.mxu0 %vm292_vm1, %v11157_v21 }
 0x135   : > { %9679 = vmatmul.mubr.msk.f32.gmra.mrb[16].mxu0 %vm292_vm1, %v11164_v22 }
 0x136   : > { %9681 = vmatprep.mubr.msk.f32.mxu0 %vm292_vm1, %v11167_v23 }
 0x139   : > { %9682 = vmatmul.mubr.msk.f32.gmra.mrb[18].mxu0 %vm292_vm1, %v11174_v24 }
 0x13a   : > { %9684 = vmatprep.mubr.msk.f32.mxu0 %vm292_vm1, %v11177_v25 }
 0x13d   : > { %9685 = vmatmul.mubr.msk.f32.gmra.mrb[20].mxu0 %vm292_vm1, %v11184_v26 }
 0x13e   : > { %9687 = vmatprep.mubr.msk.f32.mxu0 %vm292_vm1, %v11187_v27  ;;  %v13595_v27 = vld [vmem:[#allocation10_spill] sm:$0xff] }
 0x141   : > { %9688 = vmatmul.mubr.msk.f32.gmra.mrb[22].mxu0 %vm292_vm1, %v11194_v28  ;;  %v13607_v28 = vld [vmem:[#allocation21_spill] sm:$0xff] }
 0x142   : > { %9690 = vmatprep.mubr.msk.f32.mxu0 %vm292_vm1, %v11197_v29  ;;  %v11701_v29 = vld [vmem:[%s11064_s27 + $0x189] sm:$0xff] }
 0x143   : > { %13596 = vst [vmem:[#allocation38_spill] sm:$0xff] %v11701_v29 }
 0x145   : > { %9691 = vmatmul.mubr.msk.f32.gmra.mrb[24].mxu0 %vm292_vm1, %v11204_v30  ;;  %v13603_v30 = vld [vmem:[#allocation17_spill] sm:$0xff] }
 0x146   : > { %9693 = vmatprep.mubr.msk.f32.mxu0 %vm292_vm1, %v11207_v31  ;;  %v13597_v31 = vld [vmem:[#allocation11_spill] sm:$0xff] }
 0x149   : > { %9694 = vmatmul.mubr.msk.f32.gmra.mrb[26].mxu0 %vm292_vm1, %v13592_v4  ;;  %v13598_v4 = vld [vmem:[#allocation12_spill] sm:$0xff] }
 0x14a   : > { %9696 = vmatprep.mubr.msk.f32.mxu0 %vm292_vm1, %v13593_v6  ;;  %v8457_v6 = vld [vmem:[%s13436_s1 + $0x1c] sm:$0xf] }
 0x14d   : > { %9697 = vmatmul.mubr.msk.f32.gmra.mrb[28].mxu0 %vm292_vm1, %v13595_v27  ;;  %v13599_v27 = vld [vmem:[#allocation13_spill] sm:$0xff] }
 0x14e   : > { %9699 = vmatprep.mubr.msk.f32.mxu0 %vm292_vm1, %v11694_v33  ;;  %v13600_v33 = vld [vmem:[#allocation14_spill] sm:$0xff] }
 0x151   : > { %9700 = vmatmul.mubr.msk.f32.gmra.mrb[30].mxu0 %vm292_vm1, %v11701_v29  ;;  %v13601_v29 = vld [vmem:[#allocation15_spill] sm:$0xff] }
 0x152   : > { %9704 = vmatprep.mubr.msk.f32.mxu0 %vm292_vm1, %v13597_v31  ;;  %v13602_v31 = vld [vmem:[#allocation16_spill] sm:$0xff] }
 0x155   : > { %9705 = vmatmul.mubr.msk.f32.vlgmr.msra.gmra.mrb[0].mxu0 %vm292_vm1, %v13598_v4  ;;  %v13604_v4 = vld [vmem:[#allocation18_spill] sm:$0xff] }
 0x156   : > { %9753 = vmatpush3.msk.msra.mxu0 %vm389_vm0, %v8391_v39  ;;  %9707 = vmatprep.mubr.msk.f32.mxu0 %vm292_vm1, %v13599_v27  ;;  %v13605_v39 = vld [vmem:[#allocation19_spill] sm:$0xff]  ;;  %v13606_v27 = vld [vmem:[#allocation20_spill] sm:$0xff] }
 0x157   : > { %9802 = vmatprep.subr.msk.mxu0 %vm389_vm0, %v8457_v6 }
 0x159   : > { %9708 = vmatmul.mubr.msk.f32.gmra.mrb[2].mxu0 %vm292_vm1, %v13600_v33  ;;  %v13608_v33 = vld [vmem:[#allocation22_spill] sm:$0xff] }
 0x15a   : > { %9710 = vmatprep.mubr.msk.f32.mxu0 %vm292_vm1, %v13601_v29  ;;  %v13609_v29 = vld [vmem:[#allocation23_spill] sm:$0xff] }
 0x15d   : > { %9711 = vmatmul.mubr.msk.f32.gmra.mrb[4].mxu0 %vm292_vm1, %v13602_v31  ;;  %v13610_v31 = vld [vmem:[#allocation24_spill] sm:$0xff] }
 0x15e   : > { %9713 = vmatprep.mubr.msk.f32.mxu0 %vm292_vm1, %v13603_v30  ;;  %v13611_v30 = vld [vmem:[#allocation25_spill] sm:$0xff] }
 0x161   : > { %9714 = vmatmul.mubr.msk.f32.gmra.mrb[6].mxu0 %vm292_vm1, %v13604_v4 }
 0x162   : > { %9716 = vmatprep.mubr.msk.f32.mxu0 %vm292_vm1, %v13605_v39  ;;  %v13612_v39 = vld [vmem:[#allocation26_spill] sm:$0xff] }
 0x165   : > { %9717 = vmatmul.mubr.msk.f32.gmra.mrb[8].mxu0 %vm292_vm1, %v13606_v27  ;;  %v13613_v27 = vld [vmem:[#allocation27_spill] sm:$0xff] }
 0x166   : > { %9719 = vmatprep.mubr.msk.f32.mxu0 %vm292_vm1, %v13607_v28  ;;  %v13614_v28 = vld [vmem:[#allocation28_spill] sm:$0xff] }
 0x169   : > { %9720 = vmatmul.mubr.msk.f32.gmra.mrb[10].mxu0 %vm292_vm1, %v13608_v33  ;;  %v13615_v33 = vld [vmem:[#allocation29_spill] sm:$0xff] }
 0x16a   : > { %9722 = vmatprep.mubr.msk.f32.mxu0 %vm292_vm1, %v13609_v29  ;;  %v13616_v29 = vld [vmem:[#allocation30_spill] sm:$0xff] }
 0x16d   : > { %9723 = vmatmul.mubr.msk.f32.gmra.mrb[12].mxu0 %vm292_vm1, %v13610_v31  ;;  %v13617_v31 = vld [vmem:[#allocation31_spill] sm:$0xff] }
 0x16e   : > { %9725 = vmatprep.mubr.msk.f32.mxu0 %vm292_vm1, %v13611_v30  ;;  %v13618_v30 = vld [vmem:[#allocation32_spill] sm:$0xff] }
 0x171   : > { %9726 = vmatmul.mubr.msk.f32.gmra.mrb[14].mxu0 %vm292_vm1, %v13612_v39  ;;  %v13619_v39 = vld [vmem:[#allocation33_spill] sm:$0xff] }
 0x172   : > { %9728 = vmatprep.mubr.msk.f32.mxu0 %vm292_vm1, %v13613_v27  ;;  %v13620_v27 = vld [vmem:[#allocation34_spill] sm:$0xff] }
 0x175   : > { %9729 = vmatmul.mubr.msk.f32.gmra.mrb[16].mxu0 %vm292_vm1, %v13614_v28 }
 0x176   : > { %9731 = vmatprep.mubr.msk.f32.mxu0 %vm292_vm1, %v13615_v33  ;;  %v13621_v33 = vld [vmem:[#allocation35_spill] sm:$0xff] }
 0x179   : > { %9732 = vmatmul.mubr.msk.f32.gmra.mrb[18].mxu0 %vm292_vm1, %v13616_v29 }
 0x17a   : > { %9734 = vmatprep.mubr.msk.f32.mxu0 %vm292_vm1, %v13617_v31 }
 0x17d   : > { %9735 = vmatmul.mubr.msk.f32.gmra.mrb[20].mxu0 %vm292_vm1, %v13618_v30  ;;  %v11769_v30 = vld [vmem:[%s11064_s27 + $0x182] sm:$0xff] }
 0x17e   : > { %9737 = vmatprep.mubr.msk.f32.mxu0 %vm292_vm1, %v13619_v39 }
 0x181   : > { %9738 = vmatmul.mubr.msk.f32.gmra.mrb[22].mxu0 %vm292_vm1, %v11520_v32 }
 0x182   : > { %9740 = vmatprep.mubr.msk.f32.mxu0 %vm292_vm1, %v13620_v27  ;;  %v11776_v27 = vld [vmem:[%s11064_s27 + $0x18a] sm:$0xff] }
 0x185   : > { %9741 = vmatmul.mubr.msk.f32.gmra.mrb[24].mxu0 %vm292_vm1, %v11530_v5 }
 0x186   : > { %9743 = vmatprep.mubr.msk.f32.mxu0 %vm292_vm1, %v13621_v33 }
 0x189   : > { %9744 = vmatmul.mubr.msk.f32.gmra.mrb[26].mxu0 %vm292_vm1, %v11540_v38 }
 0x18a   : > { %9746 = vmatprep.mubr.msk.f32.mxu0 %vm292_vm1, %v11543_v35  ;;  %v8523_v35 = vld [vmem:[%s13436_s1 + $0x20] sm:$0xf] }
 0x18d   : > { %9747 = vmatmul.mubr.msk.f32.gmra.mrb[28].mxu0 %vm292_vm1, %v11550_v36 }
 0x18e   : > { %9749 = vmatprep.mubr.msk.f32.mxu0 %vm292_vm1, %v11769_v30 }
 0x191   : > { %9750 = vmatmul.mubr.msk.f32.gmra.mrb[30].mxu0 %vm292_vm1, %v11776_v27 }
 0x192   : > { %9754 = vmatprep.mubr.msk.f32.mxu0 %vm292_vm1, %v11248_v40  ;;  %v8389_v40 = vld [vmem:[%s11064_s27 + $0x198] sm:$0xff] }
 0x195   : > { %9755 = vmatmul.mubr.msk.f32.vlgmr.msra.gmra.mrb[0].mxu0 %vm292_vm1, %v11257_v41  ;;  %v8390_v41 = vld [vmem:[%s11064_s27 + $0x1a0] sm:$0xff] }
 0x196   : > { %9803 = vmatpush3.msk.msra.mxu0 %vm389_vm0, %v8457_v6  ;;  %9757 = vmatprep.mubr.msk.f32.mxu0 %vm292_vm1, %v11260_v42  ;;  %v13640_v42 = vld [vmem:[#allocation22_spill] sm:$0xff] }
 0x197   : > { %9852 = vmatprep.subr.msk.mxu0 %vm389_vm0, %v8523_v35 }
 0x199   : > { %9758 = vmatmul.mubr.msk.f32.gmra.mrb[2].mxu0 %vm292_vm1, %v11267_v43  ;;  %v13641_v43 = vld [vmem:[#allocation23_spill] sm:$0xff] }
 0x19a   : > { %9760 = vmatprep.mubr.msk.f32.mxu0 %vm292_vm1, %v11270_v44  ;;  %v13642_v44 = vld [vmem:[#allocation24_spill] sm:$0xff] }
 0x19d   : > { %9761 = vmatmul.mubr.msk.f32.gmra.mrb[4].mxu0 %vm292_vm1, %v11277_v45  ;;  %v13643_v45 = vld [vmem:[#allocation25_spill] sm:$0xff] }
 0x19e   : > { %9763 = vmatprep.mubr.msk.f32.mxu0 %vm292_vm1, %v11280_v46  ;;  %v13644_v46 = vld [vmem:[#allocation26_spill] sm:$0xff] }
 0x1a1   : > { %9764 = vmatmul.mubr.msk.f32.gmra.mrb[6].mxu0 %vm292_vm1, %v11287_v47  ;;  %v13645_v47 = vld [vmem:[#allocation27_spill] sm:$0xff] }
 0x1a2   : > { %9766 = vmatprep.mubr.msk.f32.mxu0 %vm292_vm1, %v11290_v48  ;;  %v13646_v48 = vld [vmem:[#allocation29_spill] sm:$0xff] }
 0x1a5   : > { %9767 = vmatmul.mubr.msk.f32.gmra.mrb[8].mxu0 %vm292_vm1, %v11297_v49  ;;  %v13647_v49 = vld [vmem:[#allocation32_spill] sm:$0xff] }
 0x1a6   : > { %9769 = vmatprep.mubr.msk.f32.mxu0 %vm292_vm1, %v11300_v50  ;;  %v8522_v50 = vld [vmem:[%s11064_s27 + $0x1a2] sm:$0xff] }
 0x1a9   : > { %9770 = vmatmul.mubr.msk.f32.gmra.mrb[10].mxu0 %vm292_vm1, %v11307_v51  ;;  %v11010_v51 = vmov 0.0  }
 0x1aa   : > { %9772 = vmatprep.mubr.msk.f32.mxu0 %vm292_vm1, %v11310_v52  ;;  %4071 = vst.msk [vmem:[#allocation2 + $0x18] sm:$0xff] %vm3745_vm2, %v11010_v51  ;;  %4072 = vst.msk [vmem:[#allocation2 + $0x20] sm:$0xff] %vm3745_vm2, %v11010_v51 }
 0x1ab   : > { %4067 = vst.msk [vmem:[#allocation2] sm:$0xff] %vm3745_vm2, %v11010_v51  ;;  %4068 = vst.msk [vmem:[#allocation2 + $0x8] sm:$0xff] %vm3745_vm2, %v11010_v51 }
 0x1ac   : > { %4074 = vst.msk [vmem:[#allocation2 + $0x30] sm:$0xff] %vm3745_vm2, %v11010_v51  ;;  %4075 = vst.msk [vmem:[#allocation2 + $0x38] sm:$0xff] %vm3745_vm2, %v11010_v51 }
 0x1ad   : > { %9773 = vmatmul.mubr.msk.f32.gmra.mrb[12].mxu0 %vm292_vm1, %v11317_v53  ;;  %4077 = vst.msk [vmem:[#allocation2 + $0x48] sm:$0xff] %vm3745_vm2, %v11010_v51  ;;  %4078 = vst.msk [vmem:[#allocation2 + $0x50] sm:$0xff] %vm3745_vm2, %v11010_v51 }
 0x1ae   : > { %9775 = vmatprep.mubr.msk.f32.mxu0 %vm292_vm1, %v11320_v54  ;;  %4080 = vst.msk [vmem:[#allocation2 + $0x60] sm:$0xff] %vm3745_vm2, %v11010_v51  ;;  %4081 = vst.msk [vmem:[#allocation2 + $0x68] sm:$0xff] %vm3745_vm2, %v11010_v51 }
 0x1af   : > { %4083 = vst.msk [vmem:[#allocation2 + $0x78] sm:$0xff] %vm3745_vm2, %v11010_v51  ;;  %4084 = vst.msk [vmem:[#allocation2 + $0x80] sm:$0xff] %vm3745_vm2, %v11010_v51 }
 0x1b0   : > { %4086 = vst.msk [vmem:[#allocation2 + $0x90] sm:$0xff] %vm3745_vm2, %v11010_v51  ;;  %4087 = vst.msk [vmem:[#allocation2 + $0x98] sm:$0xff] %vm3745_vm2, %v11010_v51 }
 0x1b1   : > { %9776 = vmatmul.mubr.msk.f32.gmra.mrb[14].mxu0 %vm292_vm1, %v11327_v55  ;;  %4089 = vst.msk [vmem:[#allocation2 + $0xa8] sm:$0xff] %vm3745_vm2, %v11010_v51  ;;  %4090 = vst.msk [vmem:[#allocation2 + $0xb0] sm:$0xff] %vm3745_vm2, %v11010_v51 }
 0x1b2   : > { %9778 = vmatprep.mubr.msk.f32.mxu0 %vm292_vm1, %v11330_v56  ;;  %4092 = vst.msk [vmem:[#allocation2 + $0xc0] sm:$0xff] %vm3745_vm2, %v11010_v51  ;;  %4093 = vst.msk [vmem:[#allocation2 + $0xc8] sm:$0xff] %vm3745_vm2, %v11010_v51 }
 0x1b3   : > { %4095 = vst.msk [vmem:[#allocation2 + $0xd8] sm:$0xff] %vm3745_vm2, %v11010_v51  ;;  %4096 = vst.msk [vmem:[#allocation2 + $0xe0] sm:$0xff] %vm3745_vm2, %v11010_v51 }
 0x1b4   : > { %4098 = vst.msk [vmem:[#allocation2 + $0xf0] sm:$0xff] %vm3745_vm2, %v11010_v51  ;;  %4099 = vst.msk [vmem:[#allocation2 + $0xf8] sm:$0xff] %vm3745_vm2, %v11010_v51 }
 0x1b5   : > { %9779 = vmatmul.mubr.msk.f32.gmra.mrb[16].mxu0 %vm292_vm1, %v11337_v57  ;;  %4101 = vst.msk [vmem:[#allocation2 + $0x108] sm:$0xff] %vm3745_vm2, %v11010_v51  ;;  %4102 = vst.msk [vmem:[#allocation2 + $0x110] sm:$0xff] %vm3745_vm2, %v11010_v51 }
 0x1b6   : > { %9781 = vmatprep.mubr.msk.f32.mxu0 %vm292_vm1, %v11340_v58  ;;  %4104 = vst.msk [vmem:[#allocation2 + $0x120] sm:$0xff] %vm3745_vm2, %v11010_v51  ;;  %4105 = vst.msk [vmem:[#allocation2 + $0x128] sm:$0xff] %vm3745_vm2, %v11010_v51 }
 0x1b7   : > { %4107 = vst.msk [vmem:[#allocation2 + $0x138] sm:$0xff] %vm3745_vm2, %v11010_v51  ;;  %4108 = vst.msk [vmem:[#allocation2 + $0x140] sm:$0xff] %vm3745_vm2, %v11010_v51 }
 0x1b8   : > { %4110 = vst.msk [vmem:[#allocation2 + $0x150] sm:$0xff] %vm3745_vm2, %v11010_v51  ;;  %4111 = vst.msk [vmem:[#allocation2 + $0x158] sm:$0xff] %vm3745_vm2, %v11010_v51 }
 0x1b9   : > { %9782 = vmatmul.mubr.msk.f32.gmra.mrb[18].mxu0 %vm292_vm1, %v11347_v59  ;;  %4113 = vst.msk [vmem:[#allocation2 + $0x168] sm:$0xff] %vm3745_vm2, %v11010_v51  ;;  %4114 = vst.msk [vmem:[#allocation2 + $0x170] sm:$0xff] %vm3745_vm2, %v11010_v51 }
 0x1ba   : > { %9784 = vmatprep.mubr.msk.f32.mxu0 %vm292_vm1, %v11350_v60  ;;  %4116 = vst.msk [vmem:[#allocation2 + $0x180] sm:$0xff] %vm3745_vm2, %v11010_v51  ;;  %4117 = vst.msk [vmem:[#allocation2 + $0x188] sm:$0xff] %vm3745_vm2, %v11010_v51 }
 0x1bb   : > { %4119 = vst.msk [vmem:[#allocation2 + $0x198] sm:$0xff] %vm3745_vm2, %v11010_v51  ;;  %4120 = vst.msk [vmem:[#allocation2 + $0x1a0] sm:$0xff] %vm3745_vm2, %v11010_v51 }
 0x1bc   : > { %4073 = vst.msk [vmem:[#allocation2 + $0x28] sm:$0x3] %vm4069_vm3, %v11010_v51  ;;  %4070 = vst.msk [vmem:[#allocation2 + $0x10] sm:$0x3] %vm4069_vm3, %v11010_v51 }
 0x1bd   : > { %9785 = vmatmul.mubr.msk.f32.gmra.mrb[20].mxu0 %vm292_vm1, %v11357_v61  ;;  %4076 = vst.msk [vmem:[#allocation2 + $0x40] sm:$0x3] %vm4069_vm3, %v11010_v51  ;;  %4079 = vst.msk [vmem:[#allocation2 + $0x58] sm:$0x3] %vm4069_vm3, %v11010_v51 }
 0x1be   : > { %9787 = vmatprep.mubr.msk.f32.mxu0 %vm292_vm1, %v11360_v62  ;;  %4082 = vst.msk [vmem:[#allocation2 + $0x70] sm:$0x3] %vm4069_vm3, %v11010_v51  ;;  %4085 = vst.msk [vmem:[#allocation2 + $0x88] sm:$0x3] %vm4069_vm3, %v11010_v51 }
 0x1bf   : > { %4088 = vst.msk [vmem:[#allocation2 + $0xa0] sm:$0x3] %vm4069_vm3, %v11010_v51  ;;  %4091 = vst.msk [vmem:[#allocation2 + $0xb8] sm:$0x3] %vm4069_vm3, %v11010_v51 }
 0x1c0   : > { %4094 = vst.msk [vmem:[#allocation2 + $0xd0] sm:$0x3] %vm4069_vm3, %v11010_v51  ;;  %4097 = vst.msk [vmem:[#allocation2 + $0xe8] sm:$0x3] %vm4069_vm3, %v11010_v51 }
 0x1c1   : > { %9788 = vmatmul.mubr.msk.f32.gmra.mrb[22].mxu0 %vm292_vm1, %v11367_v63  ;;  %4100 = vst.msk [vmem:[#allocation2 + $0x100] sm:$0x3] %vm4069_vm3, %v11010_v51  ;;  %4103 = vst.msk [vmem:[#allocation2 + $0x118] sm:$0x3] %vm4069_vm3, %v11010_v51 }
 0x1c2   : > { %9790 = vmatprep.mubr.msk.f32.mxu0 %vm292_vm1, %v11370_v0  ;;  %4106 = vst.msk [vmem:[#allocation2 + $0x130] sm:$0x3] %vm4069_vm3, %v11010_v51  ;;  %4109 = vst.msk [vmem:[#allocation2 + $0x148] sm:$0x3] %vm4069_vm3, %v11010_v51 }
 0x1c3   : > { %4112 = vst.msk [vmem:[#allocation2 + $0x160] sm:$0x3] %vm4069_vm3, %v11010_v51  ;;  %4115 = vst.msk [vmem:[#allocation2 + $0x178] sm:$0x3] %vm4069_vm3, %v11010_v51 }
 0x1c4   : > { %4118 = vst.msk [vmem:[#allocation2 + $0x190] sm:$0x3] %vm4069_vm3, %v11010_v51  ;;  %4121 = vst.msk [vmem:[#allocation2 + $0x1a8] sm:$0x3] %vm4069_vm3, %v11010_v51 }
 0x1c5   : > { %9791 = vmatmul.mubr.msk.f32.gmra.mrb[24].mxu0 %vm292_vm1, %v11377_v1 }
 0x1c6   : > { %9793 = vmatprep.mubr.msk.f32.mxu0 %vm292_vm1, %v11380_v2 }
 0x1c9   : > { %9794 = vmatmul.mubr.msk.f32.gmra.mrb[26].mxu0 %vm292_vm1, %v11387_v3 }
 0x1ca   : > { %9796 = vmatprep.mubr.msk.f32.mxu0 %vm292_vm1, %v11619_v34 }
 0x1cd   : > { %9797 = vmatmul.mubr.msk.f32.gmra.mrb[28].mxu0 %vm292_vm1, %v11626_v37 }
 0x1ce   : > { %9799 = vmatprep.mubr.msk.f32.mxu0 %vm292_vm1, %v8389_v40 }
 0x1d1   : > { %9800 = vmatmul.mubr.msk.f32.gmra.mrb[30].mxu0 %vm292_vm1, %v8390_v41 }
 0x1d2   : > { %9804 = vmatprep.mubr.msk.f32.mxu0 %vm292_vm1, %v11085_v7  ;;  %v13622_v7 = vld [vmem:[#allocation3_spill] sm:$0xff] }
 0x1d5   : > { %9805 = vmatmul.mubr.msk.f32.vlgmr.msra.gmra.mrb[0].mxu0 %vm292_vm1, %v11094_v8  ;;  %v13623_v8 = vld [vmem:[#allocation4_spill] sm:$0xff] }
 0x1d6   : > { %9853 = vmatpush3.msk.msra.mxu0 %vm389_vm0, %v8523_v35  ;;  %9807 = vmatprep.mubr.msk.f32.mxu0 %vm292_vm1, %v11097_v9  ;;  %v13624_v9 = vld [vmem:[#allocation5_spill] sm:$0xff] }
 0x1d9   : > { %9808 = vmatmul.mubr.msk.f32.gmra.mrb[2].mxu0 %vm292_vm1, %v11104_v10  ;;  %v13625_v10 = vld [vmem:[#allocation6_spill] sm:$0xff] }
 0x1da   : > { %9810 = vmatprep.mubr.msk.f32.mxu0 %vm292_vm1, %v11107_v11  ;;  %v13626_v11 = vld [vmem:[#allocation7_spill] sm:$0xff] }
 0x1dd   : > { %9811 = vmatmul.mubr.msk.f32.gmra.mrb[4].mxu0 %vm292_vm1, %v11114_v12  ;;  %v13627_v12 = vld [vmem:[#allocation8_spill] sm:$0xff] }
 0x1de   : > { %9813 = vmatprep.mubr.msk.f32.mxu0 %vm292_vm1, %v11117_v13  ;;  %v13628_v13 = vld [vmem:[#allocation9_spill] sm:$0xff] }
 0x1e1   : > { %9814 = vmatmul.mubr.msk.f32.gmra.mrb[6].mxu0 %vm292_vm1, %v11124_v14  ;;  %v13629_v14 = vld [vmem:[#allocation10_spill] sm:$0xff] }
 0x1e2   : > { %9816 = vmatprep.mubr.msk.f32.mxu0 %vm292_vm1, %v11127_v15  ;;  %v13630_v15 = vld [vmem:[#allocation37_spill] sm:$0xff] }
 0x1e5   : > { %9817 = vmatmul.mubr.msk.f32.gmra.mrb[8].mxu0 %vm292_vm1, %v11134_v16  ;;  %v8455_v16 = vld [vmem:[%s11064_s27 + $0x199] sm:$0xff] }
 0x1e6   : > { %9819 = vmatprep.mubr.msk.f32.mxu0 %vm292_vm1, %v11137_v17  ;;  %v13631_v17 = vld [vmem:[#allocation38_spill] sm:$0xff] }
 0x1e9   : > { %9820 = vmatmul.mubr.msk.f32.gmra.mrb[10].mxu0 %vm292_vm1, %v11144_v18  ;;  %v8456_v18 = vld [vmem:[%s11064_s27 + $0x1a1] sm:$0xff] }
 0x1ea   : > { %9822 = vmatprep.mubr.msk.f32.mxu0 %vm292_vm1, %v11147_v19  ;;  %v13632_v19 = vld [vmem:[#allocation13_spill] sm:$0xff] }
 0x1ed   : > { %9823 = vmatmul.mubr.msk.f32.gmra.mrb[12].mxu0 %vm292_vm1, %v11154_v20  ;;  %v13633_v20 = vld [vmem:[#allocation14_spill] sm:$0xff] }
 0x1ee   : > { %9825 = vmatprep.mubr.msk.f32.mxu0 %vm292_vm1, %v11157_v21  ;;  %v13634_v21 = vld [vmem:[#allocation15_spill] sm:$0xff] }
 0x1f1   : > { %9826 = vmatmul.mubr.msk.f32.gmra.mrb[14].mxu0 %vm292_vm1, %v11164_v22  ;;  %v13635_v22 = vld [vmem:[#allocation16_spill] sm:$0xff] }
 0x1f2   : > { %9828 = vmatprep.mubr.msk.f32.mxu0 %vm292_vm1, %v11167_v23  ;;  %v13636_v23 = vld [vmem:[#allocation17_spill] sm:$0xff] }
 0x1f5   : > { %9829 = vmatmul.mubr.msk.f32.gmra.mrb[16].mxu0 %vm292_vm1, %v11174_v24  ;;  %v13637_v24 = vld [vmem:[#allocation19_spill] sm:$0xff] }
 0x1f6   : > { %9831 = vmatprep.mubr.msk.f32.mxu0 %vm292_vm1, %v11177_v25  ;;  %v13638_v25 = vld [vmem:[#allocation20_spill] sm:$0xff] }
 0x1f9   : > { %9832 = vmatmul.mubr.msk.f32.gmra.mrb[18].mxu0 %vm292_vm1, %v11184_v26  ;;  %v13639_v26 = vld [vmem:[#allocation21_spill] sm:$0xff] }
 0x1fa   : > { %9834 = vmatprep.mubr.msk.f32.mxu0 %vm292_vm1, %v13622_v7 }
 0x1fd   : > { %9835 = vmatmul.mubr.msk.f32.gmra.mrb[20].mxu0 %vm292_vm1, %v13623_v8 }
 0x1fe   : > { %9837 = vmatprep.mubr.msk.f32.mxu0 %vm292_vm1, %v13624_v9 }
 0x201   : > { %9838 = vmatmul.mubr.msk.f32.gmra.mrb[22].mxu0 %vm292_vm1, %v13625_v10 }
 0x202   : > { %9840 = vmatprep.mubr.msk.f32.mxu0 %vm292_vm1, %v13626_v11 }
 0x205   : > { %9841 = vmatmul.mubr.msk.f32.gmra.mrb[24].mxu0 %vm292_vm1, %v13627_v12 }
 0x206   : > { %9843 = vmatprep.mubr.msk.f32.mxu0 %vm292_vm1, %v13628_v13 }
 0x209   : > { %9844 = vmatmul.mubr.msk.f32.gmra.mrb[26].mxu0 %vm292_vm1, %v13629_v14 }
 0x20a   : > { %9846 = vmatprep.mubr.msk.f32.mxu0 %vm292_vm1, %v13630_v15 }
 0x20d   : > { %9847 = vmatmul.mubr.msk.f32.gmra.mrb[28].mxu0 %vm292_vm1, %v13631_v17 }
 0x20e   : > { %9849 = vmatprep.mubr.msk.f32.mxu0 %vm292_vm1, %v8455_v16 }
 0x211   : > { %9850 = vmatmul.mubr.msk.f32.gmra.mrb[30].mxu0 %vm292_vm1, %v8456_v18 }
 0x212   : > { %9854 = vmatprep.mubr.msk.f32.mxu0 %vm292_vm1, %v13632_v19 }
 0x215   : > { %9855 = vmatmul.mubr.msk.f32.vlgmr.msra.gmra.mrb[0].mxu0 %vm292_vm1, %v13633_v20 }
 0x216   : > { %9857 = vmatprep.mubr.msk.f32.mxu0 %vm292_vm1, %v13634_v21 }
 0x219   : > { %9858 = vmatmul.mubr.msk.f32.gmra.mrb[2].mxu0 %vm292_vm1, %v13635_v22 }
 0x21a   : > { %9860 = vmatprep.mubr.msk.f32.mxu0 %vm292_vm1, %v13636_v23 }
 0x21d   : > { %9861 = vmatmul.mubr.msk.f32.gmra.mrb[4].mxu0 %vm292_vm1, %v13604_v4 }
 0x21e   : > { %9863 = vmatprep.mubr.msk.f32.mxu0 %vm292_vm1, %v13637_v24 }
 0x221   : > { %9864 = vmatmul.mubr.msk.f32.gmra.mrb[6].mxu0 %vm292_vm1, %v13638_v25 }
 0x222   : > { %9866 = vmatprep.mubr.msk.f32.mxu0 %vm292_vm1, %v13639_v26 }
 0x225   : > { %9867 = vmatmul.mubr.msk.f32.gmra.mrb[8].mxu0 %vm292_vm1, %v13640_v42 }
 0x226   : > { %9869 = vmatprep.mubr.msk.f32.mxu0 %vm292_vm1, %v13641_v43 }
 0x229   : > { %9870 = vmatmul.mubr.msk.f32.gmra.mrb[10].mxu0 %vm292_vm1, %v13642_v44 }
 0x22a   : > { %9872 = vmatprep.mubr.msk.f32.mxu0 %vm292_vm1, %v13643_v45 }
 0x22d   : > { %9873 = vmatmul.mubr.msk.f32.gmra.mrb[12].mxu0 %vm292_vm1, %v13644_v46 }
 0x22e   : > { %9875 = vmatprep.mubr.msk.f32.mxu0 %vm292_vm1, %v13645_v47 }
 0x231   : > { %9876 = vmatmul.mubr.msk.f32.gmra.mrb[14].mxu0 %vm292_vm1, %v13614_v28  ;;  %v13648_v28 = vld [vmem:[#allocation34_spill] sm:$0xff] }
 0x232   : > { %9878 = vmatprep.mubr.msk.f32.mxu0 %vm292_vm1, %v13646_v48 }
 0x235   : > { %9879 = vmatmul.mubr.msk.f32.gmra.mrb[16].mxu0 %vm292_vm1, %v13616_v29  ;;  %v13649_v29 = vld [vmem:[#allocation36_spill] sm:$0xff] }
 0x236   : > { %9881 = vmatprep.mubr.msk.f32.mxu0 %vm292_vm1, %v13617_v31 }
 0x239   : > { %9882 = vmatmul.mubr.msk.f32.gmra.mrb[18].mxu0 %vm292_vm1, %v13647_v49 }
 0x23a   : > { %9884 = vmatprep.mubr.msk.f32.mxu0 %vm292_vm1, %v13619_v39 }
 0x23d   : > { %9885 = vmatmul.mubr.msk.f32.gmra.mrb[20].mxu0 %vm292_vm1, %v11520_v32  ;;  %v8521_v32 = vld [vmem:[%s11064_s27 + $0x19a] sm:$0xff] }
 0x23e   : > { %9887 = vmatprep.mubr.msk.f32.mxu0 %vm292_vm1, %v13648_v28 }
 0x241   : > { %9888 = vmatmul.mubr.msk.f32.gmra.mrb[22].mxu0 %vm292_vm1, %v11530_v5 }
 0x242   : > { %9890 = vmatprep.mubr.msk.f32.mxu0 %vm292_vm1, %v13621_v33 }
 0x245   : > { %9891 = vmatmul.mubr.msk.f32.gmra.mrb[24].mxu0 %vm292_vm1, %v11540_v38 }
 0x246   : > { %9893 = vmatprep.mubr.msk.f32.mxu0 %vm292_vm1, %v13649_v29 }
 0x249   : > { %9894 = vmatmul.mubr.msk.f32.gmra.mrb[26].mxu0 %vm292_vm1, %v11550_v36 }
 0x24a   : > { %9896 = vmatprep.mubr.msk.f32.mxu0 %vm292_vm1, %v11769_v30 }
 0x24d   : > { %9897 = vmatmul.mubr.msk.f32.gmra.mrb[28].mxu0 %vm292_vm1, %v11776_v27  ;;  %v12053_v27 = vld [vmem:[%s13437_s2] ss:$0 sm:$0xff] }
 0x24e   : > { %9899 = vmatprep.mubr.msk.f32.mxu0 %vm292_vm1, %v8521_v32 }
 0x251   : > { %9900 = vmatmul.mubr.msk.f32.gmra.mrb[30].mxu0 %vm292_vm1, %v8522_v50 }
 0x2e8   : > { %v9856_v30 = vpop.f32.mrb[0].mxu0 }
 0x2e9   : > { %v12056_v52 = vadd.f32 %v9856_v30, %v12053_v27  ;;  %v3483_v53 = vpop.f32.mrb[1].mxu0 }
 0x2ea   : > { %v12059_v54 = vadd.f32 %v12053_v27, %v3483_v53 }
 0x2eb   : > { %v3714_v58 = vmul.f32 %v12056_v52, %v12056_v52 }
 0x2ec   : > { %v9859_v55 = vpop.f32.mrb[2].mxu0  ;;  %v3713_v56 = vmul.f32 %v12059_v54, %v12059_v54 }
 0x2ed   : > { %v3493_v57 = vpop.f32.mrb[3].mxu0  ;;  %v12066_v59 = vadd.f32 %v9859_v55, %v12053_v27  ;;  %v3749_v1 = vsel %vm3745_vm2, %v3714_v58, 0.0 }
 0x2ee   : > { %v12069_v60 = vadd.f32 %v12053_v27, %v3493_v57  ;;  %v3746_v61 = vsel %vm3745_vm2, %v3713_v56, 0.0 }
 0x2ef   : > { %3747 = vadd.xlane.f32.xlu0 %v3746_v61  ;;  %v3716_v5 = vmul.f32 %v12066_v59, %v12066_v59 }
 0x2f0   : > { %v9862_v62 = vpop.f32.mrb[4].mxu0  ;;  %v3715_v63 = vmul.f32 %v12069_v60, %v12069_v60 }
 0x2f1   : > { %v3503_v0 = vpop.f32.mrb[5].mxu0  ;;  %v12076_v2 = vadd.f32 %v9862_v62, %v12053_v27  ;;  %v3755_v33 = vsel %vm3745_vm2, %v3716_v5, 0.0 }
 0x2f2   : > { %v12079_v3 = vadd.f32 %v12053_v27, %v3503_v0  ;;  %v3752_v36 = vsel %vm3745_vm2, %v3715_v63, 0.0 }
 0x2f3   : > { %3750 = vadd.xlane.f32.xlu0 %v3749_v1  ;;  %3753 = vadd.xlane.f32.xlu1 %v3752_v36  ;;  %v3718_v4 = vmul.f32 %v12076_v2, %v12076_v2 }
 0x2f4   : > { %v9865_v38 = vpop.f32.mrb[6].mxu0  ;;  %v3717_v35 = vmul.f32 %v12079_v3, %v12079_v3 }
 0x2f5   : > { %v12087_v34 = vadd.f32 %v9865_v38, %v12053_v27  ;;  %v3513_v37 = vpop.f32.mrb[7].mxu0  ;;  %v3761_v10 = vsel %vm3745_vm2, %v3718_v4, 0.0 }
 0x2f6   : > { %v12090_v6 = vadd.f32 %v12053_v27, %v3513_v37  ;;  %v3758_v31 = vsel %vm3745_vm2, %v3717_v35, 0.0 }
 0x2f7   : > { %3756 = vadd.xlane.f32.xlu1 %v3755_v33  ;;  %3759 = vadd.xlane.f32.xlu0 %v3758_v31  ;;  %v3720_v7 = vmul.f32 %v12087_v34, %v12087_v34 }
 0x2f8   : > { %v9868_v39 = vpop.f32.mrb[8].mxu0  ;;  %v3719_v40 = vmul.f32 %v12090_v6, %v12090_v6 }
 0x2f9   : > { %v3523_v41 = vpop.f32.mrb[9].mxu0  ;;  %v12101_v8 = vadd.f32 %v9868_v39, %v12053_v27  ;;  %v3767_v15 = vsel %vm3745_vm2, %v3720_v7, 0.0 }
 0x2fa   : > { %v12104_v9 = vadd.f32 %v12053_v27, %v3523_v41  ;;  %v3764_v11 = vsel %vm3745_vm2, %v3719_v40, 0.0 }
 0x2fb   : > { %3762 = vadd.xlane.f32.xlu1 %v3761_v10  ;;  %3765 = vadd.xlane.f32.xlu0 %v3764_v11  ;;  %v3722_v19 = vmul.f32 %v12101_v8, %v12101_v8 }
 0x2fc   : > { %v9871_v12 = vpop.f32.mrb[10].mxu0  ;;  %v3721_v13 = vmul.f32 %v12104_v9, %v12104_v9 }
 0x2fd   : > { %v3533_v14 = vpop.f32.mrb[11].mxu0  ;;  %v12112_v16 = vadd.f32 %v9871_v12, %v12053_v27  ;;  %v3773_v25 = vsel %vm3745_vm2, %v3722_v19, 0.0 }
 0x2fe   : > { %v12115_v17 = vadd.f32 %v12053_v27, %v3533_v14  ;;  %v3770_v18 = vsel %vm3745_vm2, %v3721_v13, 0.0 }
 0x2ff   : > { %3768 = vadd.xlane.f32.xlu1 %v3767_v15  ;;  %3771 = vadd.xlane.f32.xlu0 %v3770_v18  ;;  %v3724_v42 = vmul.f32 %v12112_v16, %v12112_v16  ;;  %v8558_v15 = vld [vmem:[%s13438_s3 + $0x8] sm:$0xff] }
 0x300   : > { %v9874_v20 = vpop.f32.mrb[12].mxu0  ;;  %v3723_v21 = vmul.f32 %v12115_v17, %v12115_v17  ;;  %v4188_v18 = vld [vmem:[#allocation2 + $0x1] sm:$0xff]  ;;  %9902 = vmatprep.subr.mxu1 %v8558_v15 }
 0x301   : > { %v12123_v22 = vadd.f32 %v9874_v20, %v12053_v27  ;;  %v3543_v23 = vpop.f32.mrb[13].mxu0  ;;  %v3779_v49 = vsel %vm3745_vm2, %v3724_v42, 0.0  ;;  %9904 = vmatprep.mubr.msk.f32.mxu1 %vm3745_vm2, %v4188_v18  ;;  %9903 = vmatpush3.msra.mxu1 %v8558_v15  ;;  %v12294_v18 = vld [vmem:[%s13438_s3 + $0x10] sm:$0xff] }
 0x302   : > { %v12126_v24 = vadd.f32 %v12053_v27, %v3543_v23  ;;  %v3776_v26 = vsel %vm3745_vm2, %v3723_v21, 0.0  ;;  %v4189_v21 = vld [vmem:[#allocation2 + $0x9] sm:$0xff] }
 0x303   : > { %3774 = vadd.xlane.f32.xlu1 %v3773_v25  ;;  %3777 = vadd.xlane.f32.xlu0 %v3776_v26  ;;  %v3726_v46 = vmul.f32 %v12123_v22, %v12123_v22 }
 0x304   : > { %v9877_v43 = vpop.f32.mrb[14].mxu0  ;;  %v3725_v44 = vmul.f32 %v12126_v24, %v12126_v24  ;;  %9905 = vmatmul.mubr.msk.f32.vlgmr.msra.gmra.mrb[0].mxu1 %vm3745_vm2, %v4189_v21 }
 0x305   : > { %v3553_v45 = vpop.f32.mrb[15].mxu0  ;;  %v12137_v47 = vadd.f32 %v9877_v43, %v12053_v27  ;;  %v3785_v30 = vsel %vm3745_vm2, %v3726_v46, 0.0 }
 0x306   : > { %v12140_v48 = vadd.f32 %v12053_v27, %v3553_v45  ;;  %v3782_v28 = vsel %vm3745_vm2, %v3725_v44, 0.0 }
 0x307   : > { %3780 = vadd.xlane.f32.xlu1 %v3779_v49  ;;  %3783 = vadd.xlane.f32.xlu0 %v3782_v28  ;;  %v3728_v57 = vmul.f32 %v12137_v47, %v12137_v47 }
 0x308   : > { %v9880_v29 = vpop.f32.mrb[16].mxu0  ;;  %v3727_v32 = vmul.f32 %v12140_v48, %v12140_v48 }
 0x309   : > { %v3563_v50 = vpop.f32.mrb[17].mxu0  ;;  %v12148_v53 = vadd.f32 %v9880_v29, %v12053_v27  ;;  %v3791_v1 = vsel %vm3745_vm2, %v3728_v57, 0.0 }
 0x30a   : > { %v12151_v55 = vadd.f32 %v12053_v27, %v3563_v50  ;;  %v3788_v56 = vsel %vm3745_vm2, %v3727_v32, 0.0 }
 0x30b   : > { %3786 = vadd.xlane.f32.xlu1 %v3785_v30  ;;  %3789 = vadd.xlane.f32.xlu0 %v3788_v56  ;;  %v3730_v5 = vmul.f32 %v12148_v53, %v12148_v53 }
 0x30c   : > { %v9883_v58 = vpop.f32.mrb[18].mxu0  ;;  %v3729_v61 = vmul.f32 %v12151_v55, %v12151_v55 }
 0x30d   : > { %v12159_v62 = vadd.f32 %v9883_v58, %v12053_v27  ;;  %v3573_v63 = vpop.f32.mrb[19].mxu0  ;;  %v3797_v39 = vsel %vm3745_vm2, %v3730_v5, 0.0 }
 0x30e   : > { %v12162_v0 = vadd.f32 %v12053_v27, %v3573_v63  ;;  %v3794_v36 = vsel %vm3745_vm2, %v3729_v61, 0.0 }
 0x30f   : > { %3792 = vadd.xlane.f32.xlu1 %v3791_v1  ;;  %3795 = vadd.xlane.f32.xlu0 %v3794_v36  ;;  %v3732_v33 = vmul.f32 %v12159_v62, %v12159_v62 }
 0x310   : > { %v9886_v38 = vpop.f32.mrb[20].mxu0  ;;  %v3731_v35 = vmul.f32 %v12162_v0, %v12162_v0 }
 0x311   : > { %v3583_v37 = vpop.f32.mrb[21].mxu0  ;;  %v12209_v31 = vadd.f32 %v9886_v38, %v12053_v27  ;;  %v3803_v10 = vsel %vm3745_vm2, %v3732_v33, 0.0 }
 0x312   : > { %v12212_v4 = vadd.f32 %v12053_v27, %v3583_v37  ;;  %v3800_v40 = vsel %vm3745_vm2, %v3731_v35, 0.0 }
 0x313   : > { %3798 = vadd.xlane.f32.xlu1 %v3797_v39  ;;  %3801 = vadd.xlane.f32.xlu0 %v3800_v40  ;;  %v3734_v14 = vmul.f32 %v12209_v31, %v12209_v31 }
 0x314   : > { %v9889_v41 = vpop.f32.mrb[22].mxu0  ;;  %v3733_v51 = vmul.f32 %v12212_v4, %v12212_v4 }
 0x315   : > { %v3593_v7 = vpop.f32.mrb[23].mxu0  ;;  %v12220_v11 = vadd.f32 %v9889_v41, %v12053_v27  ;;  %v3809_v42 = vsel %vm3745_vm2, %v3734_v14, 0.0  ;;  %v4187_v14 = vld [vmem:[%s13438_s3] sm:$0xff] }
 0x316   : > { %v12223_v12 = vadd.f32 %v12053_v27, %v3593_v7  ;;  %v3806_v13 = vsel %vm3745_vm2, %v3733_v51, 0.0  ;;  %9952 = vmatprep.subr.mxu1 %v4187_v14 }
 0x317   : > { %3804 = vadd.xlane.f32.xlu1 %v3803_v10  ;;  %3807 = vadd.xlane.f32.xlu0 %v3806_v13  ;;  %v3736_v44 = vmul.f32 %v12220_v11, %v12220_v11 }
 0x318   : > { %v9892_v19 = vpop.f32.mrb[24].mxu0  ;;  %v3735_v20 = vmul.f32 %v12223_v12, %v12223_v12  ;;  %9953 = vmatpush3.msra.mxu1 %v4187_v14 }
 0x319   : > { %v12235_v23 = vadd.f32 %v9892_v19, %v12053_v27  ;;  %v3603_v25 = vpop.f32.mrb[25].mxu0  ;;  %v3815_v50 = vsel %vm3745_vm2, %v3736_v44, 0.0  ;;  %10002 = vmatprep.subr.mxu1 %v12294_v18 }
 0x31a   : > { %v12238_v26 = vadd.f32 %v12053_v27, %v3603_v25  ;;  %v3812_v43 = vsel %vm3745_vm2, %v3735_v20, 0.0 }
 0x31b   : > { %3810 = vadd.xlane.f32.xlu1 %v3809_v42  ;;  %3813 = vadd.xlane.f32.xlu0 %v3812_v43  ;;  %v3738_v28 = vmul.f32 %v12235_v23, %v12235_v23 }
 0x31c   : > { %v9895_v45 = vpop.f32.mrb[26].mxu0  ;;  %v3737_v46 = vmul.f32 %v12238_v26, %v12238_v26 }
 0x31d   : > { %v3613_v49 = vpop.f32.mrb[27].mxu0  ;;  %v12250_v29 = vadd.f32 %v9895_v45, %v12053_v27  ;;  %v3821_v61 = vsel %vm3745_vm2, %v3738_v28, 0.0 }
 0x31e   : > { %v12253_v32 = vadd.f32 %v12053_v27, %v3613_v49  ;;  %v3818_v30 = vsel %vm3745_vm2, %v3737_v46, 0.0 }
 0x31f   : > { %3816 = vadd.xlane.f32.xlu1 %v3815_v50  ;;  %3819 = vadd.xlane.f32.xlu0 %v3818_v30  ;;  %v3740_v5 = vmul.f32 %v12250_v29, %v12250_v29 }
 0x320   : > { %v9898_v56 = vpop.f32.mrb[28].mxu0  ;;  %v3739_v57 = vmul.f32 %v12253_v32, %v12253_v32 }
 0x321   : > { %v3623_v58 = vpop.f32.mrb[29].mxu0  ;;  %v12261_v63 = vadd.f32 %v9898_v56, %v12053_v27  ;;  %v3827_v40 = vsel %vm3745_vm2, %v3740_v5, 0.0 }
 0x322   : > { %v12264_v1 = vadd.f32 %v12053_v27, %v3623_v58  ;;  %v3824_v36 = vsel %vm3745_vm2, %v3739_v57, 0.0 }
 0x323   : > { %3822 = vadd.xlane.f32.xlu1 %v3821_v61  ;;  %3825 = vadd.xlane.f32.xlu0 %v3824_v36  ;;  %v3742_v51 = vmul.f32 %v12261_v63, %v12261_v63 }
 0x324   : > { %v9901_v38 = vpop.f32.mrb[30].mxu0  ;;  %v3741_v35 = vmul.f32 %v12264_v1, %v12264_v1 }
 0x325   : > { %v12272_v37 = vadd.f32 %v9901_v38, %v12053_v27  ;;  %v3633_v33 = vpop.f32.mrb[31].mxu0  ;;  %v3833_v10 = vsel %vm3745_vm2, %v3742_v51, 0.0 }
 0x326   : > { %v12275_v39 = vadd.f32 %v12053_v27, %v3633_v33  ;;  %v3830_v41 = vsel %vm3745_vm2, %v3741_v35, 0.0 }
 0x327   : > { %3828 = vadd.xlane.f32.xlu1 %v3827_v40  ;;  %3831 = vadd.xlane.f32.xlu0 %v3830_v41  ;;  %v3744_v27 = vmul.f32 %v12272_v37, %v12272_v37 }
 0x328   : > { %v3743_v7 = vmul.f32 %v12275_v39, %v12275_v39 }
 0x329   : > { %v3839_v15 = vsel %vm3745_vm2, %v3744_v27, 0.0 }
 0x32a   : > { %v3836_v13 = vsel %vm3745_vm2, %v3743_v7, 0.0 }
 0x32b   : > { %3834 = vadd.xlane.f32.xlu1 %v3833_v10  ;;  %3837 = vadd.xlane.f32.xlu0 %v3836_v13 }
 0x32f   : > { %3840 = vadd.xlane.f32.xlu1 %v3839_v15 }
 0x37c   : > { %v3748_v19 = vpop.xlane.xlu0 %3747 }
 0x37d   : > { %v3843_v20 = vmul.f32 0.125, %v3748_v19 }
 0x37f   : > { %v3875_v21 = vadd.f32 1e-08, %v3843_v20 }
 0x380   : > { %v3751_v25 = vpop.xlane.xlu0 %3750  ;;  %v3754_v42 = vpop.xlane.xlu1 %3753 }
 0x381   : > { %10874 = vrsqrt.f32 %v3875_v21  ;;  %v3844_v43 = vmul.f32 0.125, %v3751_v25  ;;  %v3845_v44 = vmul.f32 0.125, %v3754_v42 }
 0x383   : > { %v3876_v45 = vadd.f32 1e-08, %v3844_v43  ;;  %v3877_v46 = vadd.f32 1e-08, %v3845_v44 }
 0x384   : > { %v3757_v49 = vpop.xlane.xlu1 %3756  ;;  %v3760_v28 = vpop.xlane.xlu0 %3759 }
 0x385   : > { %10876 = vrsqrt.f32 %v3876_v45  ;;  %v3846_v50 = vmul.f32 0.125, %v3757_v49  ;;  %v3847_v30 = vmul.f32 0.125, %v3760_v28 }
 0x386   : > { %10878 = vrsqrt.f32 %v3877_v46 }
 0x387   : > { %v3878_v56 = vadd.f32 1e-08, %v3846_v50  ;;  %v3879_v57 = vadd.f32 1e-08, %v3847_v30 }
 0x388   : > { %v3763_v58 = vpop.xlane.xlu1 %3762  ;;  %v3766_v61 = vpop.xlane.xlu0 %3765 }
 0x389   : > { %10880 = vrsqrt.f32 %v3878_v56  ;;  %v3848_v36 = vmul.f32 0.125, %v3763_v58  ;;  %v3849_v5 = vmul.f32 0.125, %v3766_v61 }
 0x38a   : > { %10882 = vrsqrt.f32 %v3879_v57 }
 0x38b   : > { %v10875_v38 = vpop.eup %10874  ;;  %v3880_v35 = vadd.f32 1e-08, %v3848_v36  ;;  %v3881_v33 = vadd.f32 1e-08, %v3849_v5 }
 0x38c   : > { %v3939_v40 = vmul.f32 %v10875_v38, %v12059_v54  ;;  %v3769_v41 = vpop.xlane.xlu1 %3768  ;;  %v3772_v51 = vpop.xlane.xlu0 %3771 }
 0x38d   : > { %10884 = vrsqrt.f32 %v3880_v35  ;;  %v3850_v7 = vmul.f32 0.125, %v3769_v41  ;;  %v3851_v10 = vmul.f32 0.125, %v3772_v51 }
 0x38e   : > { %vm3971_vm4 = vcmp.ge.f32.partialorder %v3939_v40, 0.0  ;;  %v4003_v13 = vmul.f32 0.2, %v3939_v40  ;;  %10886 = vrsqrt.f32 %v3881_v33 }
 0x38f   : > { %v10877_v27 = vpop.eup %10876  ;;  %v3882_v14 = vadd.f32 1e-08, %v3850_v7  ;;  %v3883_v15 = vadd.f32 1e-08, %v3851_v10 }
 0x390   : > { %v10879_v19 = vpop.eup %10878  ;;  %v4035_v20 = vsel %vm3971_vm4, %v3939_v40, %v4003_v13  ;;  %v3940_v21 = vmul.f32 %v10877_v27, %v12056_v52  ;;  %v3775_v25 = vpop.xlane.xlu1 %3774 }
 0x391   : > { %v3778_v42 = vpop.xlane.xlu0 %3777  ;;  %4123 = vst.msk [vmem:[#allocation2 + $0x19] sm:$0xff] %vm3745_vm2, %v4035_v20  ;;  %v3941_v54 = vmul.f32 %v10879_v19, %v12069_v60  ;;  %10888 = vrsqrt.f32 %v3882_v14  ;;  %v3852_v43 = vmul.f32 0.125, %v3775_v25 }
 0x392   : > { %v3853_v44 = vmul.f32 0.125, %v3778_v42  ;;  %vm3972_vm5 = vcmp.ge.f32.partialorder %v3940_v21, 0.0  ;;  %v4004_v45 = vmul.f32 0.2, %v3940_v21  ;;  %10890 = vrsqrt.f32 %v3883_v15 }
 0x393   : > { %v10881_v46 = vpop.eup %10880  ;;  %vm3973_vm6 = vcmp.ge.f32.partialorder %v3941_v54, 0.0  ;;  %v4005_v49 = vmul.f32 0.2, %v3941_v54  ;;  %v3884_v28 = vadd.f32 1e-08, %v3852_v43 }
 0x394   : > { %v10883_v50 = vpop.eup %10882  ;;  %v4036_v30 = vsel %vm3972_vm5, %v3940_v21, %v4004_v45  ;;  %v3942_v52 = vmul.f32 %v10881_v46, %v12066_v59  ;;  %v3885_v56 = vadd.f32 1e-08, %v3853_v44  ;;  %v3781_v57 = vpop.xlane.xlu1 %3780 }
 0x395   : > { %v3784_v58 = vpop.xlane.xlu0 %3783  ;;  %4124 = vst.msk [vmem:[#allocation2 + $0x21] sm:$0xff] %vm3745_vm2, %v4036_v30  ;;  %v4037_v60 = vsel %vm3973_vm6, %v3941_v54, %v4005_v49  ;;  %v3943_v61 = vmul.f32 %v10883_v50, %v12079_v3  ;;  %10892 = vrsqrt.f32 %v3884_v28  ;;  %v3854_v36 = vmul.f32 0.125, %v3781_v57 }
 0x396   : > { %4125 = vst.msk [vmem:[#allocation2 + $0x31] sm:$0xff] %vm3745_vm2, %v4037_v60  ;;  %vm3974_vm7 = vcmp.ge.f32.partialorder %v3942_v52, 0.0  ;;  %v4006_v5 = vmul.f32 0.2, %v3942_v52  ;;  %10894 = vrsqrt.f32 %v3885_v56  ;;  %v3855_v38 = vmul.f32 0.125, %v3784_v58 }
 0x397   : > { %v10885_v35 = vpop.eup %10884  ;;  %vm3975_vm8 = vcmp.ge.f32.partialorder %v3943_v61, 0.0  ;;  %v4007_v33 = vmul.f32 0.2, %v3943_v61  ;;  %v3886_v59 = vadd.f32 1e-08, %v3854_v36 }
 0x398   : > { %v10887_v40 = vpop.eup %10886  ;;  %v4038_v41 = vsel %vm3974_vm7, %v3942_v52, %v4006_v5  ;;  %v3944_v51 = vmul.f32 %v10885_v35, %v12076_v2  ;;  %v3887_v7 = vadd.f32 1e-08, %v3855_v38  ;;  %v3787_v10 = vpop.xlane.xlu1 %3786  ;;  %v12306_v3 = vld [vmem:[#allocation2 + $0x19] sm:$0xff] }
 0x399   : > { %v3790_v13 = vpop.xlane.xlu0 %3789  ;;  %4126 = vst.msk [vmem:[#allocation2 + $0x39] sm:$0xff] %vm3745_vm2, %v4038_v41  ;;  %v4039_v27 = vsel %vm3975_vm8, %v3943_v61, %v4007_v33  ;;  %v3945_v14 = vmul.f32 %v10887_v40, %v12090_v6  ;;  %10896 = vrsqrt.f32 %v3886_v59  ;;  %v3856_v15 = vmul.f32 0.125, %v3787_v10  ;;  %9907 = vmatprep.mubr.msk.f32.mxu1 %vm3745_vm2, %v12306_v3 }
 0x39a   : > { %4127 = vst.msk [vmem:[#allocation2 + $0x49] sm:$0xff] %vm3745_vm2, %v4039_v27  ;;  %vm3976_vm9 = vcmp.ge.f32.partialorder %v3944_v51, 0.0  ;;  %v4008_v19 = vmul.f32 0.2, %v3944_v51  ;;  %10898 = vrsqrt.f32 %v3887_v7  ;;  %v3857_v2 = vmul.f32 0.125, %v3790_v13 }
 0x39b   : > { %v10889_v20 = vpop.eup %10888  ;;  %vm3977_vm10 = vcmp.ge.f32.partialorder %v3945_v14, 0.0  ;;  %v4009_v21 = vmul.f32 0.2, %v3945_v14  ;;  %v3888_v25 = vadd.f32 1e-08, %v3856_v15 }
 0x39c   : > { %v10891_v42 = vpop.eup %10890  ;;  %v4040_v54 = vsel %vm3976_vm9, %v3944_v51, %v4008_v19  ;;  %v3946_v43 = vmul.f32 %v10889_v20, %v12087_v34  ;;  %v3889_v6 = vadd.f32 1e-08, %v3857_v2  ;;  %v3793_v44 = vpop.xlane.xlu1 %3792  ;;  %v12314_v46 = vld [vmem:[#allocation2 + $0x21] sm:$0xff] }
 0x39d   : > { %v3796_v45 = vpop.xlane.xlu0 %3795  ;;  %4128 = vst.msk [vmem:[#allocation2 + $0x51] sm:$0xff] %vm3745_vm2, %v4040_v54  ;;  %v4041_v49 = vsel %vm3977_vm10, %v3945_v14, %v4009_v21  ;;  %v3947_v28 = vmul.f32 %v10891_v42, %v12104_v9  ;;  %10900 = vrsqrt.f32 %v3888_v25  ;;  %v3858_v50 = vmul.f32 0.125, %v3793_v44  ;;  %9908 = vmatmul.mubr.msk.f32.gmra.mrb[2].mxu1 %vm3745_vm2, %v12314_v46  ;;  %v12320_v30 = vld [vmem:[#allocation2 + $0x31] sm:$0xff] }
 0x39e   : > { %4129 = vst.msk [vmem:[#allocation2 + $0x61] sm:$0xff] %vm3745_vm2, %v4041_v49  ;;  %vm3978_vm11 = vcmp.ge.f32.partialorder %v3946_v43, 0.0  ;;  %v4010_v34 = vmul.f32 0.2, %v3946_v43  ;;  %10902 = vrsqrt.f32 %v3889_v6  ;;  %v3859_v52 = vmul.f32 0.125, %v3796_v45  ;;  %9910 = vmatprep.mubr.msk.f32.mxu1 %vm3745_vm2, %v12320_v30 }
 0x39f   : > { %v10893_v56 = vpop.eup %10892  ;;  %vm3979_vm12 = vcmp.ge.f32.partialorder %v3947_v28, 0.0  ;;  %v4011_v57 = vmul.f32 0.2, %v3947_v28  ;;  %v3890_v9 = vadd.f32 1e-08, %v3858_v50 }
 0x3a0   : > { %v10895_v58 = vpop.eup %10894  ;;  %v4042_v60 = vsel %vm3978_vm11, %v3946_v43, %v4010_v34  ;;  %v3948_v61 = vmul.f32 %v10893_v56, %v12101_v8  ;;  %v3891_v36 = vadd.f32 1e-08, %v3859_v52  ;;  %v3799_v5 = vpop.xlane.xlu1 %3798  ;;  %v12326_v35 = vld [vmem:[#allocation2 + $0x39] sm:$0xff] }
 0x3a1   : > { %v3802_v38 = vpop.xlane.xlu0 %3801  ;;  %4130 = vst.msk [vmem:[#allocation2 + $0x69] sm:$0xff] %vm3745_vm2, %v4042_v60  ;;  %v4043_v33 = vsel %vm3979_vm12, %v3947_v28, %v4011_v57  ;;  %v3949_v59 = vmul.f32 %v10895_v58, %v12115_v17  ;;  %10904 = vrsqrt.f32 %v3890_v9  ;;  %v3860_v40 = vmul.f32 0.125, %v3799_v5  ;;  %9911 = vmatmul.mubr.msk.f32.gmra.mrb[4].mxu1 %vm3745_vm2, %v12326_v35  ;;  %v12332_v41 = vld [vmem:[#allocation2 + $0x49] sm:$0xff] }
 0x3a2   : > { %4131 = vst.msk [vmem:[#allocation2 + $0x79] sm:$0xff] %vm3745_vm2, %v4043_v33  ;;  %vm3980_vm13 = vcmp.ge.f32.partialorder %v3948_v61, 0.0  ;;  %v4012_v8 = vmul.f32 0.2, %v3948_v61  ;;  %10906 = vrsqrt.f32 %v3891_v36  ;;  %v3861_v51 = vmul.f32 0.125, %v3802_v38  ;;  %9913 = vmatprep.mubr.msk.f32.mxu1 %vm3745_vm2, %v12332_v41 }
 0x3a3   : > { %v10897_v7 = vpop.eup %10896  ;;  %vm3981_vm14 = vcmp.ge.f32.partialorder %v3949_v59, 0.0  ;;  %v4013_v10 = vmul.f32 0.2, %v3949_v59  ;;  %v3892_v17 = vadd.f32 1e-08, %v3860_v40 }
 0x3a4   : > { %v10899_v13 = vpop.eup %10898  ;;  %v4044_v27 = vsel %vm3980_vm13, %v3948_v61, %v4012_v8  ;;  %v3950_v14 = vmul.f32 %v10897_v7, %v12112_v16  ;;  %v3893_v15 = vadd.f32 1e-08, %v3861_v51  ;;  %v3805_v19 = vpop.xlane.xlu1 %3804  ;;  %v12338_v20 = vld [vmem:[#allocation2 + $0x51] sm:$0xff] }
 0x3a5   : > { %v3808_v2 = vpop.xlane.xlu0 %3807  ;;  %4132 = vst.msk [vmem:[#allocation2 + $0x81] sm:$0xff] %vm3745_vm2, %v4044_v27  ;;  %v4045_v21 = vsel %vm3981_vm14, %v3949_v59, %v4013_v10  ;;  %v3951_v25 = vmul.f32 %v10899_v13, %v12126_v24  ;;  %10908 = vrsqrt.f32 %v3892_v17  ;;  %v3862_v42 = vmul.f32 0.125, %v3805_v19  ;;  %9914 = vmatmul.mubr.msk.f32.gmra.mrb[6].mxu1 %vm3745_vm2, %v12338_v20  ;;  %v12344_v54 = vld [vmem:[#allocation2 + $0x61] sm:$0xff] }
 0x3a6   : > { %4133 = vst.msk [vmem:[#allocation2 + $0x91] sm:$0xff] %vm3745_vm2, %v4045_v21  ;;  %vm3982_vm15 = vcmp.ge.f32.partialorder %v3950_v14, 0.0  ;;  %v4014_v16 = vmul.f32 0.2, %v3950_v14  ;;  %10910 = vrsqrt.f32 %v3893_v15  ;;  %v3863_v43 = vmul.f32 0.125, %v3808_v2  ;;  %9916 = vmatprep.mubr.msk.f32.mxu1 %vm3745_vm2, %v12344_v54 }
 0x3a7   : > { %v10901_v6 = vpop.eup %10900  ;;  %vm3983_vm0 = vcmp.ge.f32.partialorder %v3951_v25, 0.0  ;;  %v4015_v44 = vmul.f32 0.2, %v3951_v25  ;;  %v3894_v24 = vadd.f32 1e-08, %v3862_v42 }
 0x3a8   : > { %v10903_v45 = vpop.eup %10902  ;;  %v4046_v49 = vsel %vm3982_vm15, %v3950_v14, %v4014_v16  ;;  %v3952_v28 = vmul.f32 %v10901_v6, %v12123_v22  ;;  %v3895_v50 = vadd.f32 1e-08, %v3863_v43  ;;  %v3811_v34 = vpop.xlane.xlu1 %3810  ;;  %v12350_v56 = vld [vmem:[#allocation2 + $0x69] sm:$0xff] }
 0x3a9   : > { %v3814_v52 = vpop.xlane.xlu0 %3813  ;;  %4134 = vst.msk [vmem:[#allocation2 + $0x99] sm:$0xff] %vm3745_vm2, %v4046_v49  ;;  %v4047_v57 = vsel %vm3983_vm0, %v3951_v25, %v4015_v44  ;;  %v3953_v9 = vmul.f32 %v10903_v45, %v12140_v48  ;;  %10912 = vrsqrt.f32 %v3894_v24  ;;  %v3864_v58 = vmul.f32 0.125, %v3811_v34  ;;  %9917 = vmatmul.mubr.msk.f32.gmra.mrb[8].mxu1 %vm3745_vm2, %v12350_v56  ;;  %v12356_v60 = vld [vmem:[#allocation2 + $0x79] sm:$0xff] }
 0x3aa   : > { %4135 = vst.msk [vmem:[#allocation2 + $0xa9] sm:$0xff] %vm3745_vm2, %v4047_v57  ;;  %vm3984_vm1 = vcmp.ge.f32.partialorder %v3952_v28, 0.0  ;;  %v4016_v22 = vmul.f32 0.2, %v3952_v28  ;;  %10914 = vrsqrt.f32 %v3895_v50  ;;  %v3865_v61 = vmul.f32 0.125, %v3814_v52  ;;  %9919 = vmatprep.mubr.msk.f32.mxu1 %vm3745_vm2, %v12356_v60 }
 0x3ab   : > { %v10905_v36 = vpop.eup %10904  ;;  %vm3985_vm3 = vcmp.ge.f32.partialorder %v3953_v9, 0.0  ;;  %v4017_v5 = vmul.f32 0.2, %v3953_v9  ;;  %v3896_v48 = vadd.f32 1e-08, %v3864_v58 }
 0x3ac   : > { %v10907_v38 = vpop.eup %10906  ;;  %v4048_v33 = vsel %vm3984_vm1, %v3952_v28, %v4016_v22  ;;  %v3954_v59 = vmul.f32 %v10905_v36, %v12137_v47  ;;  %v3897_v40 = vadd.f32 1e-08, %v3865_v61  ;;  %v3817_v8 = vpop.xlane.xlu1 %3816  ;;  %v12362_v7 = vld [vmem:[#allocation2 + $0x81] sm:$0xff] }
 0x3ad   : > { %v3820_v51 = vpop.xlane.xlu0 %3819  ;;  %4136 = vst.msk [vmem:[#allocation2 + $0xb1] sm:$0xff] %vm3745_vm2, %v4048_v33  ;;  %v4049_v10 = vsel %vm3985_vm3, %v3953_v9, %v4017_v5  ;;  %v3955_v17 = vmul.f32 %v10907_v38, %v12151_v55  ;;  %10916 = vrsqrt.f32 %v3896_v48  ;;  %v3866_v13 = vmul.f32 0.125, %v3817_v8  ;;  %9920 = vmatmul.mubr.msk.f32.gmra.mrb[10].mxu1 %vm3745_vm2, %v12362_v7  ;;  %v12368_v27 = vld [vmem:[#allocation2 + $0x91] sm:$0xff] }
 0x3ae   : > { %4137 = vst.msk [vmem:[#allocation2 + $0xc1] sm:$0xff] %vm3745_vm2, %v4049_v10  ;;  %vm3986_vm4 = vcmp.ge.f32.partialorder %v3954_v59, 0.0  ;;  %v4018_v47 = vmul.f32 0.2, %v3954_v59  ;;  %10918 = vrsqrt.f32 %v3897_v40  ;;  %v3867_v14 = vmul.f32 0.125, %v3820_v51  ;;  %9922 = vmatprep.mubr.msk.f32.mxu1 %vm3745_vm2, %v12368_v27 }
 0x3af   : > { %v10909_v15 = vpop.eup %10908  ;;  %vm3987_vm5 = vcmp.ge.f32.partialorder %v3955_v17, 0.0  ;;  %v4019_v19 = vmul.f32 0.2, %v3955_v17  ;;  %v3898_v55 = vadd.f32 1e-08, %v3866_v13 }
 0x3b0   : > { %v10911_v2 = vpop.eup %10910  ;;  %v4050_v21 = vsel %vm3986_vm4, %v3954_v59, %v4018_v47  ;;  %v3956_v25 = vmul.f32 %v10909_v15, %v12148_v53  ;;  %v3899_v42 = vadd.f32 1e-08, %v3867_v14  ;;  %v3823_v16 = vpop.xlane.xlu1 %3822  ;;  %v12374_v6 = vld [vmem:[#allocation2 + $0x99] sm:$0xff] }
 0x3b1   : > { %v3826_v43 = vpop.xlane.xlu0 %3825  ;;  %4138 = vst.msk [vmem:[#allocation2 + $0xc9] sm:$0xff] %vm3745_vm2, %v4050_v21  ;;  %v4051_v44 = vsel %vm3987_vm5, %v3955_v17, %v4019_v19  ;;  %v3957_v24 = vmul.f32 %v10911_v2, %v12162_v0  ;;  %10920 = vrsqrt.f32 %v3898_v55  ;;  %v3868_v45 = vmul.f32 0.125, %v3823_v16  ;;  %9923 = vmatmul.mubr.msk.f32.gmra.mrb[12].mxu1 %vm3745_vm2, %v12374_v6  ;;  %v12380_v49 = vld [vmem:[#allocation2 + $0xa9] sm:$0xff] }
 0x3b2   : > { %4139 = vst.msk [vmem:[#allocation2 + $0xd9] sm:$0xff] %vm3745_vm2, %v4051_v44  ;;  %vm3988_vm6 = vcmp.ge.f32.partialorder %v3956_v25, 0.0  ;;  %v4020_v53 = vmul.f32 0.2, %v3956_v25  ;;  %10922 = vrsqrt.f32 %v3899_v42  ;;  %v3869_v28 = vmul.f32 0.125, %v3826_v43  ;;  %9925 = vmatprep.mubr.msk.f32.mxu1 %vm3745_vm2, %v12380_v49 }
 0x3b3   : > { %v10913_v50 = vpop.eup %10912  ;;  %vm3989_vm7 = vcmp.ge.f32.partialorder %v3957_v24, 0.0  ;;  %v4021_v34 = vmul.f32 0.2, %v3957_v24  ;;  %v3900_v0 = vadd.f32 1e-08, %v3868_v45 }
 0x3b4   : > { %v10915_v52 = vpop.eup %10914  ;;  %v4052_v57 = vsel %vm3988_vm6, %v3956_v25, %v4020_v53  ;;  %v3958_v9 = vmul.f32 %v10913_v50, %v12159_v62  ;;  %v3901_v58 = vadd.f32 1e-08, %v3869_v28  ;;  %v3829_v22 = vpop.xlane.xlu1 %3828  ;;  %v12386_v36 = vld [vmem:[#allocation2 + $0xb1] sm:$0xff] }
 0x3b5   : > { %v3832_v61 = vpop.xlane.xlu0 %3831  ;;  %4140 = vst.msk [vmem:[#allocation2 + $0xe1] sm:$0xff] %vm3745_vm2, %v4052_v57  ;;  %v4053_v5 = vsel %vm3989_vm7, %v3957_v24, %v4021_v34  ;;  %v3959_v48 = vmul.f32 %v10915_v52, %v12212_v4  ;;  %10924 = vrsqrt.f32 %v3900_v0  ;;  %v3870_v38 = vmul.f32 0.125, %v3829_v22  ;;  %9926 = vmatmul.mubr.msk.f32.gmra.mrb[14].mxu1 %vm3745_vm2, %v12386_v36  ;;  %v12392_v33 = vld [vmem:[#allocation2 + $0xc1] sm:$0xff] }
 0x3b6   : > { %4141 = vst.msk [vmem:[#allocation2 + $0xf1] sm:$0xff] %vm3745_vm2, %v4053_v5  ;;  %vm3990_vm8 = vcmp.ge.f32.partialorder %v3958_v9, 0.0  ;;  %v4022_v62 = vmul.f32 0.2, %v3958_v9  ;;  %10926 = vrsqrt.f32 %v3901_v58  ;;  %v3871_v59 = vmul.f32 0.125, %v3832_v61  ;;  %9928 = vmatprep.mubr.msk.f32.mxu1 %vm3745_vm2, %v12392_v33 }
 0x3b7   : > { %v10917_v40 = vpop.eup %10916  ;;  %vm3991_vm9 = vcmp.ge.f32.partialorder %v3959_v48, 0.0  ;;  %v4023_v8 = vmul.f32 0.2, %v3959_v48  ;;  %v3902_v4 = vadd.f32 1e-08, %v3870_v38 }
 0x3b8   : > { %v10919_v51 = vpop.eup %10918  ;;  %v4054_v10 = vsel %vm3990_vm8, %v3958_v9, %v4022_v62  ;;  %v3960_v17 = vmul.f32 %v10917_v40, %v12209_v31  ;;  %v3903_v13 = vadd.f32 1e-08, %v3871_v59  ;;  %v3835_v47 = vpop.xlane.xlu1 %3834  ;;  %v12398_v15 = vld [vmem:[#allocation2 + $0xc9] sm:$0xff] }
 0x3b9   : > { %v3838_v14 = vpop.xlane.xlu0 %3837  ;;  %4142 = vst.msk [vmem:[#allocation2 + $0xf9] sm:$0xff] %vm3745_vm2, %v4054_v10  ;;  %v4055_v19 = vsel %vm3991_vm9, %v3959_v48, %v4023_v8  ;;  %v3961_v55 = vmul.f32 %v10919_v51, %v12223_v12  ;;  %10928 = vrsqrt.f32 %v3902_v4  ;;  %v3872_v2 = vmul.f32 0.125, %v3835_v47  ;;  %9929 = vmatmul.mubr.msk.f32.gmra.mrb[16].mxu1 %vm3745_vm2, %v12398_v15  ;;  %v12404_v21 = vld [vmem:[#allocation2 + $0xd9] sm:$0xff] }
 0x3ba   : > { %4143 = vst.msk [vmem:[#allocation2 + $0x109] sm:$0xff] %vm3745_vm2, %v4055_v19  ;;  %vm3992_vm10 = vcmp.ge.f32.partialorder %v3960_v17, 0.0  ;;  %v4024_v31 = vmul.f32 0.2, %v3960_v17  ;;  %10930 = vrsqrt.f32 %v3903_v13  ;;  %v3873_v25 = vmul.f32 0.125, %v3838_v14  ;;  %9931 = vmatprep.mubr.msk.f32.mxu1 %vm3745_vm2, %v12404_v21 }
 0x3bb   : > { %v10921_v42 = vpop.eup %10920  ;;  %vm3993_vm11 = vcmp.ge.f32.partialorder %v3961_v55, 0.0  ;;  %v4025_v16 = vmul.f32 0.2, %v3961_v55  ;;  %v3904_v12 = vadd.f32 1e-08, %v3872_v2 }
 0x3bc   : > { %v10923_v43 = vpop.eup %10922  ;;  %v4056_v44 = vsel %vm3992_vm10, %v3960_v17, %v4024_v31  ;;  %v3962_v24 = vmul.f32 %v10921_v42, %v12220_v11  ;;  %v3905_v45 = vadd.f32 1e-08, %v3873_v25  ;;  %v3841_v53 = vpop.xlane.xlu1 %3840  ;;  %v12410_v28 = vld [vmem:[#allocation2 + $0xe1] sm:$0xff] }
 0x3bd   : > { %4144 = vst.msk [vmem:[#allocation2 + $0x111] sm:$0xff] %vm3745_vm2, %v4056_v44  ;;  %v4057_v50 = vsel %vm3993_vm11, %v3961_v55, %v4025_v16  ;;  %v3963_v34 = vmul.f32 %v10923_v43, %v12238_v26  ;;  %10932 = vrsqrt.f32 %v3904_v12  ;;  %v3874_v0 = vmul.f32 0.125, %v3841_v53  ;;  %9932 = vmatmul.mubr.msk.f32.gmra.mrb[18].mxu1 %vm3745_vm2, %v12410_v28  ;;  %v12416_v52 = vld [vmem:[#allocation2 + $0xf1] sm:$0xff] }
 0x3be   : > { %4145 = vst.msk [vmem:[#allocation2 + $0x121] sm:$0xff] %vm3745_vm2, %v4057_v50  ;;  %vm3994_vm12 = vcmp.ge.f32.partialorder %v3962_v24, 0.0  ;;  %v4026_v11 = vmul.f32 0.2, %v3962_v24  ;;  %10934 = vrsqrt.f32 %v3905_v45  ;;  %9934 = vmatprep.mubr.msk.f32.mxu1 %vm3745_vm2, %v12416_v52 }
 0x3bf   : > { %v10925_v57 = vpop.eup %10924  ;;  %vm3995_vm13 = vcmp.ge.f32.partialorder %v3963_v34, 0.0  ;;  %v4027_v9 = vmul.f32 0.2, %v3963_v34  ;;  %v3906_v58 = vadd.f32 1e-08, %v3874_v0  ;;  %v4155_v0 = vld [vmem:[#allocation2] sm:$0xff] }
 0x3c0   : > { %v10927_v26 = vpop.eup %10926  ;;  %v4058_v22 = vsel %vm3994_vm12, %v3962_v24, %v4026_v11  ;;  %v3964_v61 = vmul.f32 %v10925_v57, %v12235_v23  ;;  %v12422_v5 = vld [vmem:[#allocation2 + $0xf9] sm:$0xff]  ;;  %v4156_v57 = vld [vmem:[#allocation2 + $0x8] sm:$0xff] }
 0x3c1   : > { %4146 = vst.msk [vmem:[#allocation2 + $0x129] sm:$0xff] %vm3745_vm2, %v4058_v22  ;;  %v4059_v48 = vsel %vm3995_vm13, %v3963_v34, %v4027_v9  ;;  %v3965_v38 = vmul.f32 %v10927_v26, %v12253_v32  ;;  %10936 = vrsqrt.f32 %v3906_v58  ;;  %9935 = vmatmul.mubr.msk.f32.gmra.mrb[20].mxu1 %vm3745_vm2, %v12422_v5  ;;  %v12428_v62 = vld [vmem:[#allocation2 + $0x109] sm:$0xff]  ;;  %v12485_v9 = vld [vmem:[%s13438_s3 + $0x18] sm:$0xff]  ;;  %v12494_v26 = vld [vmem:[#allocation2 + $0x20] sm:$0xff] }
 0x3c2   : > { %4147 = vst.msk [vmem:[#allocation2 + $0x139] sm:$0xff] %vm3745_vm2, %v4059_v48  ;;  %vm3996_vm14 = vcmp.ge.f32.partialorder %v3964_v61, 0.0  ;;  %v4028_v59 = vmul.f32 0.2, %v3964_v61  ;;  %9937 = vmatprep.mubr.msk.f32.mxu1 %vm3745_vm2, %v12428_v62  ;;  %v12488_v58 = vld [vmem:[#allocation2 + $0x18] sm:$0xff]  ;;  %v12498_v22 = vld [vmem:[#allocation2 + $0x30] sm:$0xff] }
 0x3c3   : > { %v10929_v23 = vpop.eup %10928  ;;  %vm3997_vm15 = vcmp.ge.f32.partialorder %v3965_v38, 0.0  ;;  %v4029_v40 = vmul.f32 0.2, %v3965_v38  ;;  %v12510_v48 = vld [vmem:[#allocation2 + $0x50] sm:$0xff] }
 0x3c4   : > { %v10931_v8 = vpop.eup %10930  ;;  %v4060_v4 = vsel %vm3996_vm14, %v3964_v61, %v4028_v59  ;;  %v3966_v32 = vmul.f32 %v10929_v23, %v12250_v29  ;;  %v12434_v51 = vld [vmem:[#allocation2 + $0x111] sm:$0xff]  ;;  %v12518_v59 = vld [vmem:[#allocation2 + $0x68] sm:$0xff] }
 0x3c5   : > { %4148 = vst.msk [vmem:[#allocation2 + $0x141] sm:$0xff] %vm3745_vm2, %v4060_v4  ;;  %v4061_v10 = vsel %vm3997_vm15, %v3965_v38, %v4029_v40  ;;  %v3967_v17 = vmul.f32 %v10931_v8, %v12264_v1  ;;  %9938 = vmatmul.mubr.msk.f32.gmra.mrb[22].mxu1 %vm3745_vm2, %v12434_v51  ;;  %v12440_v13 = vld [vmem:[#allocation2 + $0x121] sm:$0xff]  ;;  %v12502_v61 = vld [vmem:[#allocation2 + $0x38] sm:$0xff]  ;;  %v12530_v8 = vld [vmem:[#allocation2 + $0x90] sm:$0xff] }
 0x3c6   : > { %4149 = vst.msk [vmem:[#allocation2 + $0x151] sm:$0xff] %vm3745_vm2, %v4061_v10  ;;  %vm3998_vm0 = vcmp.ge.f32.partialorder %v3966_v32, 0.0  ;;  %v4030_v47 = vmul.f32 0.2, %v3966_v32  ;;  %9940 = vmatprep.mubr.msk.f32.mxu1 %vm3745_vm2, %v12440_v13  ;;  %v12514_v38 = vld [vmem:[#allocation2 + $0x60] sm:$0xff]  ;;  %v12522_v23 = vld [vmem:[#allocation2 + $0x78] sm:$0xff] }
 0x3c7   : > { %v10933_v29 = vpop.eup %10932  ;;  %vm3999_vm1 = vcmp.ge.f32.partialorder %v3967_v17, 0.0  ;;  %v4031_v14 = vmul.f32 0.2, %v3967_v17  ;;  %v12526_v40 = vld [vmem:[#allocation2 + $0x80] sm:$0xff]  ;;  %v12534_v4 = vld [vmem:[#allocation2 + $0x98] sm:$0xff]  ;;  %v12542_v10 = vld [vmem:[#allocation2 + $0xb0] sm:$0xff] }
 0x3c8   : > { %v10935_v19 = vpop.eup %10934  ;;  %v4062_v55 = vsel %vm3998_vm0, %v3966_v32, %v4030_v47  ;;  %v3968_v2 = vmul.f32 %v10933_v29, %v12261_v63  ;;  %v12446_v1 = vld [vmem:[#allocation2 + $0x129] sm:$0xff]  ;;  %v12554_v29 = vld [vmem:[#allocation2 + $0xd8] sm:$0xff] }
 0x3c9   : > { %4150 = vst.msk [vmem:[#allocation2 + $0x159] sm:$0xff] %vm3745_vm2, %v4062_v55  ;;  %v4063_v31 = vsel %vm3999_vm1, %v3967_v17, %v4031_v14  ;;  %v3969_v25 = vmul.f32 %v10935_v19, %v12275_v39  ;;  %9941 = vmatmul.mubr.msk.f32.gmra.mrb[24].mxu1 %vm3745_vm2, %v12446_v1  ;;  %v12452_v42 = vld [vmem:[#allocation2 + $0x139] sm:$0xff]  ;;  %v12538_v32 = vld [vmem:[#allocation2 + $0xa8] sm:$0xff]  ;;  %v12562_v19 = vld [vmem:[#allocation2 + $0xf0] sm:$0xff] }
 0x3ca   : > { %4151 = vst.msk [vmem:[#allocation2 + $0x169] sm:$0xff] %vm3745_vm2, %v4063_v31  ;;  %vm4000_vm3 = vcmp.ge.f32.partialorder %v3968_v2, 0.0  ;;  %v4032_v16 = vmul.f32 0.2, %v3968_v2  ;;  %9943 = vmatprep.mubr.msk.f32.mxu1 %vm3745_vm2, %v12452_v42  ;;  %v12546_v17 = vld [vmem:[#allocation2 + $0xc0] sm:$0xff]  ;;  %v12550_v47 = vld [vmem:[#allocation2 + $0xc8] sm:$0xff] }
 0x3cb   : > { %v10937_v63 = vpop.eup %10936  ;;  %vm4001_vm4 = vcmp.ge.f32.partialorder %v3969_v25, 0.0  ;;  %v4033_v12 = vmul.f32 0.2, %v3969_v25  ;;  %v12558_v14 = vld [vmem:[#allocation2 + $0xe0] sm:$0xff]  ;;  %v12566_v55 = vld [vmem:[#allocation2 + $0xf8] sm:$0xff]  ;;  %v12574_v31 = vld [vmem:[#allocation2 + $0x110] sm:$0xff] }
 0x3cc   : > { %v4064_v43 = vsel %vm4000_vm3, %v3968_v2, %v4032_v16  ;;  %v3970_v44 = vmul.f32 %v10937_v63, %v12272_v37  ;;  %v12458_v24 = vld [vmem:[#allocation2 + $0x141] sm:$0xff]  ;;  %v12586_v63 = vld [vmem:[#allocation2 + $0x138] sm:$0xff] }
 0x3cd   : > { %4152 = vst.msk [vmem:[#allocation2 + $0x171] sm:$0xff] %vm3745_vm2, %v4064_v43  ;;  %v4065_v39 = vsel %vm4001_vm4, %v3969_v25, %v4033_v12  ;;  %9944 = vmatmul.mubr.msk.f32.gmra.mrb[26].mxu1 %vm3745_vm2, %v12458_v24  ;;  %v12463_v45 = vld [vmem:[#allocation2 + $0x151] sm:$0xff]  ;;  %v12570_v2 = vld [vmem:[#allocation2 + $0x108] sm:$0xff]  ;;  %v12578_v25 = vld [vmem:[#allocation2 + $0x120] sm:$0xff] }
 0x3ce   : > { %4153 = vst.msk [vmem:[#allocation2 + $0x181] sm:$0xff] %vm3745_vm2, %v4065_v39  ;;  %vm4002_vm5 = vcmp.ge.f32.partialorder %v3970_v44, 0.0  ;;  %v4034_v53 = vmul.f32 0.2, %v3970_v44  ;;  %9946 = vmatprep.mubr.msk.f32.mxu1 %vm3745_vm2, %v12463_v45  ;;  %v12582_v16 = vld [vmem:[#allocation2 + $0x128] sm:$0xff]  ;;  %v12590_v12 = vld [vmem:[#allocation2 + $0x140] sm:$0xff] }
 0x3cf   : > { %v12594_v43 = vld [vmem:[#allocation2 + $0x150] sm:$0xff] }
 0x3d0   : > { %v4066_v50 = vsel %vm4002_vm5, %v3970_v44, %v4034_v53  ;;  %v12468_v34 = vld [vmem:[#allocation2 + $0x159] sm:$0xff]  ;;  %v4864_v53 = vld [vmem:[#allocation2 + $0x2] sm:$0xff] }
 0x3d1   : > { %4154 = vst.msk [vmem:[#allocation2 + $0x189] sm:$0xff] %vm3745_vm2, %v4066_v50  ;;  %9947 = vmatmul.mubr.msk.f32.gmra.mrb[28].mxu1 %vm3745_vm2, %v12468_v34  ;;  %v12473_v37 = vld [vmem:[#allocation2 + $0x169] sm:$0xff]  ;;  %v12598_v44 = vld [vmem:[#allocation2 + $0x158] sm:$0xff] }
 0x3d2   : > { %13650 = vst [vmem:[#allocation11_spill] sm:$0xff] %v12473_v37  ;;  %9949 = vmatprep.mubr.msk.f32.mxu1 %vm3745_vm2, %v12473_v37  ;;  %v12602_v39 = vld [vmem:[#allocation2 + $0x168] sm:$0xff] }
 0x3d3   : > { %v12623_v37 = vld [vmem:[#allocation2 + $0x22] sm:$0xff] }
 0x3d4   : > { %v12477_v11 = vld [vmem:[#allocation2 + $0x171] sm:$0xff]  ;;  %13653 = vst [vmem:[#allocation28_spill] sm:$0xff] %v12623_v37 }
 0x3d5   : > { %13651 = vst [vmem:[#allocation12_spill] sm:$0xff] %v12477_v11  ;;  %9950 = vmatmul.mubr.msk.f32.gmra.mrb[30].mxu1 %vm3745_vm2, %v12477_v11  ;;  %v12606_v50 = vld [vmem:[#allocation2 + $0x170] sm:$0xff]  ;;  %v12617_v11 = vld [vmem:[#allocation2 + $0x1a] sm:$0xff] }
 0x3d6   : > { %9954 = vmatprep.mubr.msk.f32.mxu1 %vm3745_vm2, %v4155_v0  ;;  %v4865_v0 = vld [vmem:[#allocation2 + $0xa] sm:$0xff]  ;;  %13652 = vst [vmem:[#allocation18_spill] sm:$0xff] %v12617_v11 }
 0x3d9   : > { %9955 = vmatmul.mubr.msk.f32.vlgmr.msra.gmra.mrb[0].mxu1 %vm3745_vm2, %v4156_v57  ;;  %v12614_v57 = vld [vmem:[%s13438_s3 + $0x20] sm:$0xff] }
 0x3da   : > { %10003 = vmatpush3.msra.mxu1 %v12294_v18  ;;  %9957 = vmatprep.mubr.msk.f32.mxu1 %vm3745_vm2, %v12488_v58  ;;  %v12506_v18 = vld [vmem:[#allocation2 + $0x48] sm:$0xff] }
 0x3db   : > { %10052 = vmatprep.subr.mxu1 %v12485_v9 }
 0x3dd   : > { %9958 = vmatmul.mubr.msk.f32.gmra.mrb[2].mxu1 %vm3745_vm2, %v12494_v26 }
 0x3de   : > { %9960 = vmatprep.mubr.msk.f32.mxu1 %vm3745_vm2, %v12498_v22 }
 0x3e1   : > { %9961 = vmatmul.mubr.msk.f32.gmra.mrb[4].mxu1 %vm3745_vm2, %v12502_v61 }
 0x3e2   : > { %9963 = vmatprep.mubr.msk.f32.mxu1 %vm3745_vm2, %v12506_v18 }
 0x3e5   : > { %9964 = vmatmul.mubr.msk.f32.gmra.mrb[6].mxu1 %vm3745_vm2, %v12510_v48 }
 0x3e6   : > { %9966 = vmatprep.mubr.msk.f32.mxu1 %vm3745_vm2, %v12514_v38 }
 0x3e9   : > { %9967 = vmatmul.mubr.msk.f32.gmra.mrb[8].mxu1 %vm3745_vm2, %v12518_v59 }
 0x3ea   : > { %9969 = vmatprep.mubr.msk.f32.mxu1 %vm3745_vm2, %v12522_v23 }
 0x3ed   : > { %9970 = vmatmul.mubr.msk.f32.gmra.mrb[10].mxu1 %vm3745_vm2, %v12526_v40 }
 0x3ee   : > { %9972 = vmatprep.mubr.msk.f32.mxu1 %vm3745_vm2, %v12530_v8 }
 0x3f1   : > { %9973 = vmatmul.mubr.msk.f32.gmra.mrb[12].mxu1 %vm3745_vm2, %v12534_v4 }
 0x3f2   : > { %9975 = vmatprep.mubr.msk.f32.mxu1 %vm3745_vm2, %v12538_v32 }
 0x3f5   : > { %9976 = vmatmul.mubr.msk.f32.gmra.mrb[14].mxu1 %vm3745_vm2, %v12542_v10 }
 0x3f6   : > { %9978 = vmatprep.mubr.msk.f32.mxu1 %vm3745_vm2, %v12546_v17 }
 0x3f9   : > { %9979 = vmatmul.mubr.msk.f32.gmra.mrb[16].mxu1 %vm3745_vm2, %v12550_v47 }
 0x3fa   : > { %9981 = vmatprep.mubr.msk.f32.mxu1 %vm3745_vm2, %v12554_v29 }
 0x3fd   : > { %9982 = vmatmul.mubr.msk.f32.gmra.mrb[18].mxu1 %vm3745_vm2, %v12558_v14 }
 0x3fe   : > { %9984 = vmatprep.mubr.msk.f32.mxu1 %vm3745_vm2, %v12562_v19 }
 0x401   : > { %9985 = vmatmul.mubr.msk.f32.gmra.mrb[20].mxu1 %vm3745_vm2, %v12566_v55 }
 0x402   : > { %9987 = vmatprep.mubr.msk.f32.mxu1 %vm3745_vm2, %v12570_v2 }
 0x405   : > { %9988 = vmatmul.mubr.msk.f32.gmra.mrb[22].mxu1 %vm3745_vm2, %v12574_v31 }
 0x406   : > { %9990 = vmatprep.mubr.msk.f32.mxu1 %vm3745_vm2, %v12578_v25 }
 0x409   : > { %9991 = vmatmul.mubr.msk.f32.gmra.mrb[24].mxu1 %vm3745_vm2, %v12582_v16 }
 0x40a   : > { %9993 = vmatprep.mubr.msk.f32.mxu1 %vm3745_vm2, %v12586_v63 }
 0x40d   : > { %9994 = vmatmul.mubr.msk.f32.gmra.mrb[26].mxu1 %vm3745_vm2, %v12590_v12 }
 0x40e   : > { %9996 = vmatprep.mubr.msk.f32.mxu1 %vm3745_vm2, %v12594_v43 }
 0x411   : > { %9997 = vmatmul.mubr.msk.f32.gmra.mrb[28].mxu1 %vm3745_vm2, %v12598_v44 }
 0x412   : > { %9999 = vmatprep.mubr.msk.f32.mxu1 %vm3745_vm2, %v12602_v39 }
 0x415   : > { %10000 = vmatmul.mubr.msk.f32.gmra.mrb[30].mxu1 %vm3745_vm2, %v12606_v50 }
 0x416   : > { %10004 = vmatprep.mubr.msk.f32.mxu1 %vm3745_vm2, %v4864_v53  ;;  %v12627_v53 = vld [vmem:[#allocation2 + $0x32] sm:$0xff] }
 0x417   : > { %13654 = vst [vmem:[#allocation30_spill] sm:$0xff] %v12627_v53 }
 0x419   : > { %10005 = vmatmul.mubr.msk.f32.vlgmr.msra.gmra.mrb[0].mxu1 %vm3745_vm2, %v4865_v0  ;;  %v12631_v0 = vld [vmem:[#allocation2 + $0x3a] sm:$0xff] }
 0x41a   : > { %10053 = vmatpush3.msra.mxu1 %v12485_v9  ;;  %10007 = vmatprep.mubr.msk.f32.mxu1 %vm3745_vm2, %v12617_v11  ;;  %13655 = vst [vmem:[#allocation31_spill] sm:$0xff] %v12631_v0  ;;  %v12635_v9 = vld [vmem:[#allocation2 + $0x4a] sm:$0xff]  ;;  %v12639_v11 = vld [vmem:[#allocation2 + $0x52] sm:$0xff] }
 0x41b   : > { %10102 = vmatprep.subr.mxu1 %v12614_v57  ;;  %13656 = vst [vmem:[#allocation33_spill] sm:$0xff] %v12635_v9  ;;  %13657 = vst [vmem:[#allocation35_spill] sm:$0xff] %v12639_v11 }
 0x41d   : > { %10008 = vmatmul.mubr.msk.f32.gmra.mrb[2].mxu1 %vm3745_vm2, %v12623_v37  ;;  %v12643_v37 = vld [vmem:[#allocation2 + $0x62] sm:$0xff] }
 0x41e   : > { %10010 = vmatprep.mubr.msk.f32.mxu1 %vm3745_vm2, %v12627_v53  ;;  %13658 = vst [vmem:[#allocation3_spill] sm:$0xff] %v12643_v37  ;;  %v12647_v53 = vld [vmem:[#allocation2 + $0x6a] sm:$0xff] }
 0x41f   : > { %13659 = vst [vmem:[#allocation4_spill] sm:$0xff] %v12647_v53 }
 0x421   : > { %10011 = vmatmul.mubr.msk.f32.gmra.mrb[4].mxu1 %vm3745_vm2, %v12631_v0  ;;  %v12651_v0 = vld [vmem:[#allocation2 + $0x7a] sm:$0xff] }
 0x422   : > { %10013 = vmatprep.mubr.msk.f32.mxu1 %vm3745_vm2, %v12635_v9  ;;  %13660 = vst [vmem:[#allocation5_spill] sm:$0xff] %v12651_v0  ;;  %v12655_v9 = vld [vmem:[#allocation2 + $0x82] sm:$0xff] }
 0x423   : > { %13661 = vst [vmem:[#allocation6_spill] sm:$0xff] %v12655_v9 }
 0x425   : > { %10014 = vmatmul.mubr.msk.f32.gmra.mrb[6].mxu1 %vm3745_vm2, %v12639_v11  ;;  %v12659_v11 = vld [vmem:[#allocation2 + $0x92] sm:$0xff] }
 0x426   : > { %10016 = vmatprep.mubr.msk.f32.mxu1 %vm3745_vm2, %v12643_v37  ;;  %13662 = vst [vmem:[#allocation7_spill] sm:$0xff] %v12659_v11  ;;  %v12663_v37 = vld [vmem:[#allocation2 + $0x9a] sm:$0xff] }
 0x427   : > { %13663 = vst [vmem:[#allocation8_spill] sm:$0xff] %v12663_v37 }
 0x429   : > { %10017 = vmatmul.mubr.msk.f32.gmra.mrb[8].mxu1 %vm3745_vm2, %v12647_v53  ;;  %v12667_v53 = vld [vmem:[#allocation2 + $0xaa] sm:$0xff] }
 0x42a   : > { %10019 = vmatprep.mubr.msk.f32.mxu1 %vm3745_vm2, %v12651_v0  ;;  %13664 = vst [vmem:[#allocation9_spill] sm:$0xff] %v12667_v53  ;;  %v12671_v0 = vld [vmem:[#allocation2 + $0xb2] sm:$0xff] }
 0x42b   : > { %13665 = vst [vmem:[#allocation10_spill] sm:$0xff] %v12671_v0 }
 0x42d   : > { %10020 = vmatmul.mubr.msk.f32.gmra.mrb[10].mxu1 %vm3745_vm2, %v12655_v9  ;;  %v12675_v9 = vld [vmem:[#allocation2 + $0xc2] sm:$0xff] }
 0x42e   : > { %10022 = vmatprep.mubr.msk.f32.mxu1 %vm3745_vm2, %v12659_v11  ;;  %13666 = vst [vmem:[#allocation37_spill] sm:$0xff] %v12675_v9  ;;  %v12679_v11 = vld [vmem:[#allocation2 + $0xca] sm:$0xff] }
 0x42f   : > { %13667 = vst [vmem:[#allocation38_spill] sm:$0xff] %v12679_v11 }
 0x431   : > { %10023 = vmatmul.mubr.msk.f32.gmra.mrb[12].mxu1 %vm3745_vm2, %v12663_v37  ;;  %v12683_v37 = vld [vmem:[#allocation2 + $0xda] sm:$0xff] }
 0x432   : > { %10025 = vmatprep.mubr.msk.f32.mxu1 %vm3745_vm2, %v12667_v53  ;;  %13668 = vst [vmem:[#allocation13_spill] sm:$0xff] %v12683_v37  ;;  %v12687_v53 = vld [vmem:[#allocation2 + $0xe2] sm:$0xff] }
 0x433   : > { %13669 = vst [vmem:[#allocation14_spill] sm:$0xff] %v12687_v53 }
 0x435   : > { %10026 = vmatmul.mubr.msk.f32.gmra.mrb[14].mxu1 %vm3745_vm2, %v12671_v0  ;;  %v12691_v0 = vld [vmem:[#allocation2 + $0xf2] sm:$0xff] }
 0x436   : > { %10028 = vmatprep.mubr.msk.f32.mxu1 %vm3745_vm2, %v12675_v9  ;;  %13670 = vst [vmem:[#allocation15_spill] sm:$0xff] %v12691_v0  ;;  %v12695_v9 = vld [vmem:[#allocation2 + $0xfa] sm:$0xff] }
 0x437   : > { %13671 = vst [vmem:[#allocation16_spill] sm:$0xff] %v12695_v9 }
 0x439   : > { %10029 = vmatmul.mubr.msk.f32.gmra.mrb[16].mxu1 %vm3745_vm2, %v12679_v11  ;;  %v12699_v11 = vld [vmem:[#allocation2 + $0x10a] sm:$0xff] }
 0x43a   : > { %10031 = vmatprep.mubr.msk.f32.mxu1 %vm3745_vm2, %v12683_v37  ;;  %13672 = vst [vmem:[#allocation17_spill] sm:$0xff] %v12699_v11  ;;  %v12703_v37 = vld [vmem:[#allocation2 + $0x112] sm:$0xff] }
 0x43b   : > { %13673 = vst [vmem:[#allocation19_spill] sm:$0xff] %v12703_v37 }
 0x43d   : > { %10032 = vmatmul.mubr.msk.f32.gmra.mrb[18].mxu1 %vm3745_vm2, %v12687_v53  ;;  %v12707_v53 = vld [vmem:[#allocation2 + $0x122] sm:$0xff] }
 0x43e   : > { %10034 = vmatprep.mubr.msk.f32.mxu1 %vm3745_vm2, %v12691_v0  ;;  %13674 = vst [vmem:[#allocation20_spill] sm:$0xff] %v12707_v53  ;;  %v12711_v0 = vld [vmem:[#allocation2 + $0x12a] sm:$0xff] }
 0x43f   : > { %13675 = vst [vmem:[#allocation21_spill] sm:$0xff] %v12711_v0 }
 0x441   : > { %10035 = vmatmul.mubr.msk.f32.gmra.mrb[20].mxu1 %vm3745_vm2, %v12695_v9  ;;  %v12715_v9 = vld [vmem:[#allocation2 + $0x13a] sm:$0xff] }
 0x442   : > { %10037 = vmatprep.mubr.msk.f32.mxu1 %vm3745_vm2, %v12699_v11  ;;  %13676 = vst [vmem:[#allocation22_spill] sm:$0xff] %v12715_v9  ;;  %v12719_v11 = vld [vmem:[#allocation2 + $0x142] sm:$0xff] }
 0x445   : > { %10038 = vmatmul.mubr.msk.f32.gmra.mrb[22].mxu1 %vm3745_vm2, %v12703_v37  ;;  %v12723_v37 = vld [vmem:[#allocation2 + $0x152] sm:$0xff] }
 0x446   : > { %10040 = vmatprep.mubr.msk.f32.mxu1 %vm3745_vm2, %v12707_v53  ;;  %13677 = vst [vmem:[#allocation23_spill] sm:$0xff] %v12723_v37  ;;  %v12727_v53 = vld [vmem:[#allocation2 + $0x15a] sm:$0xff] }
 0x449   : > { %10041 = vmatmul.mubr.msk.f32.gmra.mrb[24].mxu1 %vm3745_vm2, %v12711_v0  ;;  %v12731_v0 = vld [vmem:[#allocation2 + $0x16a] sm:$0xff] }
 0x44a   : > { %10043 = vmatprep.mubr.msk.f32.mxu1 %vm3745_vm2, %v12715_v9  ;;  %13678 = vst [vmem:[#allocation24_spill] sm:$0xff] %v12731_v0  ;;  %v12735_v9 = vld [vmem:[#allocation2 + $0x172] sm:$0xff] }
 0x44d   : > { %10044 = vmatmul.mubr.msk.f32.gmra.mrb[26].mxu1 %vm3745_vm2, %v12719_v11 }
 0x44e   : > { %10046 = vmatprep.mubr.msk.f32.mxu1 %vm3745_vm2, %v12723_v37  ;;  %v8722_v37 = vld [vmem:[%s13438_s3 + $0x28] sm:$0xff] }
 0x451   : > { %10047 = vmatmul.mubr.msk.f32.gmra.mrb[28].mxu1 %vm3745_vm2, %v12727_v53 }
 0x452   : > { %10049 = vmatprep.mubr.msk.f32.mxu1 %vm3745_vm2, %v12731_v0 }
 0x455   : > { %10050 = vmatmul.mubr.msk.f32.gmra.mrb[30].mxu1 %vm3745_vm2, %v12735_v9 }
 0x456   : > { %10054 = vmatprep.mubr.msk.f32.mxu1 %vm3745_vm2, %v12488_v58  ;;  %v12803_v58 = vld [vmem:[#allocation2 + $0x180] sm:$0xff] }
 0x459   : > { %10055 = vmatmul.mubr.msk.f32.vlgmr.msra.gmra.mrb[0].mxu1 %vm3745_vm2, %v12494_v26  ;;  %v12807_v26 = vld [vmem:[#allocation2 + $0x188] sm:$0xff] }
 0x45a   : > { %10103 = vmatpush3.msra.mxu1 %v12614_v57  ;;  %10057 = vmatprep.mubr.msk.f32.mxu1 %vm3745_vm2, %v12498_v22  ;;  %v8755_v57 = vld [vmem:[%s13438_s3 + $0x30] sm:$0xff] }
 0x45b   : > { %10152 = vmatprep.subr.mxu1 %v8722_v37 }
 0x45d   : > { %10058 = vmatmul.mubr.msk.f32.gmra.mrb[2].mxu1 %vm3745_vm2, %v12502_v61 }
 0x45e   : > { %10060 = vmatprep.mubr.msk.f32.mxu1 %vm3745_vm2, %v12506_v18 }
 0x461   : > { %10061 = vmatmul.mubr.msk.f32.gmra.mrb[4].mxu1 %vm3745_vm2, %v12510_v48 }
 0x462   : > { %10063 = vmatprep.mubr.msk.f32.mxu1 %vm3745_vm2, %v12514_v38 }
 0x465   : > { %10064 = vmatmul.mubr.msk.f32.gmra.mrb[6].mxu1 %vm3745_vm2, %v12518_v59 }
 0x466   : > { %10066 = vmatprep.mubr.msk.f32.mxu1 %vm3745_vm2, %v12522_v23 }
 0x469   : > { %10067 = vmatmul.mubr.msk.f32.gmra.mrb[8].mxu1 %vm3745_vm2, %v12526_v40 }
 0x46a   : > { %10069 = vmatprep.mubr.msk.f32.mxu1 %vm3745_vm2, %v12530_v8 }
 0x46d   : > { %10070 = vmatmul.mubr.msk.f32.gmra.mrb[10].mxu1 %vm3745_vm2, %v12534_v4 }
 0x46e   : > { %10072 = vmatprep.mubr.msk.f32.mxu1 %vm3745_vm2, %v12538_v32 }
 0x471   : > { %10073 = vmatmul.mubr.msk.f32.gmra.mrb[12].mxu1 %vm3745_vm2, %v12542_v10 }
 0x472   : > { %10075 = vmatprep.mubr.msk.f32.mxu1 %vm3745_vm2, %v12546_v17 }
 0x475   : > { %10076 = vmatmul.mubr.msk.f32.gmra.mrb[14].mxu1 %vm3745_vm2, %v12550_v47 }
 0x476   : > { %10078 = vmatprep.mubr.msk.f32.mxu1 %vm3745_vm2, %v12554_v29 }
 0x479   : > { %10079 = vmatmul.mubr.msk.f32.gmra.mrb[16].mxu1 %vm3745_vm2, %v12558_v14 }
 0x47a   : > { %10081 = vmatprep.mubr.msk.f32.mxu1 %vm3745_vm2, %v12562_v19 }
 0x47d   : > { %10082 = vmatmul.mubr.msk.f32.gmra.mrb[18].mxu1 %vm3745_vm2, %v12566_v55 }
 0x47e   : > { %10084 = vmatprep.mubr.msk.f32.mxu1 %vm3745_vm2, %v12570_v2 }
 0x481   : > { %10085 = vmatmul.mubr.msk.f32.gmra.mrb[20].mxu1 %vm3745_vm2, %v12574_v31 }
 0x482   : > { %10087 = vmatprep.mubr.msk.f32.mxu1 %vm3745_vm2, %v12578_v25 }
 0x485   : > { %10088 = vmatmul.mubr.msk.f32.gmra.mrb[22].mxu1 %vm3745_vm2, %v12582_v16 }
 0x486   : > { %10090 = vmatprep.mubr.msk.f32.mxu1 %vm3745_vm2, %v12586_v63 }
 0x489   : > { %10091 = vmatmul.mubr.msk.f32.gmra.mrb[24].mxu1 %vm3745_vm2, %v12590_v12 }
 0x48a   : > { %10093 = vmatprep.mubr.msk.f32.mxu1 %vm3745_vm2, %v12594_v43 }
 0x48d   : > { %10094 = vmatmul.mubr.msk.f32.gmra.mrb[26].mxu1 %vm3745_vm2, %v12598_v44 }
 0x48e   : > { %10096 = vmatprep.mubr.msk.f32.mxu1 %vm3745_vm2, %v12602_v39 }
 0x491   : > { %10097 = vmatmul.mubr.msk.f32.gmra.mrb[28].mxu1 %vm3745_vm2, %v12606_v50 }
 0x492   : > { %10099 = vmatprep.mubr.msk.f32.mxu1 %vm3745_vm2, %v12803_v58 }
 0x495   : > { %10100 = vmatmul.mubr.msk.f32.gmra.mrb[30].mxu1 %vm3745_vm2, %v12807_v26 }
 0x496   : > { %10104 = vmatprep.mubr.msk.f32.mxu1 %vm3745_vm2, %v12306_v3  ;;  %v13679_v3 = vld [vmem:[#allocation11_spill] sm:$0xff] }
 0x499   : > { %10105 = vmatmul.mubr.msk.f32.vlgmr.msra.gmra.mrb[0].mxu1 %vm3745_vm2, %v12314_v46  ;;  %v13680_v46 = vld [vmem:[#allocation12_spill] sm:$0xff] }
 0x49a   : > { %10153 = vmatpush3.msra.mxu1 %v8722_v37  ;;  %10107 = vmatprep.mubr.msk.f32.mxu1 %vm3745_vm2, %v12320_v30  ;;  %v12874_v30 = vld [vmem:[#allocation2 + $0x181] sm:$0xff]  ;;  %v13687_v37 = vld [vmem:[#allocation3_spill] sm:$0xff] }
 0x49b   : > { %10202 = vmatprep.subr.mxu1 %v8755_v57 }
 0x49d   : > { %10108 = vmatmul.mubr.msk.f32.gmra.mrb[2].mxu1 %vm3745_vm2, %v12326_v35  ;;  %v12878_v35 = vld [vmem:[#allocation2 + $0x189] sm:$0xff] }
 0x49e   : > { %10110 = vmatprep.mubr.msk.f32.mxu1 %vm3745_vm2, %v12332_v41  ;;  %v13681_v41 = vld [vmem:[#allocation18_spill] sm:$0xff] }
 0x4a1   : > { %10111 = vmatmul.mubr.msk.f32.gmra.mrb[4].mxu1 %vm3745_vm2, %v12338_v20  ;;  %v8788_v20 = vld [vmem:[%s13438_s3 + $0x38] sm:$0xff] }
 0x4a2   : > { %10113 = vmatprep.mubr.msk.f32.mxu1 %vm3745_vm2, %v12344_v54  ;;  %v13682_v54 = vld [vmem:[#allocation28_spill] sm:$0xff] }
 0x4a5   : > { %10114 = vmatmul.mubr.msk.f32.gmra.mrb[6].mxu1 %vm3745_vm2, %v12350_v56  ;;  %v13683_v56 = vld [vmem:[#allocation30_spill] sm:$0xff] }
 0x4a6   : > { %10116 = vmatprep.mubr.msk.f32.mxu1 %vm3745_vm2, %v12356_v60  ;;  %v13684_v60 = vld [vmem:[#allocation31_spill] sm:$0xff] }
 0x4a9   : > { %10117 = vmatmul.mubr.msk.f32.gmra.mrb[8].mxu1 %vm3745_vm2, %v12362_v7  ;;  %v13685_v7 = vld [vmem:[#allocation33_spill] sm:$0xff] }
 0x4aa   : > { %10119 = vmatprep.mubr.msk.f32.mxu1 %vm3745_vm2, %v12368_v27  ;;  %v13686_v27 = vld [vmem:[#allocation35_spill] sm:$0xff] }
 0x4ad   : > { %10120 = vmatmul.mubr.msk.f32.gmra.mrb[10].mxu1 %vm3745_vm2, %v12374_v6 }
 0x4ae   : > { %10122 = vmatprep.mubr.msk.f32.mxu1 %vm3745_vm2, %v12380_v49 }
 0x4b1   : > { %10123 = vmatmul.mubr.msk.f32.gmra.mrb[12].mxu1 %vm3745_vm2, %v12386_v36 }
 0x4b2   : > { %10125 = vmatprep.mubr.msk.f32.mxu1 %vm3745_vm2, %v12392_v33 }
 0x4b5   : > { %10126 = vmatmul.mubr.msk.f32.gmra.mrb[14].mxu1 %vm3745_vm2, %v12398_v15 }
 0x4b6   : > { %10128 = vmatprep.mubr.msk.f32.mxu1 %vm3745_vm2, %v12404_v21 }
 0x4b9   : > { %10129 = vmatmul.mubr.msk.f32.gmra.mrb[16].mxu1 %vm3745_vm2, %v12410_v28 }
 0x4ba   : > { %10131 = vmatprep.mubr.msk.f32.mxu1 %vm3745_vm2, %v12416_v52 }
 0x4bd   : > { %10132 = vmatmul.mubr.msk.f32.gmra.mrb[18].mxu1 %vm3745_vm2, %v12422_v5 }
 0x4be   : > { %10134 = vmatprep.mubr.msk.f32.mxu1 %vm3745_vm2, %v12428_v62 }
 0x4c1   : > { %10135 = vmatmul.mubr.msk.f32.gmra.mrb[20].mxu1 %vm3745_vm2, %v12434_v51 }
 0x4c2   : > { %10137 = vmatprep.mubr.msk.f32.mxu1 %vm3745_vm2, %v12440_v13 }
 0x4c5   : > { %10138 = vmatmul.mubr.msk.f32.gmra.mrb[22].mxu1 %vm3745_vm2, %v12446_v1 }
 0x4c6   : > { %10140 = vmatprep.mubr.msk.f32.mxu1 %vm3745_vm2, %v12452_v42 }
 0x4c9   : > { %10141 = vmatmul.mubr.msk.f32.gmra.mrb[24].mxu1 %vm3745_vm2, %v12458_v24 }
 0x4ca   : > { %10143 = vmatprep.mubr.msk.f32.mxu1 %vm3745_vm2, %v12463_v45 }
 0x4cd   : > { %10144 = vmatmul.mubr.msk.f32.gmra.mrb[26].mxu1 %vm3745_vm2, %v12468_v34 }
 0x4ce   : > { %10146 = vmatprep.mubr.msk.f32.mxu1 %vm3745_vm2, %v13679_v3 }
 0x4d1   : > { %10147 = vmatmul.mubr.msk.f32.gmra.mrb[28].mxu1 %vm3745_vm2, %v13680_v46 }
 0x4d2   : > { %10149 = vmatprep.mubr.msk.f32.mxu1 %vm3745_vm2, %v12874_v30 }
 0x4d5   : > { %10150 = vmatmul.mubr.msk.f32.gmra.mrb[30].mxu1 %vm3745_vm2, %v12878_v35 }
 0x4d6   : > { %10154 = vmatprep.mubr.msk.f32.mxu1 %vm3745_vm2, %v13681_v41  ;;  %v13688_v41 = vld [vmem:[#allocation4_spill] sm:$0xff] }
 0x4d9   : > { %10155 = vmatmul.mubr.msk.f32.vlgmr.msra.gmra.mrb[0].mxu1 %vm3745_vm2, %v13682_v54  ;;  %v13690_v54 = vld [vmem:[#allocation6_spill] sm:$0xff] }
 0x4da   : > { %10203 = vmatpush3.msra.mxu1 %v8755_v57  ;;  %10157 = vmatprep.mubr.msk.f32.mxu1 %vm3745_vm2, %v13683_v56  ;;  %v13689_v57 = vld [vmem:[#allocation5_spill] sm:$0xff]  ;;  %v13691_v56 = vld [vmem:[#allocation7_spill] sm:$0xff] }
 0x4db   : > { %10252 = vmatprep.subr.mxu1 %v8788_v20 }
 0x4dd   : > { %10158 = vmatmul.mubr.msk.f32.gmra.mrb[2].mxu1 %vm3745_vm2, %v13684_v60  ;;  %v13692_v60 = vld [vmem:[#allocation8_spill] sm:$0xff] }
 0x4de   : > { %10160 = vmatprep.mubr.msk.f32.mxu1 %vm3745_vm2, %v13685_v7  ;;  %v13693_v7 = vld [vmem:[#allocation9_spill] sm:$0xff] }
 0x4e1   : > { %10161 = vmatmul.mubr.msk.f32.gmra.mrb[4].mxu1 %vm3745_vm2, %v13686_v27  ;;  %v13694_v27 = vld [vmem:[#allocation10_spill] sm:$0xff] }
 0x4e2   : > { %10163 = vmatprep.mubr.msk.f32.mxu1 %vm3745_vm2, %v13687_v37  ;;  %v13695_v37 = vld [vmem:[#allocation37_spill] sm:$0xff] }
 0x4e5   : > { %10164 = vmatmul.mubr.msk.f32.gmra.mrb[6].mxu1 %vm3745_vm2, %v13688_v41  ;;  %v13696_v41 = vld [vmem:[#allocation38_spill] sm:$0xff] }
 0x4e6   : > { %10166 = vmatprep.mubr.msk.f32.mxu1 %vm3745_vm2, %v13689_v57  ;;  %v13697_v57 = vld [vmem:[#allocation13_spill] sm:$0xff] }
 0x4e9   : > { %10167 = vmatmul.mubr.msk.f32.gmra.mrb[8].mxu1 %vm3745_vm2, %v13690_v54  ;;  %v13698_v54 = vld [vmem:[#allocation14_spill] sm:$0xff] }
 0x4ea   : > { %10169 = vmatprep.mubr.msk.f32.mxu1 %vm3745_vm2, %v13691_v56  ;;  %v13699_v56 = vld [vmem:[#allocation15_spill] sm:$0xff] }
 0x4ed   : > { %10170 = vmatmul.mubr.msk.f32.gmra.mrb[10].mxu1 %vm3745_vm2, %v13692_v60  ;;  %v13700_v60 = vld [vmem:[#allocation16_spill] sm:$0xff] }
 0x4ee   : > { %10172 = vmatprep.mubr.msk.f32.mxu1 %vm3745_vm2, %v13693_v7  ;;  %v13701_v7 = vld [vmem:[#allocation17_spill] sm:$0xff] }
 0x4f1   : > { %10173 = vmatmul.mubr.msk.f32.gmra.mrb[12].mxu1 %vm3745_vm2, %v13694_v27  ;;  %v13702_v27 = vld [vmem:[#allocation19_spill] sm:$0xff] }
 0x4f2   : > { %10175 = vmatprep.mubr.msk.f32.mxu1 %vm3745_vm2, %v13695_v37  ;;  %v13703_v37 = vld [vmem:[#allocation20_spill] sm:$0xff] }
 0x4f5   : > { %10176 = vmatmul.mubr.msk.f32.gmra.mrb[14].mxu1 %vm3745_vm2, %v13696_v41  ;;  %v13704_v41 = vld [vmem:[#allocation21_spill] sm:$0xff] }
 0x4f6   : > { %10178 = vmatprep.mubr.msk.f32.mxu1 %vm3745_vm2, %v13697_v57  ;;  %v13705_v57 = vld [vmem:[#allocation22_spill] sm:$0xff] }
 0x4f9   : > { %10179 = vmatmul.mubr.msk.f32.gmra.mrb[16].mxu1 %vm3745_vm2, %v13698_v54 }
 0x4fa   : > { %10181 = vmatprep.mubr.msk.f32.mxu1 %vm3745_vm2, %v13699_v56  ;;  %v13706_v56 = vld [vmem:[#allocation23_spill] sm:$0xff] }
 0x4fd   : > { %10182 = vmatmul.mubr.msk.f32.gmra.mrb[18].mxu1 %vm3745_vm2, %v13700_v60 }
 0x4fe   : > { %10184 = vmatprep.mubr.msk.f32.mxu1 %vm3745_vm2, %v13701_v7 }
 0x501   : > { %10185 = vmatmul.mubr.msk.f32.gmra.mrb[20].mxu1 %vm3745_vm2, %v13702_v27 }
 0x502   : > { %10187 = vmatprep.mubr.msk.f32.mxu1 %vm3745_vm2, %v13703_v37  ;;  %v12945_v37 = vld [vmem:[#allocation2 + $0x182] sm:$0xff] }
 0x505   : > { %10188 = vmatmul.mubr.msk.f32.gmra.mrb[22].mxu1 %vm3745_vm2, %v13704_v41 }
 0x506   : > { %10190 = vmatprep.mubr.msk.f32.mxu1 %vm3745_vm2, %v13705_v57  ;;  %v12949_v57 = vld [vmem:[#allocation2 + $0x18a] sm:$0xff] }
 0x509   : > { %10191 = vmatmul.mubr.msk.f32.gmra.mrb[24].mxu1 %vm3745_vm2, %v12719_v11 }
 0x50a   : > { %10193 = vmatprep.mubr.msk.f32.mxu1 %vm3745_vm2, %v13706_v56 }
 0x50d   : > { %10194 = vmatmul.mubr.msk.f32.gmra.mrb[26].mxu1 %vm3745_vm2, %v12727_v53 }
 0x50e   : > { %10196 = vmatprep.mubr.msk.f32.mxu1 %vm3745_vm2, %v12731_v0  ;;  %v8821_v0 = vld [vmem:[%s13438_s3 + $0x40] sm:$0xff] }
 0x511   : > { %10197 = vmatmul.mubr.msk.f32.gmra.mrb[28].mxu1 %vm3745_vm2, %v12735_v9 }
 0x512   : > { %10199 = vmatprep.mubr.msk.f32.mxu1 %vm3745_vm2, %v12945_v37 }
 0x515   : > { %10200 = vmatmul.mubr.msk.f32.gmra.mrb[30].mxu1 %vm3745_vm2, %v12949_v57 }
 0x516   : > { %10204 = vmatprep.mubr.msk.f32.mxu1 %vm3745_vm2, %v12498_v22  ;;  %v6443_v22 = vld [vmem:[#allocation2 + $0x198] sm:$0xff] }
 0x519   : > { %10205 = vmatmul.mubr.msk.f32.vlgmr.msra.gmra.mrb[0].mxu1 %vm3745_vm2, %v12502_v61  ;;  %v6444_v61 = vld [vmem:[#allocation2 + $0x1a0] sm:$0xff] }
 0x51a   : > { %10253 = vmatpush3.msra.mxu1 %v8788_v20  ;;  %10207 = vmatprep.mubr.msk.f32.mxu1 %vm3745_vm2, %v12506_v18  ;;  %v6800_v18 = vld [vmem:[#allocation2 + $0x31] sm:$0xff] }
 0x51b   : > { %10302 = vmatprep.subr.mxu1 %v8821_v0 }
 0x51d   : > { %10208 = vmatmul.mubr.msk.f32.gmra.mrb[2].mxu1 %vm3745_vm2, %v12510_v48  ;;  %v6801_v48 = vld [vmem:[#allocation2 + $0x39] sm:$0xff] }
 0x51e   : > { %10210 = vmatprep.mubr.msk.f32.mxu1 %vm3745_vm2, %v12514_v38  ;;  %v6802_v38 = vld [vmem:[#allocation2 + $0x49] sm:$0xff] }
 0x521   : > { %10211 = vmatmul.mubr.msk.f32.gmra.mrb[4].mxu1 %vm3745_vm2, %v12518_v59  ;;  %v6803_v59 = vld [vmem:[#allocation2 + $0x51] sm:$0xff] }
 0x522   : > { %10213 = vmatprep.mubr.msk.f32.mxu1 %vm3745_vm2, %v12522_v23  ;;  %v6804_v23 = vld [vmem:[#allocation2 + $0x61] sm:$0xff] }
 0x525   : > { %10214 = vmatmul.mubr.msk.f32.gmra.mrb[6].mxu1 %vm3745_vm2, %v12526_v40  ;;  %v6805_v40 = vld [vmem:[#allocation2 + $0x69] sm:$0xff] }
 0x526   : > { %10216 = vmatprep.mubr.msk.f32.mxu1 %vm3745_vm2, %v12530_v8  ;;  %v6806_v8 = vld [vmem:[#allocation2 + $0x79] sm:$0xff] }
 0x529   : > { %10217 = vmatmul.mubr.msk.f32.gmra.mrb[8].mxu1 %vm3745_vm2, %v12534_v4  ;;  %v6807_v4 = vld [vmem:[#allocation2 + $0x81] sm:$0xff] }
 0x52a   : > { %10219 = vmatprep.mubr.msk.f32.mxu1 %vm3745_vm2, %v12538_v32  ;;  %v6808_v32 = vld [vmem:[#allocation2 + $0x91] sm:$0xff] }
 0x52d   : > { %10220 = vmatmul.mubr.msk.f32.gmra.mrb[10].mxu1 %vm3745_vm2, %v12542_v10  ;;  %v13722_v10 = vld [vmem:[#allocation15_spill] sm:$0xff] }
 0x52e   : > { %10222 = vmatprep.mubr.msk.f32.mxu1 %vm3745_vm2, %v12546_v17  ;;  %v13723_v17 = vld [vmem:[#allocation20_spill] sm:$0xff] }
 0x531   : > { %10223 = vmatmul.mubr.msk.f32.gmra.mrb[12].mxu1 %vm3745_vm2, %v12550_v47  ;;  %v13724_v47 = vld [vmem:[#allocation22_spill] sm:$0xff] }
 0x532   : > { %10225 = vmatprep.mubr.msk.f32.mxu1 %vm3745_vm2, %v12554_v29  ;;  %v13725_v29 = vld [vmem:[#allocation24_spill] sm:$0xff] }
 0x535   : > { %10226 = vmatmul.mubr.msk.f32.gmra.mrb[14].mxu1 %vm3745_vm2, %v12558_v14  ;;  %v7217_v14 = vld [vmem:[#allocation2 + $0x19a] sm:$0xff] }
 0x536   : > { %10228 = vmatprep.mubr.msk.f32.mxu1 %vm3745_vm2, %v12562_v19  ;;  %v13136_v19 = vld [vmem:[%s13439_s4] ss:$0 sm:$0xff] }
 0x539   : > { %10229 = vmatmul.mubr.msk.f32.gmra.mrb[16].mxu1 %vm3745_vm2, %v12566_v55 }
 0x53a   : > { %10231 = vmatprep.mubr.msk.f32.mxu1 %vm3745_vm2, %v12570_v2 }
 0x53d   : > { %10232 = vmatmul.mubr.msk.f32.gmra.mrb[18].mxu1 %vm3745_vm2, %v12574_v31 }
 0x53e   : > { %10234 = vmatprep.mubr.msk.f32.mxu1 %vm3745_vm2, %v12578_v25 }
 0x541   : > { %10235 = vmatmul.mubr.msk.f32.gmra.mrb[20].mxu1 %vm3745_vm2, %v12582_v16 }
 0x542   : > { %10237 = vmatprep.mubr.msk.f32.mxu1 %vm3745_vm2, %v12586_v63 }
 0x545   : > { %10238 = vmatmul.mubr.msk.f32.gmra.mrb[22].mxu1 %vm3745_vm2, %v12590_v12 }
 0x546   : > { %10240 = vmatprep.mubr.msk.f32.mxu1 %vm3745_vm2, %v12594_v43 }
 0x549   : > { %10241 = vmatmul.mubr.msk.f32.gmra.mrb[24].mxu1 %vm3745_vm2, %v12598_v44 }
 0x54a   : > { %10243 = vmatprep.mubr.msk.f32.mxu1 %vm3745_vm2, %v12602_v39 }
 0x54d   : > { %10244 = vmatmul.mubr.msk.f32.gmra.mrb[26].mxu1 %vm3745_vm2, %v12606_v50 }
 0x54e   : > { %10246 = vmatprep.mubr.msk.f32.mxu1 %vm3745_vm2, %v12803_v58 }
 0x551   : > { %10247 = vmatmul.mubr.msk.f32.gmra.mrb[28].mxu1 %vm3745_vm2, %v12807_v26 }
 0x552   : > { %10249 = vmatprep.mubr.msk.f32.mxu1 %vm3745_vm2, %v6443_v22 }
 0x555   : > { %10250 = vmatmul.mubr.msk.f32.gmra.mrb[30].mxu1 %vm3745_vm2, %v6444_v61 }
 0x556   : > { %10254 = vmatprep.mubr.msk.f32.mxu1 %vm3745_vm2, %v6800_v18 }
 0x559   : > { %10255 = vmatmul.mubr.msk.f32.vlgmr.msra.gmra.mrb[0].mxu1 %vm3745_vm2, %v6801_v48 }
 0x55a   : > { %10303 = vmatpush3.msra.mxu1 %v8821_v0  ;;  %10257 = vmatprep.mubr.msk.f32.mxu1 %vm3745_vm2, %v6802_v38 }
 0x55d   : > { %10258 = vmatmul.mubr.msk.f32.gmra.mrb[2].mxu1 %vm3745_vm2, %v6803_v59 }
 0x55e   : > { %10260 = vmatprep.mubr.msk.f32.mxu1 %vm3745_vm2, %v6804_v23 }
 0x561   : > { %10261 = vmatmul.mubr.msk.f32.gmra.mrb[4].mxu1 %vm3745_vm2, %v6805_v40 }
 0x562   : > { %10263 = vmatprep.mubr.msk.f32.mxu1 %vm3745_vm2, %v6806_v8 }
 0x565   : > { %10264 = vmatmul.mubr.msk.f32.gmra.mrb[6].mxu1 %vm3745_vm2, %v6807_v4 }
 0x566   : > { %10266 = vmatprep.mubr.msk.f32.mxu1 %vm3745_vm2, %v6808_v32 }
 0x569   : > { %10267 = vmatmul.mubr.msk.f32.gmra.mrb[8].mxu1 %vm3745_vm2, %v12374_v6  ;;  %v6830_v6 = vld [vmem:[#allocation2 + $0x199] sm:$0xff] }
 0x56a   : > { %10269 = vmatprep.mubr.msk.f32.mxu1 %vm3745_vm2, %v12380_v49  ;;  %v6831_v49 = vld [vmem:[#allocation2 + $0x1a1] sm:$0xff] }
 0x56d   : > { %10270 = vmatmul.mubr.msk.f32.gmra.mrb[10].mxu1 %vm3745_vm2, %v12386_v36  ;;  %v13707_v36 = vld [vmem:[#allocation30_spill] sm:$0xff] }
 0x56e   : > { %10272 = vmatprep.mubr.msk.f32.mxu1 %vm3745_vm2, %v12392_v33  ;;  %v13708_v33 = vld [vmem:[#allocation31_spill] sm:$0xff] }
 0x571   : > { %10273 = vmatmul.mubr.msk.f32.gmra.mrb[12].mxu1 %vm3745_vm2, %v12398_v15  ;;  %v13709_v15 = vld [vmem:[#allocation33_spill] sm:$0xff] }
 0x572   : > { %10275 = vmatprep.mubr.msk.f32.mxu1 %vm3745_vm2, %v12404_v21  ;;  %v13710_v21 = vld [vmem:[#allocation35_spill] sm:$0xff] }
 0x575   : > { %10276 = vmatmul.mubr.msk.f32.gmra.mrb[14].mxu1 %vm3745_vm2, %v12410_v28  ;;  %v13711_v28 = vld [vmem:[#allocation3_spill] sm:$0xff] }
 0x576   : > { %10278 = vmatprep.mubr.msk.f32.mxu1 %vm3745_vm2, %v12416_v52  ;;  %v13712_v52 = vld [vmem:[#allocation4_spill] sm:$0xff] }
 0x579   : > { %10279 = vmatmul.mubr.msk.f32.gmra.mrb[16].mxu1 %vm3745_vm2, %v12422_v5  ;;  %v13713_v5 = vld [vmem:[#allocation5_spill] sm:$0xff] }
 0x57a   : > { %10281 = vmatprep.mubr.msk.f32.mxu1 %vm3745_vm2, %v12428_v62  ;;  %v13714_v62 = vld [vmem:[#allocation6_spill] sm:$0xff] }
 0x57d   : > { %10282 = vmatmul.mubr.msk.f32.gmra.mrb[18].mxu1 %vm3745_vm2, %v12434_v51  ;;  %v13715_v51 = vld [vmem:[#allocation7_spill] sm:$0xff] }
 0x57e   : > { %10284 = vmatprep.mubr.msk.f32.mxu1 %vm3745_vm2, %v12440_v13  ;;  %v13716_v13 = vld [vmem:[#allocation8_spill] sm:$0xff] }
 0x581   : > { %10285 = vmatmul.mubr.msk.f32.gmra.mrb[20].mxu1 %vm3745_vm2, %v12446_v1  ;;  %v13717_v1 = vld [vmem:[#allocation9_spill] sm:$0xff] }
 0x582   : > { %10287 = vmatprep.mubr.msk.f32.mxu1 %vm3745_vm2, %v12452_v42  ;;  %v13718_v42 = vld [vmem:[#allocation10_spill] sm:$0xff] }
 0x585   : > { %10288 = vmatmul.mubr.msk.f32.gmra.mrb[22].mxu1 %vm3745_vm2, %v12458_v24  ;;  %v13719_v24 = vld [vmem:[#allocation37_spill] sm:$0xff] }
 0x586   : > { %10290 = vmatprep.mubr.msk.f32.mxu1 %vm3745_vm2, %v12463_v45  ;;  %v13720_v45 = vld [vmem:[#allocation38_spill] sm:$0xff] }
 0x589   : > { %10291 = vmatmul.mubr.msk.f32.gmra.mrb[24].mxu1 %vm3745_vm2, %v12468_v34  ;;  %v13721_v34 = vld [vmem:[#allocation13_spill] sm:$0xff] }
 0x58a   : > { %10293 = vmatprep.mubr.msk.f32.mxu1 %vm3745_vm2, %v13679_v3 }
 0x58d   : > { %10294 = vmatmul.mubr.msk.f32.gmra.mrb[26].mxu1 %vm3745_vm2, %v13680_v46 }
 0x58e   : > { %10296 = vmatprep.mubr.msk.f32.mxu1 %vm3745_vm2, %v12874_v30 }
 0x591   : > { %10297 = vmatmul.mubr.msk.f32.gmra.mrb[28].mxu1 %vm3745_vm2, %v12878_v35 }
 0x592   : > { %10299 = vmatprep.mubr.msk.f32.mxu1 %vm3745_vm2, %v6830_v6 }
 0x595   : > { %10300 = vmatmul.mubr.msk.f32.gmra.mrb[30].mxu1 %vm3745_vm2, %v6831_v49 }
 0x596   : > { %10304 = vmatprep.mubr.msk.f32.mxu1 %vm3745_vm2, %v13707_v36 }
 0x599   : > { %10305 = vmatmul.mubr.msk.f32.vlgmr.msra.gmra.mrb[0].mxu1 %vm3745_vm2, %v13708_v33 }
 0x59a   : > { %10307 = vmatprep.mubr.msk.f32.mxu1 %vm3745_vm2, %v13709_v15 }
 0x59d   : > { %10308 = vmatmul.mubr.msk.f32.gmra.mrb[2].mxu1 %vm3745_vm2, %v13710_v21 }
 0x59e   : > { %10310 = vmatprep.mubr.msk.f32.mxu1 %vm3745_vm2, %v13711_v28 }
 0x5a1   : > { %10311 = vmatmul.mubr.msk.f32.gmra.mrb[4].mxu1 %vm3745_vm2, %v13712_v52 }
 0x5a2   : > { %10313 = vmatprep.mubr.msk.f32.mxu1 %vm3745_vm2, %v13713_v5 }
 0x5a5   : > { %10314 = vmatmul.mubr.msk.f32.gmra.mrb[6].mxu1 %vm3745_vm2, %v13714_v62 }
 0x5a6   : > { %10316 = vmatprep.mubr.msk.f32.mxu1 %vm3745_vm2, %v13715_v51 }
 0x5a9   : > { %10317 = vmatmul.mubr.msk.f32.gmra.mrb[8].mxu1 %vm3745_vm2, %v13716_v13 }
 0x5aa   : > { %10319 = vmatprep.mubr.msk.f32.mxu1 %vm3745_vm2, %v13717_v1 }
 0x5ad   : > { %10320 = vmatmul.mubr.msk.f32.gmra.mrb[10].mxu1 %vm3745_vm2, %v13718_v42 }
 0x5ae   : > { %10322 = vmatprep.mubr.msk.f32.mxu1 %vm3745_vm2, %v13719_v24 }
 0x5b1   : > { %10323 = vmatmul.mubr.msk.f32.gmra.mrb[12].mxu1 %vm3745_vm2, %v13720_v45 }
 0x5b2   : > { %10325 = vmatprep.mubr.msk.f32.mxu1 %vm3745_vm2, %v13721_v34 }
 0x5b5   : > { %10326 = vmatmul.mubr.msk.f32.gmra.mrb[14].mxu1 %vm3745_vm2, %v13698_v54 }
 0x5b6   : > { %10328 = vmatprep.mubr.msk.f32.mxu1 %vm3745_vm2, %v13722_v10 }
 0x5b9   : > { %10329 = vmatmul.mubr.msk.f32.gmra.mrb[16].mxu1 %vm3745_vm2, %v13700_v60 }
 0x5ba   : > { %10331 = vmatprep.mubr.msk.f32.mxu1 %vm3745_vm2, %v13701_v7 }
 0x5bd   : > { %10332 = vmatmul.mubr.msk.f32.gmra.mrb[18].mxu1 %vm3745_vm2, %v13702_v27 }
 0x5be   : > { %10334 = vmatprep.mubr.msk.f32.mxu1 %vm3745_vm2, %v13723_v17 }
 0x5c1   : > { %10335 = vmatmul.mubr.msk.f32.gmra.mrb[20].mxu1 %vm3745_vm2, %v13704_v41 }
 0x5c2   : > { %10337 = vmatprep.mubr.msk.f32.mxu1 %vm3745_vm2, %v13724_v47 }
 0x5c5   : > { %10338 = vmatmul.mubr.msk.f32.gmra.mrb[22].mxu1 %vm3745_vm2, %v12719_v11  ;;  %v7218_v11 = vld [vmem:[#allocation2 + $0x1a2] sm:$0xff] }
 0x5c6   : > { %10340 = vmatprep.mubr.msk.f32.mxu1 %vm3745_vm2, %v13706_v56 }
 0x5c9   : > { %10341 = vmatmul.mubr.msk.f32.gmra.mrb[24].mxu1 %vm3745_vm2, %v12727_v53 }
 0x5ca   : > { %10343 = vmatprep.mubr.msk.f32.mxu1 %vm3745_vm2, %v13725_v29 }
 0x5cd   : > { %10344 = vmatmul.mubr.msk.f32.gmra.mrb[26].mxu1 %vm3745_vm2, %v12735_v9 }
 0x5ce   : > { %10346 = vmatprep.mubr.msk.f32.mxu1 %vm3745_vm2, %v12945_v37 }
 0x5d1   : > { %10347 = vmatmul.mubr.msk.f32.gmra.mrb[28].mxu1 %vm3745_vm2, %v12949_v57 }
 0x5d2   : > { %10349 = vmatprep.mubr.msk.f32.mxu1 %vm3745_vm2, %v7217_v14 }
 0x5d5   : > { %10350 = vmatmul.mubr.msk.f32.gmra.mrb[30].mxu1 %vm3745_vm2, %v7218_v11 }
 0x66c   : > { %v10306_v55 = vpop.f32.mrb[0].mxu1 }
 0x66d   : > { %v13139_v2 = vadd.f32 %v10306_v55, %v13136_v19  ;;  %v7383_v31 = vpop.f32.mrb[1].mxu1 }
 0x66e   : > { %v13142_v25 = vadd.f32 %v13136_v19, %v7383_v31 }
 0x66f   : > { %v7614_v16 = vmul.f32 %v13139_v2, %v13139_v2 }
 0x670   : > { %v10309_v63 = vpop.f32.mrb[2].mxu1  ;;  %v7613_v12 = vmul.f32 %v13142_v25, %v13142_v25 }
 0x671   : > { %v13149_v43 = vadd.f32 %v10309_v63, %v13136_v19  ;;  %v7393_v44 = vpop.f32.mrb[3].mxu1  ;;  %v7648_v39 = vsel %vm3745_vm2, %v7614_v16, 0.0 }
 0x672   : > { %v13153_v50 = vadd.f32 %v13136_v19, %v7393_v44  ;;  %7649 = vadd.xlane.f32.xlu1 %v7648_v39  ;;  %v7645_v53 = vsel %vm3745_vm2, %v7613_v12, 0.0 }
 0x673   : > { %7646 = vadd.xlane.f32.xlu0 %v7645_v53  ;;  %v7616_v0 = vmul.f32 %v13149_v43, %v13149_v43 }
 0x674   : > { %v10312_v9 = vpop.f32.mrb[4].mxu1  ;;  %v7615_v58 = vmul.f32 %v13153_v50, %v13153_v50 }
 0x675   : > { %v13161_v26 = vadd.f32 %v10312_v9, %v13136_v19  ;;  %v7403_v3 = vpop.f32.mrb[5].mxu1  ;;  %v7654_v46 = vsel %vm3745_vm2, %v7616_v0, 0.0 }
 0x676   : > { %v13165_v30 = vadd.f32 %v13136_v19, %v7403_v3  ;;  %7655 = vadd.xlane.f32.xlu1 %v7654_v46  ;;  %v7651_v35 = vsel %vm3745_vm2, %v7615_v58, 0.0 }
 0x677   : > { %7652 = vadd.xlane.f32.xlu0 %v7651_v35  ;;  %v7618_v20 = vmul.f32 %v13161_v26, %v13161_v26 }
 0x678   : > { %v10315_v56 = vpop.f32.mrb[6].mxu1  ;;  %v7617_v60 = vmul.f32 %v13165_v30, %v13165_v30 }
 0x679   : > { %v13173_v7 = vadd.f32 %v10315_v56, %v13136_v19  ;;  %v7413_v27 = vpop.f32.mrb[7].mxu1  ;;  %v7660_v37 = vsel %vm3745_vm2, %v7618_v20, 0.0 }
 0x67a   : > { %v13177_v41 = vadd.f32 %v13136_v19, %v7413_v27  ;;  %7661 = vadd.xlane.f32.xlu1 %v7660_v37  ;;  %v7657_v57 = vsel %vm3745_vm2, %v7617_v60, 0.0 }
 0x67b   : > { %7658 = vadd.xlane.f32.xlu0 %v7657_v57  ;;  %v7620_v54 = vmul.f32 %v13173_v7, %v13173_v7 }
 0x67c   : > { %v10318_v22 = vpop.f32.mrb[8].mxu1  ;;  %v7619_v61 = vmul.f32 %v13177_v41, %v13177_v41 }
 0x67d   : > { %v13185_v18 = vadd.f32 %v10318_v22, %v13136_v19  ;;  %v7423_v48 = vpop.f32.mrb[9].mxu1  ;;  %v7666_v38 = vsel %vm3745_vm2, %v7620_v54, 0.0 }
 0x67e   : > { %v13189_v59 = vadd.f32 %v13136_v19, %v7423_v48  ;;  %7667 = vadd.xlane.f32.xlu1 %v7666_v38  ;;  %v7663_v23 = vsel %vm3745_vm2, %v7619_v61, 0.0 }
 0x67f   : > { %7664 = vadd.xlane.f32.xlu0 %v7663_v23  ;;  %v7622_v40 = vmul.f32 %v13185_v18, %v13185_v18 }
 0x680   : > { %v10321_v8 = vpop.f32.mrb[10].mxu1  ;;  %v7621_v4 = vmul.f32 %v13189_v59, %v13189_v59 }
 0x681   : > { %v13197_v32 = vadd.f32 %v10321_v8, %v13136_v19  ;;  %v7433_v6 = vpop.f32.mrb[11].mxu1  ;;  %v7672_v49 = vsel %vm3745_vm2, %v7622_v40, 0.0 }
 0x682   : > { %v13201_v36 = vadd.f32 %v13136_v19, %v7433_v6  ;;  %7673 = vadd.xlane.f32.xlu1 %v7672_v49  ;;  %v7669_v33 = vsel %vm3745_vm2, %v7621_v4, 0.0 }
 0x683   : > { %7670 = vadd.xlane.f32.xlu0 %v7669_v33  ;;  %v7624_v15 = vmul.f32 %v13197_v32, %v13197_v32 }
 0x684   : > { %v10324_v21 = vpop.f32.mrb[12].mxu1  ;;  %v7623_v28 = vmul.f32 %v13201_v36, %v13201_v36 }
 0x685   : > { %v13209_v52 = vadd.f32 %v10324_v21, %v13136_v19  ;;  %v7443_v5 = vpop.f32.mrb[13].mxu1  ;;  %v7678_v62 = vsel %vm3745_vm2, %v7624_v15, 0.0 }
 0x686   : > { %v13213_v51 = vadd.f32 %v13136_v19, %v7443_v5  ;;  %7679 = vadd.xlane.f32.xlu1 %v7678_v62  ;;  %v7675_v13 = vsel %vm3745_vm2, %v7623_v28, 0.0 }
 0x687   : > { %7676 = vadd.xlane.f32.xlu0 %v7675_v13  ;;  %v7626_v1 = vmul.f32 %v13209_v52, %v13209_v52 }
 0x688   : > { %v10327_v42 = vpop.f32.mrb[14].mxu1  ;;  %v7625_v24 = vmul.f32 %v13213_v51, %v13213_v51 }
 0x689   : > { %v13221_v45 = vadd.f32 %v10327_v42, %v13136_v19  ;;  %v7453_v34 = vpop.f32.mrb[15].mxu1  ;;  %v7684_v10 = vsel %vm3745_vm2, %v7626_v1, 0.0 }
 0x68a   : > { %v13225_v17 = vadd.f32 %v13136_v19, %v7453_v34  ;;  %7685 = vadd.xlane.f32.xlu1 %v7684_v10  ;;  %v7681_v47 = vsel %vm3745_vm2, %v7625_v24, 0.0 }
 0x68b   : > { %7682 = vadd.xlane.f32.xlu0 %v7681_v47  ;;  %v7628_v29 = vmul.f32 %v13221_v45, %v13221_v45 }
 0x68c   : > { %v10330_v14 = vpop.f32.mrb[16].mxu1  ;;  %v7627_v11 = vmul.f32 %v13225_v17, %v13225_v17 }
 0x68d   : > { %v13233_v55 = vadd.f32 %v10330_v14, %v13136_v19  ;;  %v7463_v31 = vpop.f32.mrb[17].mxu1  ;;  %v7690_v16 = vsel %vm3745_vm2, %v7628_v29, 0.0 }
 0x68e   : > { %v13237_v63 = vadd.f32 %v13136_v19, %v7463_v31  ;;  %7691 = vadd.xlane.f32.xlu1 %v7690_v16  ;;  %v7687_v12 = vsel %vm3745_vm2, %v7627_v11, 0.0 }
 0x68f   : > { %7688 = vadd.xlane.f32.xlu0 %v7687_v12  ;;  %v7630_v44 = vmul.f32 %v13233_v55, %v13233_v55 }
 0x690   : > { %v10333_v39 = vpop.f32.mrb[18].mxu1  ;;  %v7629_v53 = vmul.f32 %v13237_v63, %v13237_v63 }
 0x691   : > { %v13245_v0 = vadd.f32 %v10333_v39, %v13136_v19  ;;  %v7473_v9 = vpop.f32.mrb[19].mxu1  ;;  %v7696_v58 = vsel %vm3745_vm2, %v7630_v44, 0.0 }
 0x692   : > { %v13249_v3 = vadd.f32 %v13136_v19, %v7473_v9  ;;  %7697 = vadd.xlane.f32.xlu1 %v7696_v58  ;;  %v7693_v46 = vsel %vm3745_vm2, %v7629_v53, 0.0 }
 0x693   : > { %7694 = vadd.xlane.f32.xlu0 %v7693_v46  ;;  %v7632_v35 = vmul.f32 %v13245_v0, %v13245_v0 }
 0x694   : > { %v10336_v20 = vpop.f32.mrb[20].mxu1  ;;  %v7631_v56 = vmul.f32 %v13249_v3, %v13249_v3 }
 0x695   : > { %v13257_v60 = vadd.f32 %v10336_v20, %v13136_v19  ;;  %v7483_v27 = vpop.f32.mrb[21].mxu1  ;;  %v7702_v37 = vsel %vm3745_vm2, %v7632_v35, 0.0 }
 0x696   : > { %v13261_v57 = vadd.f32 %v13136_v19, %v7483_v27  ;;  %7703 = vadd.xlane.f32.xlu1 %v7702_v37  ;;  %v7699_v54 = vsel %vm3745_vm2, %v7631_v56, 0.0 }
 0x697   : > { %7700 = vadd.xlane.f32.xlu0 %v7699_v54  ;;  %v7634_v22 = vmul.f32 %v13257_v60, %v13257_v60 }
 0x698   : > { %v10339_v61 = vpop.f32.mrb[22].mxu1  ;;  %v7633_v48 = vmul.f32 %v13261_v57, %v13261_v57 }
 0x699   : > { %v13269_v38 = vadd.f32 %v10339_v61, %v13136_v19  ;;  %v7493_v23 = vpop.f32.mrb[23].mxu1  ;;  %v7708_v40 = vsel %vm3745_vm2, %v7634_v22, 0.0 }
 0x69a   : > { %v13273_v8 = vadd.f32 %v13136_v19, %v7493_v23  ;;  %7709 = vadd.xlane.f32.xlu1 %v7708_v40  ;;  %v7705_v4 = vsel %vm3745_vm2, %v7633_v48, 0.0 }
 0x69b   : > { %7706 = vadd.xlane.f32.xlu0 %v7705_v4  ;;  %v7636_v6 = vmul.f32 %v13269_v38, %v13269_v38 }
 0x69c   : > { %v10342_v49 = vpop.f32.mrb[24].mxu1  ;;  %v7635_v33 = vmul.f32 %v13273_v8, %v13273_v8 }
 0x69d   : > { %v13281_v15 = vadd.f32 %v10342_v49, %v13136_v19  ;;  %v7503_v21 = vpop.f32.mrb[25].mxu1  ;;  %v7714_v28 = vsel %vm3745_vm2, %v7636_v6, 0.0 }
 0x69e   : > { %v13285_v5 = vadd.f32 %v13136_v19, %v7503_v21  ;;  %7715 = vadd.xlane.f32.xlu1 %v7714_v28  ;;  %v7711_v62 = vsel %vm3745_vm2, %v7635_v33, 0.0 }
 0x69f   : > { %7712 = vadd.xlane.f32.xlu0 %v7711_v62  ;;  %v7638_v13 = vmul.f32 %v13281_v15, %v13281_v15 }
 0x6a0   : > { %v10345_v1 = vpop.f32.mrb[26].mxu1  ;;  %v7637_v42 = vmul.f32 %v13285_v5, %v13285_v5 }
 0x6a1   : > { %v13293_v24 = vadd.f32 %v10345_v1, %v13136_v19  ;;  %v7513_v34 = vpop.f32.mrb[27].mxu1  ;;  %v7720_v10 = vsel %vm3745_vm2, %v7638_v13, 0.0 }
 0x6a2   : > { %v13297_v47 = vadd.f32 %v13136_v19, %v7513_v34  ;;  %7721 = vadd.xlane.f32.xlu1 %v7720_v10  ;;  %v7717_v29 = vsel %vm3745_vm2, %v7637_v42, 0.0 }
 0x6a3   : > { %7718 = vadd.xlane.f32.xlu0 %v7717_v29  ;;  %v7640_v14 = vmul.f32 %v13293_v24, %v13293_v24 }
 0x6a4   : > { %v10348_v11 = vpop.f32.mrb[28].mxu1  ;;  %v7639_v31 = vmul.f32 %v13297_v47, %v13297_v47 }
 0x6a5   : > { %v13305_v16 = vadd.f32 %v10348_v11, %v13136_v19  ;;  %v7523_v12 = vpop.f32.mrb[29].mxu1  ;;  %v7726_v44 = vsel %vm3745_vm2, %v7640_v14, 0.0 }
 0x6a6   : > { %v13309_v39 = vadd.f32 %v13136_v19, %v7523_v12  ;;  %7727 = vadd.xlane.f32.xlu1 %v7726_v44  ;;  %v7723_v53 = vsel %vm3745_vm2, %v7639_v31, 0.0 }
 0x6a7   : > { %7724 = vadd.xlane.f32.xlu0 %v7723_v53  ;;  %v7642_v9 = vmul.f32 %v13305_v16, %v13305_v16 }
 0x6a8   : > { %v10351_v58 = vpop.f32.mrb[30].mxu1  ;;  %v7641_v46 = vmul.f32 %v13309_v39, %v13309_v39 }
 0x6a9   : > { %v13317_v35 = vadd.f32 %v10351_v58, %v13136_v19  ;;  %v7533_v20 = vpop.f32.mrb[31].mxu1  ;;  %v7732_v56 = vsel %vm3745_vm2, %v7642_v9, 0.0 }
 0x6aa   : > { %v13321_v27 = vadd.f32 %v13136_v19, %v7533_v20  ;;  %7733 = vadd.xlane.f32.xlu1 %v7732_v56  ;;  %v7729_v37 = vsel %vm3745_vm2, %v7641_v46, 0.0 }
 0x6ab   : > { %7730 = vadd.xlane.f32.xlu0 %v7729_v37  ;;  %v7644_v54 = vmul.f32 %v13317_v35, %v13317_v35 }
 0x6ac   : > { %v7643_v22 = vmul.f32 %v13321_v27, %v13321_v27 }
 0x6ad   : > { %v7738_v61 = vsel %vm3745_vm2, %v7644_v54, 0.0 }
 0x6ae   : > { %7739 = vadd.xlane.f32.xlu1 %v7738_v61  ;;  %v7735_v48 = vsel %vm3745_vm2, %v7643_v22, 0.0 }
 0x6af   : > { %7736 = vadd.xlane.f32.xlu0 %v7735_v48 }
 0x6ff   : > { %v7650_v23 = vpop.xlane.xlu1 %7649 }
 0x700   : > { %v7742_v40 = vmul.f32 0.125, %v7650_v23  ;;  %v7647_v19 = vpop.xlane.xlu0 %7646 }
 0x701   : > { %v7741_v4 = vmul.f32 0.125, %v7647_v19 }
 0x702   : > { %v7774_v6 = vadd.f32 1e-08, %v7742_v40 }
 0x703   : > { %v7773_v49 = vadd.f32 1e-08, %v7741_v4  ;;  %v7656_v33 = vpop.xlane.xlu1 %7655 }
 0x704   : > { %10938 = vrsqrt.f32 %v7774_v6  ;;  %v7744_v21 = vmul.f32 0.125, %v7656_v33  ;;  %v7653_v28 = vpop.xlane.xlu0 %7652 }
 0x705   : > { %10940 = vrsqrt.f32 %v7773_v49  ;;  %v7743_v62 = vmul.f32 0.125, %v7653_v28 }
 0x706   : > { %v7776_v13 = vadd.f32 1e-08, %v7744_v21 }
 0x707   : > { %v7775_v1 = vadd.f32 1e-08, %v7743_v62  ;;  %v7662_v42 = vpop.xlane.xlu1 %7661 }
 0x708   : > { %10942 = vrsqrt.f32 %v7776_v13  ;;  %v7746_v34 = vmul.f32 0.125, %v7662_v42  ;;  %v7659_v10 = vpop.xlane.xlu0 %7658 }
 0x709   : > { %10944 = vrsqrt.f32 %v7775_v1  ;;  %v7745_v29 = vmul.f32 0.125, %v7659_v10 }
 0x70a   : > { %v7778_v14 = vadd.f32 1e-08, %v7746_v34 }
 0x70b   : > { %v7777_v11 = vadd.f32 1e-08, %v7745_v29  ;;  %v7668_v31 = vpop.xlane.xlu1 %7667 }
 0x70c   : > { %10946 = vrsqrt.f32 %v7778_v14  ;;  %v7748_v12 = vmul.f32 0.125, %v7668_v31  ;;  %v7665_v44 = vpop.xlane.xlu0 %7664 }
 0x70d   : > { %10948 = vrsqrt.f32 %v7777_v11  ;;  %v7747_v53 = vmul.f32 0.125, %v7665_v44 }
 0x70e   : > { %v10939_v9 = vpop.eup %10938  ;;  %v7780_v58 = vadd.f32 1e-08, %v7748_v12 }
 0x70f   : > { %v10941_v46 = vpop.eup %10940  ;;  %v7838_v20 = vmul.f32 %v10939_v9, %v13139_v2  ;;  %v7779_v56 = vadd.f32 1e-08, %v7747_v53  ;;  %v7674_v37 = vpop.xlane.xlu1 %7673 }
 0x710   : > { %v7837_v54 = vmul.f32 %v10941_v46, %v13142_v25  ;;  %10950 = vrsqrt.f32 %v7780_v58  ;;  %v7750_v22 = vmul.f32 0.125, %v7674_v37  ;;  %v7671_v61 = vpop.xlane.xlu0 %7670 }
 0x711   : > { %vm7870_vm6 = vcmp.ge.f32.partialorder %v7838_v20, 0.0  ;;  %v7902_v48 = vmul.f32 0.2, %v7838_v20  ;;  %10952 = vrsqrt.f32 %v7779_v56  ;;  %v7749_v23 = vmul.f32 0.125, %v7671_v61 }
 0x712   : > { %v10943_v40 = vpop.eup %10942  ;;  %vm7869_vm7 = vcmp.ge.f32.partialorder %v7837_v54, 0.0  ;;  %v7901_v2 = vmul.f32 0.2, %v7837_v54  ;;  %v7782_v19 = vadd.f32 1e-08, %v7750_v22 }
 0x713   : > { %v10945_v4 = vpop.eup %10944  ;;  %v7934_v25 = vsel %vm7870_vm6, %v7838_v20, %v7902_v48  ;;  %v7840_v6 = vmul.f32 %v10943_v40, %v13149_v43  ;;  %v7781_v49 = vadd.f32 1e-08, %v7749_v23  ;;  %v7680_v33 = vpop.xlane.xlu1 %7679 }
 0x714   : > { %7966 = vst.msk [vmem:[%s13336_s21 + $0x8] sm:$0xff] %vm3745_vm2, %v7934_v25  ;;  %v7933_v21 = vsel %vm7869_vm7, %v7837_v54, %v7901_v2  ;;  %v7839_v28 = vmul.f32 %v10945_v4, %v13153_v50  ;;  %10954 = vrsqrt.f32 %v7782_v19  ;;  %v7752_v62 = vmul.f32 0.125, %v7680_v33  ;;  %v7677_v13 = vpop.xlane.xlu0 %7676 }
 0x715   : > { %7965 = vst.msk [vmem:[%s13336_s21] sm:$0xff] %vm3745_vm2, %v7933_v21  ;;  %vm7872_vm8 = vcmp.ge.f32.partialorder %v7840_v6, 0.0  ;;  %v7904_v1 = vmul.f32 0.2, %v7840_v6  ;;  %10956 = vrsqrt.f32 %v7781_v49  ;;  %v7751_v42 = vmul.f32 0.125, %v7677_v13 }
 0x716   : > { %v10947_v34 = vpop.eup %10946  ;;  %vm7871_vm9 = vcmp.ge.f32.partialorder %v7839_v28, 0.0  ;;  %v7903_v43 = vmul.f32 0.2, %v7839_v28  ;;  %v7784_v10 = vadd.f32 1e-08, %v7752_v62 }
 0x717   : > { %v10949_v29 = vpop.eup %10948  ;;  %v7936_v14 = vsel %vm7872_vm8, %v7840_v6, %v7904_v1  ;;  %v7842_v11 = vmul.f32 %v10947_v34, %v13161_v26  ;;  %v7783_v50 = vadd.f32 1e-08, %v7751_v42  ;;  %v7686_v31 = vpop.xlane.xlu1 %7685 }
 0x718   : > { %7968 = vst.msk [vmem:[%s13336_s21 + $0x18] sm:$0xff] %vm3745_vm2, %v7936_v14  ;;  %v7935_v12 = vsel %vm7871_vm9, %v7839_v28, %v7903_v43  ;;  %v7841_v44 = vmul.f32 %v10949_v29, %v13165_v30  ;;  %10958 = vrsqrt.f32 %v7784_v10  ;;  %v7754_v53 = vmul.f32 0.125, %v7686_v31  ;;  %v7683_v9 = vpop.xlane.xlu0 %7682 }
 0x719   : > { %7967 = vst.msk [vmem:[%s13336_s21 + $0x10] sm:$0xff] %vm3745_vm2, %v7935_v12  ;;  %vm7874_vm10 = vcmp.ge.f32.partialorder %v7842_v11, 0.0  ;;  %v7906_v58 = vmul.f32 0.2, %v7842_v11  ;;  %10960 = vrsqrt.f32 %v7783_v50  ;;  %v7753_v46 = vmul.f32 0.125, %v7683_v9 }
 0x71a   : > { %v10951_v20 = vpop.eup %10950  ;;  %vm7873_vm11 = vcmp.ge.f32.partialorder %v7841_v44, 0.0  ;;  %v7905_v26 = vmul.f32 0.2, %v7841_v44  ;;  %v7786_v56 = vadd.f32 1e-08, %v7754_v53 }
 0x71b   : > { %v10953_v37 = vpop.eup %10952  ;;  %v7938_v54 = vsel %vm7874_vm10, %v7842_v11, %v7906_v58  ;;  %v7844_v22 = vmul.f32 %v10951_v20, %v13173_v7  ;;  %v7785_v30 = vadd.f32 1e-08, %v7753_v46  ;;  %v7692_v61 = vpop.xlane.xlu1 %7691 }
 0x71c   : > { %7970 = vst.msk [vmem:[%s13336_s21 + $0x28] sm:$0xff] %vm3745_vm2, %v7938_v54  ;;  %v7937_v48 = vsel %vm7873_vm11, %v7841_v44, %v7905_v26  ;;  %v7843_v23 = vmul.f32 %v10953_v37, %v13177_v41  ;;  %10962 = vrsqrt.f32 %v7786_v56  ;;  %v7756_v40 = vmul.f32 0.125, %v7692_v61  ;;  %v7689_v2 = vpop.xlane.xlu0 %7688 }
 0x71d   : > { %7969 = vst.msk [vmem:[%s13336_s21 + $0x20] sm:$0xff] %vm3745_vm2, %v7937_v48  ;;  %vm7876_vm12 = vcmp.ge.f32.partialorder %v7844_v22, 0.0  ;;  %v7908_v19 = vmul.f32 0.2, %v7844_v22  ;;  %10964 = vrsqrt.f32 %v7785_v30  ;;  %v7755_v4 = vmul.f32 0.125, %v7689_v2 }
 0x71e   : > { %v10955_v25 = vpop.eup %10954  ;;  %vm7875_vm13 = vcmp.ge.f32.partialorder %v7843_v23, 0.0  ;;  %v7907_v7 = vmul.f32 0.2, %v7843_v23  ;;  %v7788_v6 = vadd.f32 1e-08, %v7756_v40 }
 0x71f   : > { %v10957_v49 = vpop.eup %10956  ;;  %v7940_v33 = vsel %vm7876_vm12, %v7844_v22, %v7908_v19  ;;  %v7846_v21 = vmul.f32 %v10955_v25, %v13185_v18  ;;  %v7787_v41 = vadd.f32 1e-08, %v7755_v4  ;;  %v7698_v28 = vpop.xlane.xlu1 %7697 }
 0x720   : > { %7972 = vst.msk [vmem:[%s13336_s21 + $0x38] sm:$0xff] %vm3745_vm2, %v7940_v33  ;;  %v7939_v62 = vsel %vm7875_vm13, %v7843_v23, %v7907_v7  ;;  %v7845_v13 = vmul.f32 %v10957_v49, %v13189_v59  ;;  %10966 = vrsqrt.f32 %v7788_v6  ;;  %v7758_v1 = vmul.f32 0.125, %v7698_v28  ;;  %v7695_v42 = vpop.xlane.xlu0 %7694 }
 0x721   : > { %7971 = vst.msk [vmem:[%s13336_s21 + $0x30] sm:$0xff] %vm3745_vm2, %v7939_v62  ;;  %vm7878_vm14 = vcmp.ge.f32.partialorder %v7846_v21, 0.0  ;;  %v7910_v34 = vmul.f32 0.2, %v7846_v21  ;;  %10968 = vrsqrt.f32 %v7787_v41  ;;  %v7757_v43 = vmul.f32 0.125, %v7695_v42 }
 0x722   : > { %v10959_v10 = vpop.eup %10958  ;;  %vm7877_vm15 = vcmp.ge.f32.partialorder %v7845_v13, 0.0  ;;  %v7909_v18 = vmul.f32 0.2, %v7845_v13  ;;  %v7790_v29 = vadd.f32 1e-08, %v7758_v1 }
 0x723   : > { %v10961_v14 = vpop.eup %10960  ;;  %v7942_v11 = vsel %vm7878_vm14, %v7846_v21, %v7910_v34  ;;  %v7848_v50 = vmul.f32 %v10959_v10, %v13197_v32  ;;  %v7789_v59 = vadd.f32 1e-08, %v7757_v43  ;;  %v7704_v31 = vpop.xlane.xlu1 %7703 }
 0x724   : > { %7974 = vst.msk [vmem:[%s13336_s21 + $0x48] sm:$0xff] %vm3745_vm2, %v7942_v11  ;;  %v7941_v12 = vsel %vm7877_vm15, %v7845_v13, %v7909_v18  ;;  %v7847_v44 = vmul.f32 %v10961_v14, %v13201_v36  ;;  %10970 = vrsqrt.f32 %v7790_v29  ;;  %v7760_v53 = vmul.f32 0.125, %v7704_v31  ;;  %v7701_v9 = vpop.xlane.xlu0 %7700 }
 0x725   : > { %7973 = vst.msk [vmem:[%s13336_s21 + $0x40] sm:$0xff] %vm3745_vm2, %v7941_v12  ;;  %vm7880_vm0 = vcmp.ge.f32.partialorder %v7848_v50, 0.0  ;;  %v7912_v58 = vmul.f32 0.2, %v7848_v50  ;;  %10972 = vrsqrt.f32 %v7789_v59  ;;  %v7759_v46 = vmul.f32 0.125, %v7701_v9 }
 0x726   : > { %v10963_v20 = vpop.eup %10962  ;;  %vm7879_vm1 = vcmp.ge.f32.partialorder %v7847_v44, 0.0  ;;  %v7911_v32 = vmul.f32 0.2, %v7847_v44  ;;  %v7792_v26 = vadd.f32 1e-08, %v7760_v53 }
 0x727   : > { %v10965_v56 = vpop.eup %10964  ;;  %v7944_v37 = vsel %vm7880_vm0, %v7848_v50, %v7912_v58  ;;  %v7850_v54 = vmul.f32 %v10963_v20, %v13209_v52  ;;  %v7791_v36 = vadd.f32 1e-08, %v7759_v46  ;;  %v7710_v22 = vpop.xlane.xlu1 %7709 }
 0x728   : > { %7976 = vst.msk [vmem:[%s13336_s21 + $0x58] sm:$0xff] %vm3745_vm2, %v7944_v37  ;;  %v7943_v30 = vsel %vm7879_vm1, %v7847_v44, %v7911_v32  ;;  %v7849_v61 = vmul.f32 %v10965_v56, %v13213_v51  ;;  %10974 = vrsqrt.f32 %v7792_v26  ;;  %v7762_v48 = vmul.f32 0.125, %v7710_v22  ;;  %v7707_v23 = vpop.xlane.xlu0 %7706 }
 0x729   : > { %7975 = vst.msk [vmem:[%s13336_s21 + $0x50] sm:$0xff] %vm3745_vm2, %v7943_v30  ;;  %vm7882_vm3 = vcmp.ge.f32.partialorder %v7850_v54, 0.0  ;;  %v7914_v40 = vmul.f32 0.2, %v7850_v54  ;;  %10976 = vrsqrt.f32 %v7791_v36  ;;  %v7761_v2 = vmul.f32 0.125, %v7707_v23 }
 0x72a   : > { %v10967_v19 = vpop.eup %10966  ;;  %vm7881_vm4 = vcmp.ge.f32.partialorder %v7849_v61, 0.0  ;;  %v7913_v52 = vmul.f32 0.2, %v7849_v61  ;;  %v7794_v4 = vadd.f32 1e-08, %v7762_v48 }
 0x72b   : > { %v10969_v25 = vpop.eup %10968  ;;  %v7946_v7 = vsel %vm7882_vm3, %v7850_v54, %v7914_v40  ;;  %v7852_v6 = vmul.f32 %v10967_v19, %v13221_v45  ;;  %v7793_v51 = vadd.f32 1e-08, %v7761_v2  ;;  %v7716_v49 = vpop.xlane.xlu1 %7715 }
 0x72c   : > { %7978 = vst.msk [vmem:[%s13336_s21 + $0x68] sm:$0xff] %vm3745_vm2, %v7946_v7  ;;  %v7945_v33 = vsel %vm7881_vm4, %v7849_v61, %v7913_v52  ;;  %v7851_v21 = vmul.f32 %v10969_v25, %v13225_v17  ;;  %10978 = vrsqrt.f32 %v7794_v4  ;;  %v7764_v41 = vmul.f32 0.125, %v7716_v49  ;;  %v7713_v28 = vpop.xlane.xlu0 %7712 }
 0x72d   : > { %7977 = vst.msk [vmem:[%s13336_s21 + $0x60] sm:$0xff] %vm3745_vm2, %v7945_v33  ;;  %vm7884_vm5 = vcmp.ge.f32.partialorder %v7852_v6, 0.0  ;;  %v7916_v62 = vmul.f32 0.2, %v7852_v6  ;;  %10980 = vrsqrt.f32 %v7793_v51  ;;  %v7763_v13 = vmul.f32 0.125, %v7713_v28 }
 0x72e   : > { %v10971_v1 = vpop.eup %10970  ;;  %vm7883_vm6 = vcmp.ge.f32.partialorder %v7851_v21, 0.0  ;;  %v7915_v45 = vmul.f32 0.2, %v7851_v21  ;;  %v7796_v42 = vadd.f32 1e-08, %v7764_v41 }
 0x72f   : > { %v10973_v34 = vpop.eup %10972  ;;  %v7948_v43 = vsel %vm7884_vm5, %v7852_v6, %v7916_v62  ;;  %v7854_v10 = vmul.f32 %v10971_v1, %v13233_v55  ;;  %v7795_v17 = vadd.f32 1e-08, %v7763_v13  ;;  %v7722_v18 = vpop.xlane.xlu1 %7721 }
 0x730   : > { %7980 = vst.msk [vmem:[%s13336_s21 + $0x78] sm:$0xff] %vm3745_vm2, %v7948_v43  ;;  %v7947_v29 = vsel %vm7883_vm6, %v7851_v21, %v7915_v45  ;;  %v7853_v14 = vmul.f32 %v10973_v34, %v13237_v63  ;;  %10982 = vrsqrt.f32 %v7796_v42  ;;  %v7766_v11 = vmul.f32 0.125, %v7722_v18  ;;  %v7719_v50 = vpop.xlane.xlu0 %7718 }
 0x731   : > { %7979 = vst.msk [vmem:[%s13336_s21 + $0x70] sm:$0xff] %vm3745_vm2, %v7947_v29  ;;  %vm7886_vm7 = vcmp.ge.f32.partialorder %v7854_v10, 0.0  ;;  %v7918_v59 = vmul.f32 0.2, %v7854_v10  ;;  %10984 = vrsqrt.f32 %v7795_v17  ;;  %v7765_v31 = vmul.f32 0.125, %v7719_v50 }
 0x732   : > { %v10975_v12 = vpop.eup %10974  ;;  %vm7885_vm8 = vcmp.ge.f32.partialorder %v7853_v14, 0.0  ;;  %v7917_v55 = vmul.f32 0.2, %v7853_v14  ;;  %v7798_v44 = vadd.f32 1e-08, %v7766_v11 }
 0x733   : > { %v10977_v53 = vpop.eup %10976  ;;  %v7950_v9 = vsel %vm7886_vm7, %v7854_v10, %v7918_v59  ;;  %v7856_v58 = vmul.f32 %v10975_v12, %v13245_v0  ;;  %v7797_v63 = vadd.f32 1e-08, %v7765_v31  ;;  %v7728_v46 = vpop.xlane.xlu1 %7727 }
 0x734   : > { %7982 = vst.msk [vmem:[%s13336_s21 + $0x88] sm:$0xff] %vm3745_vm2, %v7950_v9  ;;  %v7949_v20 = vsel %vm7885_vm8, %v7853_v14, %v7917_v55  ;;  %v7855_v32 = vmul.f32 %v10977_v53, %v13249_v3  ;;  %10986 = vrsqrt.f32 %v7798_v44  ;;  %v7768_v26 = vmul.f32 0.125, %v7728_v46  ;;  %v7725_v56 = vpop.xlane.xlu0 %7724 }
 0x735   : > { %7981 = vst.msk [vmem:[%s13336_s21 + $0x80] sm:$0xff] %vm3745_vm2, %v7949_v20  ;;  %vm7888_vm9 = vcmp.ge.f32.partialorder %v7856_v58, 0.0  ;;  %v7920_v37 = vmul.f32 0.2, %v7856_v58  ;;  %10988 = vrsqrt.f32 %v7797_v63  ;;  %v7767_v54 = vmul.f32 0.125, %v7725_v56 }
 0x736   : > { %v10979_v36 = vpop.eup %10978  ;;  %vm7887_vm10 = vcmp.ge.f32.partialorder %v7855_v32, 0.0  ;;  %v7919_v0 = vmul.f32 0.2, %v7855_v32  ;;  %v7800_v22 = vadd.f32 1e-08, %v7768_v26 }
 0x737   : > { %v10981_v30 = vpop.eup %10980  ;;  %v7952_v61 = vsel %vm7888_vm9, %v7856_v58, %v7920_v37  ;;  %v7858_v48 = vmul.f32 %v10979_v36, %v13257_v60  ;;  %v7799_v3 = vadd.f32 1e-08, %v7767_v54  ;;  %v7734_v23 = vpop.xlane.xlu1 %7733 }
 0x738   : > { %7984 = vst.msk [vmem:[%s13336_s21 + $0x98] sm:$0xff] %vm3745_vm2, %v7952_v61  ;;  %v7951_v40 = vsel %vm7887_vm10, %v7855_v32, %v7919_v0  ;;  %v7857_v2 = vmul.f32 %v10981_v30, %v13261_v57  ;;  %10990 = vrsqrt.f32 %v7800_v22  ;;  %v7770_v19 = vmul.f32 0.125, %v7734_v23  ;;  %v7731_v52 = vpop.xlane.xlu0 %7730 }
 0x739   : > { %7983 = vst.msk [vmem:[%s13336_s21 + $0x90] sm:$0xff] %vm3745_vm2, %v7951_v40  ;;  %vm7890_vm11 = vcmp.ge.f32.partialorder %v7858_v48, 0.0  ;;  %v7922_v4 = vmul.f32 0.2, %v7858_v48  ;;  %10992 = vrsqrt.f32 %v7799_v3  ;;  %v7769_v25 = vmul.f32 0.125, %v7731_v52 }
 0x73a   : > { %v10983_v7 = vpop.eup %10982  ;;  %vm7889_vm12 = vcmp.ge.f32.partialorder %v7857_v2, 0.0  ;;  %v7921_v60 = vmul.f32 0.2, %v7857_v2  ;;  %v7802_v6 = vadd.f32 1e-08, %v7770_v19 }
 0x73b   : > { %v10985_v51 = vpop.eup %10984  ;;  %v7954_v49 = vsel %vm7890_vm11, %v7858_v48, %v7922_v4  ;;  %v7860_v33 = vmul.f32 %v10983_v7, %v13269_v38  ;;  %v7801_v57 = vadd.f32 1e-08, %v7769_v25  ;;  %v7740_v21 = vpop.xlane.xlu1 %7739 }
 0x73c   : > { %7986 = vst.msk [vmem:[%s13336_s21 + $0xa8] sm:$0xff] %vm3745_vm2, %v7954_v49  ;;  %v7953_v41 = vsel %vm7889_vm12, %v7857_v2, %v7921_v60  ;;  %v7859_v28 = vmul.f32 %v10985_v51, %v13273_v8  ;;  %10994 = vrsqrt.f32 %v7802_v6  ;;  %v7772_v62 = vmul.f32 0.125, %v7740_v21  ;;  %v7737_v13 = vpop.xlane.xlu0 %7736 }
 0x73d   : > { %7985 = vst.msk [vmem:[%s13336_s21 + $0xa0] sm:$0xff] %vm3745_vm2, %v7953_v41  ;;  %vm7892_vm13 = vcmp.ge.f32.partialorder %v7860_v33, 0.0  ;;  %v7924_v1 = vmul.f32 0.2, %v7860_v33  ;;  %10996 = vrsqrt.f32 %v7801_v57  ;;  %v7771_v45 = vmul.f32 0.125, %v7737_v13 }
 0x73e   : > { %v10987_v42 = vpop.eup %10986  ;;  %vm7891_vm14 = vcmp.ge.f32.partialorder %v7859_v28, 0.0  ;;  %v7923_v38 = vmul.f32 0.2, %v7859_v28  ;;  %v7804_v34 = vadd.f32 1e-08, %v7772_v62 }
 0x73f   : > { %v10989_v43 = vpop.eup %10988  ;;  %v7956_v10 = vsel %vm7892_vm13, %v7860_v33, %v7924_v1  ;;  %v7862_v17 = vmul.f32 %v10987_v42, %v13281_v15  ;;  %v7803_v8 = vadd.f32 1e-08, %v7771_v45 }
 0x740   : > { %7988 = vst.msk [vmem:[%s13336_s21 + $0xb8] sm:$0xff] %vm3745_vm2, %v7956_v10  ;;  %v7955_v18 = vsel %vm7891_vm14, %v7859_v28, %v7923_v38  ;;  %v7861_v29 = vmul.f32 %v10989_v43, %v13285_v5  ;;  %10998 = vrsqrt.f32 %v7804_v34 }
 0x741   : > { %7987 = vst.msk [vmem:[%s13336_s21 + $0xb0] sm:$0xff] %vm3745_vm2, %v7955_v18  ;;  %vm7894_vm15 = vcmp.ge.f32.partialorder %v7862_v17, 0.0  ;;  %v7926_v14 = vmul.f32 0.2, %v7862_v17  ;;  %11000 = vrsqrt.f32 %v7803_v8 }
 0x742   : > { %v10991_v11 = vpop.eup %10990  ;;  %vm7893_vm0 = vcmp.ge.f32.partialorder %v7861_v29, 0.0  ;;  %v7925_v50 = vmul.f32 0.2, %v7861_v29 }
 0x743   : > { %v10993_v59 = vpop.eup %10992  ;;  %v7958_v15 = vsel %vm7894_vm15, %v7862_v17, %v7926_v14  ;;  %v7864_v31 = vmul.f32 %v10991_v11, %v13293_v24 }
 0x744   : > { %7990 = vst.msk [vmem:[%s13336_s21 + $0xc8] sm:$0xff] %vm3745_vm2, %v7958_v15  ;;  %v7957_v12 = vsel %vm7893_vm0, %v7861_v29, %v7925_v50  ;;  %v7863_v5 = vmul.f32 %v10993_v59, %v13297_v47 }
 0x745   : > { %7989 = vst.msk [vmem:[%s13336_s21 + $0xc0] sm:$0xff] %vm3745_vm2, %v7957_v12  ;;  %vm7896_vm1 = vcmp.ge.f32.partialorder %v7864_v31, 0.0  ;;  %v7928_v55 = vmul.f32 0.2, %v7864_v31 }
 0x746   : > { %v10995_v44 = vpop.eup %10994  ;;  %vm7895_vm3 = vcmp.ge.f32.partialorder %v7863_v5, 0.0  ;;  %v7927_v53 = vmul.f32 0.2, %v7863_v5 }
 0x747   : > { %v10997_v9 = vpop.eup %10996  ;;  %v7960_v58 = vsel %vm7896_vm1, %v7864_v31, %v7928_v55  ;;  %v7866_v63 = vmul.f32 %v10995_v44, %v13305_v16 }
 0x748   : > { %7992 = vst.msk [vmem:[%s13336_s21 + $0xd8] sm:$0xff] %vm3745_vm2, %v7960_v58  ;;  %v7959_v24 = vsel %vm7895_vm3, %v7863_v5, %v7927_v53  ;;  %v7865_v46 = vmul.f32 %v10997_v9, %v13309_v39 }
 0x749   : > { %7991 = vst.msk [vmem:[%s13336_s21 + $0xd0] sm:$0xff] %vm3745_vm2, %v7959_v24  ;;  %vm7898_vm4 = vcmp.ge.f32.partialorder %v7866_v63, 0.0  ;;  %v7930_v47 = vmul.f32 0.2, %v7866_v63 }
 0x74a   : > { %v10999_v20 = vpop.eup %10998  ;;  %vm7897_vm5 = vcmp.ge.f32.partialorder %v7865_v46, 0.0  ;;  %v7929_v32 = vmul.f32 0.2, %v7865_v46 }
 0x74b   : > { %v11001_v26 = vpop.eup %11000  ;;  %v7962_v56 = vsel %vm7898_vm4, %v7866_v63, %v7930_v47  ;;  %v7868_v37 = vmul.f32 %v10999_v20, %v13317_v35 }
 0x74c   : > { %7994 = vst.msk [vmem:[%s13336_s21 + $0xe8] sm:$0xff] %vm3745_vm2, %v7962_v56  ;;  %v7961_v16 = vsel %vm7897_vm5, %v7865_v46, %v7929_v32  ;;  %v7867_v54 = vmul.f32 %v11001_v26, %v13321_v27 }
 0x74d   : > { %7993 = vst.msk [vmem:[%s13336_s21 + $0xe0] sm:$0xff] %vm3745_vm2, %v7961_v16  ;;  %vm7900_vm6 = vcmp.ge.f32.partialorder %v7868_v37, 0.0  ;;  %v7932_v39 = vmul.f32 0.2, %v7868_v37 }
 0x74e   : > { %vm7899_vm7 = vcmp.ge.f32.partialorder %v7867_v54, 0.0  ;;  %v7931_v36 = vmul.f32 0.2, %v7867_v54 }
 0x74f   : > { %v7964_v0 = vsel %vm7900_vm6, %v7868_v37, %v7932_v39 }
 0x750   : > { %7996 = vst.msk [vmem:[%s13336_s21 + $0xf8] sm:$0xff] %vm3745_vm2, %v7964_v0  ;;  %v7963_v22 = vsel %vm7899_vm7, %v7867_v54, %v7931_v36 }
 0x751   : > { %7995 = vst.msk [vmem:[%s13336_s21 + $0xf0] sm:$0xff] %vm3745_vm2, %v7963_v22 }
 0x752 PF: > { %s15_s18 = sadd.s32 1, %s11008_s18  }
 0x753   : > { %p12_p4 = scmp.ge.s32.totalorder %s15_s18, 4  }
 0x755   :  { %14 = sbr.rel (!%p12_p4) target bundleno = 1 (0x1), region = 90 }

</bundles_post_ra>
